<compile_context>
chip_gen: v7x
topology: tpu7x:2x2x1
jax: 0.10.0
libtpu: 0.0.40
codegen_flags: <defaults>
</compile_context>

<pallas_src>
import jax
import jax.numpy as jnp
from jax.experimental import pallas as pl
from jax.experimental.pallas import tpu as pltpu


# --------------------------------------------------------------------------
# Small helpers
# --------------------------------------------------------------------------
def _round_up(x, m):
    return ((x + m - 1) // m) * m


def _pad_gate_cols(w, h, h_pad):
    """Pad the trailing 4*h gate axis to 4*h_pad per gate (PyTorch order i,f,g,o)."""
    if h == h_pad:
        return w
    lead = w.shape[:-1]
    w4 = w.reshape(lead + (4, h))
    w4 = jnp.pad(w4, [(0, 0)] * len(lead) + [(0, 0), (0, h_pad - h)])
    return w4.reshape(lead + (4 * h_pad,))


def _prep_wih(w_ih, d_real, d_pad, h, h_pad):
    """PyTorch (4h, sum(d_real)) -> MXU (sum(d_pad), 4*h_pad), zero-padded."""
    w = w_ih.T                                   # (sum(d_real), 4h)
    blocks, off = [], 0
    for dr, dp in zip(d_real, d_pad):
        blk = w[off:off + dr]
        off += dr
        if dp != dr:
            blk = jnp.pad(blk, ((0, dp - dr), (0, 0)))
        blocks.append(blk)
    w = blocks[0] if len(blocks) == 1 else jnp.concatenate(blocks, axis=0)
    return _pad_gate_cols(w, h, h_pad)


def _prep_whh(w_hh, h, h_pad):
    w = w_hh.T                                   # (h, 4h)
    if h_pad != h:
        w = jnp.pad(w, ((0, h_pad - h), (0, 0)))
    return _pad_gate_cols(w, h, h_pad)


# --------------------------------------------------------------------------
# Fused bidirectional LSTM layer kernel.
#   grid = (S_pad // t_chunk,)   -- strictly sequential ("arbitrary")
#   Inputs (refs):
#     parts fwd view  x n_parts  : (t_chunk, B, D_p) bf16, chunk c
#     parts bwd view  x n_parts  : same arrays, chunk (n_chunks-1-c)
#     wih_f, wih_b               : (D_tot, 4H) bf16
#     whh_f, whh_b               : (H, 4H)     bf16
#     bias                       : (2, 4H)     f32   (b_ih + b_hh per dir)
#   Outputs:
#     out_f : (t_chunk, B, H) bf16, chunk c
#     out_b : (t_chunk, B, H) bf16, chunk (n_chunks-1-c), stored time-reversed
#   Scratch:
#     gin_f, gin_b : (t_chunk, B, 4H) f32   staged input projection
#     h_scr, c_scr : (2, B, H) f32          state carried across chunks
# --------------------------------------------------------------------------
def _make_layer_kernel(n_parts, n_chunks, t_chunk, s_real):
    needs_mask = (n_chunks * t_chunk != s_real)

    def kernel(*refs):
        parts_f = refs[0:n_parts]
        parts_b = refs[n_parts:2 * n_parts]
        wih_f_ref = refs[2 * n_parts + 0]
        wih_b_ref = refs[2 * n_parts + 1]
        whh_f_ref = refs[2 * n_parts + 2]
        whh_b_ref = refs[2 * n_parts + 3]
        bias_ref = refs[2 * n_parts + 4]
        out_f_ref = refs[2 * n_parts + 5]
        out_b_ref = refs[2 * n_parts + 6]
        gin_f_scr = refs[2 * n_parts + 7]
        gin_b_scr = refs[2 * n_parts + 8]
        h_scr = refs[2 * n_parts + 9]
        c_scr = refs[2 * n_parts + 10]

        chunk = pl.program_id(0)
        T, B, _ = parts_f[0].shape
        H = whh_f_ref.shape[0]
        d_tot = wih_f_ref.shape[0]

        @pl.when(chunk == 0)
        def _init():
            h_scr[...] = jnp.zeros_like(h_scr)
            c_scr[...] = jnp.zeros_like(c_scr)

        def chunk_x(parts):
            if n_parts == 1:
                x = parts[0][...]
            else:  # feature parts are lane-aligned (multiples of 128) -> cheap concat
                x = jnp.concatenate([p[...] for p in parts], axis=-1)
            return x.reshape(T * B, d_tot)

        bias_f = bias_ref[0:1, :]                          # (1, 4H) f32
        bias_b = bias_ref[1:2, :]

        # Hoisted input projection: one chunk-wide MXU matmul per direction,
        # staged straight into VMEM scratch (not vregs).
        gin_f_scr[...] = (jnp.dot(chunk_x(parts_f), wih_f_ref[...],
                                  preferred_element_type=jnp.float32)
                          .reshape(T, B, 4 * H) + bias_f)
        gin_b_scr[...] = (jnp.dot(chunk_x(parts_b), wih_b_ref[...],
                                  preferred_element_type=jnp.float32)
                          .reshape(T, B, 4 * H) + bias_b)

        whh_f = whh_f_ref[...]                             # (H, 4H) bf16
        whh_b = whh_b_ref[...]
        rev_chunk = n_chunks - 1 - chunk

        def lstm_cell(g, c):
            # PyTorch gate order: input, forget, cell (g), output; lane-aligned H.
            i_g = jax.nn.sigmoid(g[:, 0 * H:1 * H])
            f_g = jax.nn.sigmoid(g[:, 1 * H:2 * H])
            g_g = jnp.tanh(g[:, 2 * H:3 * H])
            o_g = jax.nn.sigmoid(g[:, 3 * H:4 * H])
            c_new = f_g * c + i_g * g_g
            return o_g * jnp.tanh(c_new), c_new

        def step(s, carry):
            h_f, c_f, h_b, c_b = carry
            g_f = gin_f_scr[s] + jnp.dot(h_f.astype(jnp.bfloat16), whh_f,
                                         preferred_element_type=jnp.float32)
            g_b = gin_b_scr[T - 1 - s] + jnp.dot(h_b.astype(jnp.bfloat16), whh_b,
                                                 preferred_element_type=jnp.float32)
            h_f_n, c_f_n = lstm_cell(g_f, c_f)
            h_b_n, c_b_n = lstm_cell(g_b, c_b)
            if needs_mask:
                # Backward direction meets the zero-padded tail first; hold its
                # state until it reaches real timesteps.
                is_pad = (rev_chunk * T + (T - 1 - s)) >= s_real
                h_b_n = jnp.where(is_pad, h_b, h_b_n)
                c_b_n = jnp.where(is_pad, c_b, c_b_n)
            # Per-step lane-dense stores; backward half stored back in time order.
            out_f_ref[s] = h_f_n.astype(out_f_ref.dtype)
            out_b_ref[T - 1 - s] = h_b_n.astype(out_b_ref.dtype)
            return h_f_n, c_f_n, h_b_n, c_b_n

        carry = (h_scr[0], c_scr[0], h_scr[1], c_scr[1])
        h_f, c_f, h_b, c_b = jax.lax.fori_loop(0, T, step, carry, unroll=True)
        h_scr[0] = h_f
        c_scr[0] = c_f
        h_scr[1] = h_b
        c_scr[1] = c_b

    return kernel


def bilstm_layer(parts, wih_f, wih_b, whh_f, whh_b, bias, *, t_chunk, s_real):
    """parts: list of (S_pad, B_pad, D_p) bf16. Returns (out_f, out_b), each
    (S_pad, B_pad, H_pad) bf16 in forward time order."""
    S_pad, B_pad, _ = parts[0].shape
    n_parts = len(parts)
    H_pad, H4 = whh_f.shape
    d_tot = wih_f.shape[0]
    n_chunks = S_pad // t_chunk

    x_specs_f = [pl.BlockSpec((t_chunk, B_pad, p.shape[-1]), lambda c: (c, 0, 0))
                 for p in parts]
    x_specs_b = [pl.BlockSpec((t_chunk, B_pad, p.shape[-1]),
                              lambda c: (n_chunks - 1 - c, 0, 0))
                 for p in parts]
    w_specs = [pl.BlockSpec((d_tot, H4), lambda c: (0, 0)),
               pl.BlockSpec((d_tot, H4), lambda c: (0, 0)),
               pl.BlockSpec((H_pad, H4), lambda c: (0, 0)),
               pl.BlockSpec((H_pad, H4), lambda c: (0, 0)),
               pl.BlockSpec((2, H4), lambda c: (0, 0))]
    out_specs = [pl.BlockSpec((t_chunk, B_pad, H_pad), lambda c: (c, 0, 0)),
                 pl.BlockSpec((t_chunk, B_pad, H_pad),
                              lambda c: (n_chunks - 1 - c, 0, 0))]

    kernel = _make_layer_kernel(n_parts, n_chunks, t_chunk, s_real)
    return pl.pallas_call(
        kernel,
        out_shape=(jax.ShapeDtypeStruct((S_pad, B_pad, H_pad), jnp.bfloat16),
                   jax.ShapeDtypeStruct((S_pad, B_pad, H_pad), jnp.bfloat16)),
        grid_spec=pltpu.PrefetchScalarGridSpec(
            num_scalar_prefetch=0,
            grid=(n_chunks,),
            in_specs=x_specs_f + x_specs_b + w_specs,
            out_specs=out_specs,
            scratch_shapes=[pltpu.VMEM((t_chunk, B_pad, H4), jnp.float32),  # gin fwd
                            pltpu.VMEM((t_chunk, B_pad, H4), jnp.float32),  # gin bwd
                            pltpu.VMEM((2, B_pad, H_pad), jnp.float32),     # h state
                            pltpu.VMEM((2, B_pad, H_pad), jnp.float32)],    # c state
        ),
        compiler_params=pltpu.CompilerParams(
            dimension_semantics=("arbitrary",),            # sequential h/c carry
            vmem_limit_bytes=64 * 1024 * 1024),
    )(*parts, *parts, wih_f, wih_b, whh_f, whh_b, bias)


# --------------------------------------------------------------------------
# Final linear: consumes the two direction parts (no concat), lane-dense out.
# --------------------------------------------------------------------------
def _linear_kernel(xf_ref, xb_ref, wf_ref, wb_ref, b_ref, o_ref):
    acc = jnp.dot(xf_ref[...], wf_ref[...], preferred_element_type=jnp.float32)
    acc = acc + jnp.dot(xb_ref[...], wb_ref[...], preferred_element_type=jnp.float32)
    o_ref[...] = acc + b_ref[...]


def linear(xf, xb, wf, wb, b, row_tile=512):
    """xf/xb: (N, H_pad) bf16; wf/wb: (H_pad, O_pad) bf16; b: (1, O_pad) f32."""
    N, Hp = xf.shape
    Op = wf.shape[1]
    rt = min(row_tile, _round_up(N, 8))
    n_pad = _round_up(N, rt)
    if n_pad != N:
        xf = jnp.pad(xf, ((0, n_pad - N), (0, 0)))
        xb = jnp.pad(xb, ((0, n_pad - N), (0, 0)))
    out = pl.pallas_call(
        _linear_kernel,
        out_shape=jax.ShapeDtypeStruct((n_pad, Op), jnp.float32),
        grid_spec=pltpu.PrefetchScalarGridSpec(
            num_scalar_prefetch=0,
            grid=(n_pad // rt,),
            in_specs=[pl.BlockSpec((rt, Hp), lambda i: (i, 0)),
                      pl.BlockSpec((rt, Hp), lambda i: (i, 0)),
                      pl.BlockSpec((Hp, Op), lambda i: (0, 0)),
                      pl.BlockSpec((Hp, Op), lambda i: (0, 0)),
                      pl.BlockSpec((1, Op), lambda i: (0, 0))],
            out_specs=pl.BlockSpec((rt, Op), lambda i: (i, 0)),
        ),
        compiler_params=pltpu.CompilerParams(dimension_semantics=("parallel",)),
    )(xf, xb, wf, wb, b)
    return out[:N]


# --------------------------------------------------------------------------
# Parameter init (deterministic, PyTorch-shaped f32 master weights).
# --------------------------------------------------------------------------
def init_params(key, vocab_size, embedding_dim, hidden_dim, output_dim):
    keys = iter(jax.random.split(key, 64))
    H = hidden_dim

    def unif(k, shape, bound):
        return jax.random.uniform(k, shape, jnp.float32, -bound, bound)

    params = {
        "embedding": jax.random.normal(next(keys), (vocab_size, embedding_dim),
                                       jnp.float32),
        "lstm": [],
    }
    bound = 1.0 / (H ** 0.5)
    for layer in range(2):
        in_dim = embedding_dim if layer == 0 else 2 * H
        layer_params = {}
        for d in ("f", "b"):  # forward / backward directions
            layer_params[f"w_ih_{d}"] = unif(next(keys), (4 * H, in_dim), bound)
            layer_params[f"w_hh_{d}"] = unif(next(keys), (4 * H, H), bound)
            layer_params[f"b_ih_{d}"] = unif(next(keys), (4 * H,), bound)
            layer_params[f"b_hh_{d}"] = unif(next(keys), (4 * H,), bound)
        params["lstm"].append(layer_params)

    fc_bound = 1.0 / ((2 * H) ** 0.5)
    params["fc_w"] = unif(next(keys), (2 * H, output_dim), fc_bound)
    params["fc_b"] = unif(next(keys), (output_dim,), fc_bound)
    return params


# --------------------------------------------------------------------------
# Full forward pass (matches BiLSTM.forward, eval-mode dropout).
# --------------------------------------------------------------------------
def bilstm_forward(params, text, max_chunk=32):
    S, B = text.shape
    E = params["embedding"].shape[1]
    H = params["lstm"][0]["w_hh_f"].shape[1]
    H_pad = _round_up(H, 128)          # lane-aligned gates/hidden (zero-padded)
    B_pad = _round_up(B, 16)           # bf16 sublane-dense batch
    t_chunk = min(max_chunk, S)
    S_pad = _round_up(S, t_chunk)      # no t_chunk=1 cliff for awkward S

    # Embedding lookup: gather directly in bf16 with time/batch padding folded in.
    emb = params["embedding"].astype(jnp.bfloat16)
    text_p = jnp.pad(text, ((0, S_pad - S), (0, B_pad - B)))
    x = jnp.take(emb, text_p, axis=0)                      # (S_pad, B_pad, E) bf16
    parts = [x]

    for li, p in enumerate(params["lstm"]):
        if li == 0:
            d_real, d_pad = [E], [E]
        else:
            d_real, d_pad = [H, H], [H_pad, H_pad]
        wih_f = _prep_wih(p["w_ih_f"], d_real, d_pad, H, H_pad).astype(jnp.bfloat16)
        wih_b = _prep_wih(p["w_ih_b"], d_real, d_pad, H, H_pad).astype(jnp.bfloat16)
        whh_f = _prep_whh(p["w_hh_f"], H, H_pad).astype(jnp.bfloat16)
        whh_b = _prep_whh(p["w_hh_b"], H, H_pad).astype(jnp.bfloat16)
        bias = jnp.stack([_pad_gate_cols(p["b_ih_f"] + p["b_hh_f"], H, H_pad),
                          _pad_gate_cols(p["b_ih_b"] + p["b_hh_b"], H, H_pad)]
                         ).astype(jnp.float32)             # (2, 4*H_pad)

        out_f, out_b = bilstm_layer(parts, wih_f, wih_b, whh_f, whh_b, bias,
                                    t_chunk=t_chunk, s_real=S)
        parts = [out_f, out_b]
        # TODO(synk): inter-layer dropout (p=0.5) omitted — eval/inference semantics.

    # Final linear (split over the two direction parts; lane-dense padded output).
    O = params["fc_b"].shape[0]
    O_pad = _round_up(O, 128)
    fc_wf = jnp.zeros((H_pad, O_pad), jnp.bfloat16).at[:H, :O].set(
        params["fc_w"][:H].astype(jnp.bfloat16))
    fc_wb = jnp.zeros((H_pad, O_pad), jnp.bfloat16).at[:H, :O].set(
        params["fc_w"][H:2 * H].astype(jnp.bfloat16))
    fc_b = jnp.zeros((1, O_pad), jnp.float32).at[0, :O].set(params["fc_b"])

    N = S_pad * B_pad
    y = linear(parts[0].reshape(N, H_pad), parts[1].reshape(N, H_pad),
               fc_wf, fc_wb, fc_b)                          # (N, O_pad) f32
    return y.reshape(S_pad, B_pad, O_pad)[:S, :B, :O]


if __name__ == "__main__":
    vocab_size, embedding_dim, hidden_dim, output_dim = 50, 32, 32, 8
    seq_len, batch = 8, 2

    key = jax.random.PRNGKey(0)
    k_params, k_text = jax.random.split(key)

    params = init_params(k_params, vocab_size, embedding_dim,
                         hidden_dim, output_dim)
    text = jax.random.randint(k_text, (seq_len, batch), 0, vocab_size,
                              dtype=jnp.int32)

    out = bilstm_forward(params, text)
    out = jax.block_until_ready(out)
    assert out.shape == (seq_len, batch, output_dim)
    assert out.dtype == jnp.float32
    print("KERNEL_OK")
</pallas_src>

<mosaic_0001>
module attributes {stable_mosaic.version = 11 : i64} {
  func.func @kernel(%arg0: i32, %arg1: memref<8x16x32xbf16, #tpu.memory_space<vmem>>, %arg2: memref<8x16x32xbf16, #tpu.memory_space<vmem>>, %arg3: memref<32x512xbf16, #tpu.memory_space<vmem>>, %arg4: memref<32x512xbf16, #tpu.memory_space<vmem>>, %arg5: memref<128x512xbf16, #tpu.memory_space<vmem>>, %arg6: memref<128x512xbf16, #tpu.memory_space<vmem>>, %arg7: memref<2x512xf32, #tpu.memory_space<vmem>>, %arg8: memref<8x16x128xbf16, #tpu.memory_space<vmem>>, %arg9: memref<8x16x128xbf16, #tpu.memory_space<vmem>>, %arg10: memref<8x16x512xf32, #tpu.memory_space<vmem>>, %arg11: memref<8x16x512xf32, #tpu.memory_space<vmem>>, %arg12: memref<2x16x128xf32, #tpu.memory_space<vmem>>, %arg13: memref<2x16x128xf32, #tpu.memory_space<vmem>>) attributes {dimension_semantics = [#tpu.dimension_semantics<arbitrary>], iteration_bounds = array<i64: 1>, scalar_prefetch = 0 : i64, scratch_operands = 4 : i64, tpu.core_type = #tpu.core_type<tc>, window_params = [{transform_indices = @transform_0, window_bounds = array<i64: 8, 16, 32>}, {transform_indices = @transform_1, window_bounds = array<i64: 8, 16, 32>}, {pipeline_mode = #tpu.pipeline_mode<synchronous>, transform_indices = @transform_2, window_bounds = array<i64: 32, 512>}, {pipeline_mode = #tpu.pipeline_mode<synchronous>, transform_indices = @transform_3, window_bounds = array<i64: 32, 512>}, {pipeline_mode = #tpu.pipeline_mode<synchronous>, transform_indices = @transform_4, window_bounds = array<i64: 128, 512>}, {pipeline_mode = #tpu.pipeline_mode<synchronous>, transform_indices = @transform_5, window_bounds = array<i64: 128, 512>}, {pipeline_mode = #tpu.pipeline_mode<synchronous>, transform_indices = @transform_6, window_bounds = array<i64: 2, 512>}, {transform_indices = @transform_7, window_bounds = array<i64: 8, 16, 128>}, {transform_indices = @transform_8, window_bounds = array<i64: 8, 16, 128>}]} {
    %c0_i32 = arith.constant 0 : i32
    %0 = arith.cmpi eq, %arg0, %c0_i32 : i32
    %1 = arith.extui %0 : i1 to i32
    %c0_i32_0 = arith.constant 0 : i32
    %2 = arith.cmpi ne, %1, %c0_i32_0 : i32
    scf.if %2 {
      %cst_193 = arith.constant 0.000000e+00 : f32
      %637 = vector.broadcast %cst_193 : f32 to vector<2x16x128xf32>
      %c0_194 = arith.constant 0 : index
      %c0_195 = arith.constant 0 : index
      %c0_196 = arith.constant 0 : index
      %638 = vector.load %arg12[%c0_194, %c0_195, %c0_196] : memref<2x16x128xf32, #tpu.memory_space<vmem>>, vector<2x16x128xf32>
      tpu.vector_store %arg12[%c0_194, %c0_195, %c0_196], %637 {strides = array<i32>} : memref<2x16x128xf32, #tpu.memory_space<vmem>>, vector<2x16x128xf32>,
      %cst_197 = arith.constant 0.000000e+00 : f32
      %639 = vector.broadcast %cst_197 : f32 to vector<2x16x128xf32>
      %c0_198 = arith.constant 0 : index
      %c0_199 = arith.constant 0 : index
      %c0_200 = arith.constant 0 : index
      %640 = vector.load %arg13[%c0_198, %c0_199, %c0_200] : memref<2x16x128xf32, #tpu.memory_space<vmem>>, vector<2x16x128xf32>
      tpu.vector_store %arg13[%c0_198, %c0_199, %c0_200], %639 {strides = array<i32>} : memref<2x16x128xf32, #tpu.memory_space<vmem>>, vector<2x16x128xf32>,
    } else {
    }
    %c0 = arith.constant 0 : index
    %c0_1 = arith.constant 0 : index
    %3 = vector.load %arg7[%c0, %c0_1] : memref<2x512xf32, #tpu.memory_space<vmem>>, vector<1x512xf32>
    %c1 = arith.constant 1 : index
    %c0_2 = arith.constant 0 : index
    %4 = vector.load %arg7[%c1, %c0_2] : memref<2x512xf32, #tpu.memory_space<vmem>>, vector<1x512xf32>
    %c0_3 = arith.constant 0 : index
    %c0_4 = arith.constant 0 : index
    %c0_5 = arith.constant 0 : index
    %5 = vector.load %arg1[%c0_3, %c0_4, %c0_5] : memref<8x16x32xbf16, #tpu.memory_space<vmem>>, vector<8x16x32xbf16>
    %6 = vector.shape_cast %5 : vector<8x16x32xbf16> to vector<128x32xbf16>
    %c0_6 = arith.constant 0 : index
    %c0_7 = arith.constant 0 : index
    %7 = vector.load %arg3[%c0_6, %c0_7] : memref<32x512xbf16, #tpu.memory_space<vmem>>, vector<32x512xbf16>
    %cst = arith.constant dense<0.000000e+00> : vector<128x512xf32>
    %8 = tpu.matmul %6, %7, %cst {dimension_numbers = #tpu.dot_dimension_numbers<[1], [0], [0], [1], [0, 0, 1, 1], [], []>} : vector<128x32xbf16>, vector<32x512xbf16>, vector<128x512xf32> -> vector<128x512xf32>
    %9 = vector.shape_cast %8 : vector<128x512xf32> to vector<8x16x512xf32>
    %10 = vector.shape_cast %3 : vector<1x512xf32> to vector<1x1x512xf32>
    %11 = vector.broadcast %10 : vector<1x1x512xf32> to vector<8x16x512xf32>
    %12 = arith.addf %9, %11 : vector<8x16x512xf32>
    %c0_8 = arith.constant 0 : index
    %c0_9 = arith.constant 0 : index
    %c0_10 = arith.constant 0 : index
    %13 = vector.load %arg10[%c0_8, %c0_9, %c0_10] : memref<8x16x512xf32, #tpu.memory_space<vmem>>, vector<8x16x512xf32>
    tpu.vector_store %arg10[%c0_8, %c0_9, %c0_10], %12 {strides = array<i32>} : memref<8x16x512xf32, #tpu.memory_space<vmem>>, vector<8x16x512xf32>,
    %c0_11 = arith.constant 0 : index
    %c0_12 = arith.constant 0 : index
    %c0_13 = arith.constant 0 : index
    %14 = vector.load %arg2[%c0_11, %c0_12, %c0_13] : memref<8x16x32xbf16, #tpu.memory_space<vmem>>, vector<8x16x32xbf16>
    %15 = vector.shape_cast %14 : vector<8x16x32xbf16> to vector<128x32xbf16>
    %c0_14 = arith.constant 0 : index
    %c0_15 = arith.constant 0 : index
    %16 = vector.load %arg4[%c0_14, %c0_15] : memref<32x512xbf16, #tpu.memory_space<vmem>>, vector<32x512xbf16>
    %cst_16 = arith.constant dense<0.000000e+00> : vector<128x512xf32>
    %17 = tpu.matmul %15, %16, %cst_16 {dimension_numbers = #tpu.dot_dimension_numbers<[1], [0], [0], [1], [0, 0, 1, 1], [], []>} : vector<128x32xbf16>, vector<32x512xbf16>, vector<128x512xf32> -> vector<128x512xf32>
    %18 = vector.shape_cast %17 : vector<128x512xf32> to vector<8x16x512xf32>
    %19 = vector.shape_cast %4 : vector<1x512xf32> to vector<1x1x512xf32>
    %20 = vector.broadcast %19 : vector<1x1x512xf32> to vector<8x16x512xf32>
    %21 = arith.addf %18, %20 : vector<8x16x512xf32>
    %c0_17 = arith.constant 0 : index
    %c0_18 = arith.constant 0 : index
    %c0_19 = arith.constant 0 : index
    %22 = vector.load %arg11[%c0_17, %c0_18, %c0_19] : memref<8x16x512xf32, #tpu.memory_space<vmem>>, vector<8x16x512xf32>
    tpu.vector_store %arg11[%c0_17, %c0_18, %c0_19], %21 {strides = array<i32>} : memref<8x16x512xf32, #tpu.memory_space<vmem>>, vector<8x16x512xf32>,
    %c0_20 = arith.constant 0 : index
    %c0_21 = arith.constant 0 : index
    %23 = vector.load %arg5[%c0_20, %c0_21] : memref<128x512xbf16, #tpu.memory_space<vmem>>, vector<128x512xbf16>
    %c0_22 = arith.constant 0 : index
    %c0_23 = arith.constant 0 : index
    %24 = vector.load %arg6[%c0_22, %c0_23] : memref<128x512xbf16, #tpu.memory_space<vmem>>, vector<128x512xbf16>
    %c0_24 = arith.constant 0 : index
    %c0_25 = arith.constant 0 : index
    %c0_26 = arith.constant 0 : index
    %25 = vector.load %arg12[%c0_24, %c0_25, %c0_26] : memref<2x16x128xf32, #tpu.memory_space<vmem>>, vector<1x16x128xf32>
    %26 = vector.shape_cast %25 : vector<1x16x128xf32> to vector<16x128xf32>
    %c0_27 = arith.constant 0 : index
    %c0_28 = arith.constant 0 : index
    %c0_29 = arith.constant 0 : index
    %27 = vector.load %arg13[%c0_27, %c0_28, %c0_29] : memref<2x16x128xf32, #tpu.memory_space<vmem>>, vector<1x16x128xf32>
    %28 = vector.shape_cast %27 : vector<1x16x128xf32> to vector<16x128xf32>
    %c1_30 = arith.constant 1 : index
    %c0_31 = arith.constant 0 : index
    %c0_32 = arith.constant 0 : index
    %29 = vector.load %arg12[%c1_30, %c0_31, %c0_32] : memref<2x16x128xf32, #tpu.memory_space<vmem>>, vector<1x16x128xf32>
    %30 = vector.shape_cast %29 : vector<1x16x128xf32> to vector<16x128xf32>
    %c1_33 = arith.constant 1 : index
    %c0_34 = arith.constant 0 : index
    %c0_35 = arith.constant 0 : index
    %31 = vector.load %arg13[%c1_33, %c0_34, %c0_35] : memref<2x16x128xf32, #tpu.memory_space<vmem>>, vector<1x16x128xf32>
    %32 = vector.shape_cast %31 : vector<1x16x128xf32> to vector<16x128xf32>
    %c0_i32_36 = arith.constant 0 : i32
    %33 = arith.index_cast %c0_i32_36 : i32 to index
    %c0_37 = arith.constant 0 : index
    %c0_38 = arith.constant 0 : index
    %34 = vector.load %arg10[%33, %c0_37, %c0_38] : memref<8x16x512xf32, #tpu.memory_space<vmem>>, vector<1x16x512xf32>
    %35 = vector.shape_cast %34 : vector<1x16x512xf32> to vector<16x512xf32>
    %36 = arith.truncf %26 : vector<16x128xf32> to vector<16x128xbf16>
    %cst_39 = arith.constant dense<0.000000e+00> : vector<16x512xf32>
    %37 = tpu.matmul %36, %23, %cst_39 {dimension_numbers = #tpu.dot_dimension_numbers<[1], [0], [0], [1], [0, 0, 1, 1], [], []>} : vector<16x128xbf16>, vector<128x512xbf16>, vector<16x512xf32> -> vector<16x512xf32>
    %38 = arith.addf %35, %37 : vector<16x512xf32>
    %c7_i32 = arith.constant 7 : i32
    %39 = arith.subi %c7_i32, %c0_i32_36 : i32
    %40 = arith.index_cast %39 : i32 to index
    %c0_40 = arith.constant 0 : index
    %c0_41 = arith.constant 0 : index
    %41 = vector.load %arg11[%40, %c0_40, %c0_41] : memref<8x16x512xf32, #tpu.memory_space<vmem>>, vector<1x16x512xf32>
    %42 = vector.shape_cast %41 : vector<1x16x512xf32> to vector<16x512xf32>
    %43 = arith.truncf %30 : vector<16x128xf32> to vector<16x128xbf16>
    %cst_42 = arith.constant dense<0.000000e+00> : vector<16x512xf32>
    %44 = tpu.matmul %43, %24, %cst_42 {dimension_numbers = #tpu.dot_dimension_numbers<[1], [0], [0], [1], [0, 0, 1, 1], [], []>} : vector<16x128xbf16>, vector<128x512xbf16>, vector<16x512xf32> -> vector<16x512xf32>
    %45 = arith.addf %42, %44 : vector<16x512xf32>
    %46 = vector.extract_strided_slice %38 {offsets = [0, 0], sizes = [16, 128], strides = [1, 1]} : vector<16x512xf32> to vector<16x128xf32>
    %47 = arith.negf %46 : vector<16x128xf32>
    %48 = math.exp %47 : vector<16x128xf32>
    %cst_43 = arith.constant 1.000000e+00 : f32
    %49 = vector.broadcast %cst_43 : f32 to vector<16x128xf32>
    %50 = arith.addf %49, %48 : vector<16x128xf32>
    %51 = arith.divf %49, %50 : vector<16x128xf32>
    %52 = vector.extract_strided_slice %38 {offsets = [0, 128], sizes = [16, 128], strides = [1, 1]} : vector<16x512xf32> to vector<16x128xf32>
    %53 = arith.negf %52 : vector<16x128xf32>
    %54 = math.exp %53 : vector<16x128xf32>
    %cst_44 = arith.constant 1.000000e+00 : f32
    %55 = vector.broadcast %cst_44 : f32 to vector<16x128xf32>
    %56 = arith.addf %55, %54 : vector<16x128xf32>
    %57 = arith.divf %55, %56 : vector<16x128xf32>
    %58 = vector.extract_strided_slice %38 {offsets = [0, 256], sizes = [16, 128], strides = [1, 1]} : vector<16x512xf32> to vector<16x128xf32>
    %59 = math.tanh %58 : vector<16x128xf32>
    %60 = vector.extract_strided_slice %38 {offsets = [0, 384], sizes = [16, 128], strides = [1, 1]} : vector<16x512xf32> to vector<16x128xf32>
    %61 = arith.negf %60 : vector<16x128xf32>
    %62 = math.exp %61 : vector<16x128xf32>
    %cst_45 = arith.constant 1.000000e+00 : f32
    %63 = vector.broadcast %cst_45 : f32 to vector<16x128xf32>
    %64 = arith.addf %63, %62 : vector<16x128xf32>
    %65 = arith.divf %63, %64 : vector<16x128xf32>
    %66 = arith.mulf %57, %28 : vector<16x128xf32>
    %67 = arith.mulf %51, %59 : vector<16x128xf32>
    %68 = arith.addf %66, %67 : vector<16x128xf32>
    %69 = math.tanh %68 : vector<16x128xf32>
    %70 = arith.mulf %65, %69 : vector<16x128xf32>
    %71 = vector.extract_strided_slice %45 {offsets = [0, 0], sizes = [16, 128], strides = [1, 1]} : vector<16x512xf32> to vector<16x128xf32>
    %72 = arith.negf %71 : vector<16x128xf32>
    %73 = math.exp %72 : vector<16x128xf32>
    %cst_46 = arith.constant 1.000000e+00 : f32
    %74 = vector.broadcast %cst_46 : f32 to vector<16x128xf32>
    %75 = arith.addf %74, %73 : vector<16x128xf32>
    %76 = arith.divf %74, %75 : vector<16x128xf32>
    %77 = vector.extract_strided_slice %45 {offsets = [0, 128], sizes = [16, 128], strides = [1, 1]} : vector<16x512xf32> to vector<16x128xf32>
    %78 = arith.negf %77 : vector<16x128xf32>
    %79 = math.exp %78 : vector<16x128xf32>
    %cst_47 = arith.constant 1.000000e+00 : f32
    %80 = vector.broadcast %cst_47 : f32 to vector<16x128xf32>
    %81 = arith.addf %80, %79 : vector<16x128xf32>
    %82 = arith.divf %80, %81 : vector<16x128xf32>
    %83 = vector.extract_strided_slice %45 {offsets = [0, 256], sizes = [16, 128], strides = [1, 1]} : vector<16x512xf32> to vector<16x128xf32>
    %84 = math.tanh %83 : vector<16x128xf32>
    %85 = vector.extract_strided_slice %45 {offsets = [0, 384], sizes = [16, 128], strides = [1, 1]} : vector<16x512xf32> to vector<16x128xf32>
    %86 = arith.negf %85 : vector<16x128xf32>
    %87 = math.exp %86 : vector<16x128xf32>
    %cst_48 = arith.constant 1.000000e+00 : f32
    %88 = vector.broadcast %cst_48 : f32 to vector<16x128xf32>
    %89 = arith.addf %88, %87 : vector<16x128xf32>
    %90 = arith.divf %88, %89 : vector<16x128xf32>
    %91 = arith.mulf %82, %32 : vector<16x128xf32>
    %92 = arith.mulf %76, %84 : vector<16x128xf32>
    %93 = arith.addf %91, %92 : vector<16x128xf32>
    %94 = math.tanh %93 : vector<16x128xf32>
    %95 = arith.mulf %90, %94 : vector<16x128xf32>
    %96 = arith.truncf %70 : vector<16x128xf32> to vector<16x128xbf16>
    %97 = arith.index_cast %c0_i32_36 : i32 to index
    %c0_49 = arith.constant 0 : index
    %c0_50 = arith.constant 0 : index
    %98 = vector.load %arg8[%97, %c0_49, %c0_50] : memref<8x16x128xbf16, #tpu.memory_space<vmem>>, vector<1x16x128xbf16>
    %99 = vector.shape_cast %98 : vector<1x16x128xbf16> to vector<16x128xbf16>
    %100 = vector.shape_cast %96 : vector<16x128xbf16> to vector<1x16x128xbf16>
    tpu.vector_store %arg8[%97, %c0_49, %c0_50], %100 {strides = array<i32>} : memref<8x16x128xbf16, #tpu.memory_space<vmem>>, vector<1x16x128xbf16>,
    %101 = arith.truncf %95 : vector<16x128xf32> to vector<16x128xbf16>
    %c7_i32_51 = arith.constant 7 : i32
    %102 = arith.subi %c7_i32_51, %c0_i32_36 : i32
    %103 = arith.index_cast %102 : i32 to index
    %c0_52 = arith.constant 0 : index
    %c0_53 = arith.constant 0 : index
    %104 = vector.load %arg9[%103, %c0_52, %c0_53] : memref<8x16x128xbf16, #tpu.memory_space<vmem>>, vector<1x16x128xbf16>
    %105 = vector.shape_cast %104 : vector<1x16x128xbf16> to vector<16x128xbf16>
    %106 = vector.shape_cast %101 : vector<16x128xbf16> to vector<1x16x128xbf16>
    tpu.vector_store %arg9[%103, %c0_52, %c0_53], %106 {strides = array<i32>} : memref<8x16x128xbf16, #tpu.memory_space<vmem>>, vector<1x16x128xbf16>,
    %c1_i32 = arith.constant 1 : i32
    %107 = arith.index_cast %c1_i32 : i32 to index
    %c0_54 = arith.constant 0 : index
    %c0_55 = arith.constant 0 : index
    %108 = vector.load %arg10[%107, %c0_54, %c0_55] : memref<8x16x512xf32, #tpu.memory_space<vmem>>, vector<1x16x512xf32>
    %109 = vector.shape_cast %108 : vector<1x16x512xf32> to vector<16x512xf32>
    %110 = arith.truncf %70 : vector<16x128xf32> to vector<16x128xbf16>
    %cst_56 = arith.constant dense<0.000000e+00> : vector<16x512xf32>
    %111 = tpu.matmul %110, %23, %cst_56 {dimension_numbers = #tpu.dot_dimension_numbers<[1], [0], [0], [1], [0, 0, 1, 1], [], []>} : vector<16x128xbf16>, vector<128x512xbf16>, vector<16x512xf32> -> vector<16x512xf32>
    %112 = arith.addf %109, %111 : vector<16x512xf32>
    %c7_i32_57 = arith.constant 7 : i32
    %113 = arith.subi %c7_i32_57, %c1_i32 : i32
    %114 = arith.index_cast %113 : i32 to index
    %c0_58 = arith.constant 0 : index
    %c0_59 = arith.constant 0 : index
    %115 = vector.load %arg11[%114, %c0_58, %c0_59] : memref<8x16x512xf32, #tpu.memory_space<vmem>>, vector<1x16x512xf32>
    %116 = vector.shape_cast %115 : vector<1x16x512xf32> to vector<16x512xf32>
    %117 = arith.truncf %95 : vector<16x128xf32> to vector<16x128xbf16>
    %cst_60 = arith.constant dense<0.000000e+00> : vector<16x512xf32>
    %118 = tpu.matmul %117, %24, %cst_60 {dimension_numbers = #tpu.dot_dimension_numbers<[1], [0], [0], [1], [0, 0, 1, 1], [], []>} : vector<16x128xbf16>, vector<128x512xbf16>, vector<16x512xf32> -> vector<16x512xf32>
    %119 = arith.addf %116, %118 : vector<16x512xf32>
    %120 = vector.extract_strided_slice %112 {offsets = [0, 0], sizes = [16, 128], strides = [1, 1]} : vector<16x512xf32> to vector<16x128xf32>
    %121 = arith.negf %120 : vector<16x128xf32>
    %122 = math.exp %121 : vector<16x128xf32>
    %cst_61 = arith.constant 1.000000e+00 : f32
    %123 = vector.broadcast %cst_61 : f32 to vector<16x128xf32>
    %124 = arith.addf %123, %122 : vector<16x128xf32>
    %125 = arith.divf %123, %124 : vector<16x128xf32>
    %126 = vector.extract_strided_slice %112 {offsets = [0, 128], sizes = [16, 128], strides = [1, 1]} : vector<16x512xf32> to vector<16x128xf32>
    %127 = arith.negf %126 : vector<16x128xf32>
    %128 = math.exp %127 : vector<16x128xf32>
    %cst_62 = arith.constant 1.000000e+00 : f32
    %129 = vector.broadcast %cst_62 : f32 to vector<16x128xf32>
    %130 = arith.addf %129, %128 : vector<16x128xf32>
    %131 = arith.divf %129, %130 : vector<16x128xf32>
    %132 = vector.extract_strided_slice %112 {offsets = [0, 256], sizes = [16, 128], strides = [1, 1]} : vector<16x512xf32> to vector<16x128xf32>
    %133 = math.tanh %132 : vector<16x128xf32>
    %134 = vector.extract_strided_slice %112 {offsets = [0, 384], sizes = [16, 128], strides = [1, 1]} : vector<16x512xf32> to vector<16x128xf32>
    %135 = arith.negf %134 : vector<16x128xf32>
    %136 = math.exp %135 : vector<16x128xf32>
    %cst_63 = arith.constant 1.000000e+00 : f32
    %137 = vector.broadcast %cst_63 : f32 to vector<16x128xf32>
    %138 = arith.addf %137, %136 : vector<16x128xf32>
    %139 = arith.divf %137, %138 : vector<16x128xf32>
    %140 = arith.mulf %131, %68 : vector<16x128xf32>
    %141 = arith.mulf %125, %133 : vector<16x128xf32>
    %142 = arith.addf %140, %141 : vector<16x128xf32>
    %143 = math.tanh %142 : vector<16x128xf32>
    %144 = arith.mulf %139, %143 : vector<16x128xf32>
    %145 = vector.extract_strided_slice %119 {offsets = [0, 0], sizes = [16, 128], strides = [1, 1]} : vector<16x512xf32> to vector<16x128xf32>
    %146 = arith.negf %145 : vector<16x128xf32>
    %147 = math.exp %146 : vector<16x128xf32>
    %cst_64 = arith.constant 1.000000e+00 : f32
    %148 = vector.broadcast %cst_64 : f32 to vector<16x128xf32>
    %149 = arith.addf %148, %147 : vector<16x128xf32>
    %150 = arith.divf %148, %149 : vector<16x128xf32>
    %151 = vector.extract_strided_slice %119 {offsets = [0, 128], sizes = [16, 128], strides = [1, 1]} : vector<16x512xf32> to vector<16x128xf32>
    %152 = arith.negf %151 : vector<16x128xf32>
    %153 = math.exp %152 : vector<16x128xf32>
    %cst_65 = arith.constant 1.000000e+00 : f32
    %154 = vector.broadcast %cst_65 : f32 to vector<16x128xf32>
    %155 = arith.addf %154, %153 : vector<16x128xf32>
    %156 = arith.divf %154, %155 : vector<16x128xf32>
    %157 = vector.extract_strided_slice %119 {offsets = [0, 256], sizes = [16, 128], strides = [1, 1]} : vector<16x512xf32> to vector<16x128xf32>
    %158 = math.tanh %157 : vector<16x128xf32>
    %159 = vector.extract_strided_slice %119 {offsets = [0, 384], sizes = [16, 128], strides = [1, 1]} : vector<16x512xf32> to vector<16x128xf32>
    %160 = arith.negf %159 : vector<16x128xf32>
    %161 = math.exp %160 : vector<16x128xf32>
    %cst_66 = arith.constant 1.000000e+00 : f32
    %162 = vector.broadcast %cst_66 : f32 to vector<16x128xf32>
    %163 = arith.addf %162, %161 : vector<16x128xf32>
    %164 = arith.divf %162, %163 : vector<16x128xf32>
    %165 = arith.mulf %156, %93 : vector<16x128xf32>
    %166 = arith.mulf %150, %158 : vector<16x128xf32>
    %167 = arith.addf %165, %166 : vector<16x128xf32>
    %168 = math.tanh %167 : vector<16x128xf32>
    %169 = arith.mulf %164, %168 : vector<16x128xf32>
    %170 = arith.truncf %144 : vector<16x128xf32> to vector<16x128xbf16>
    %171 = arith.index_cast %c1_i32 : i32 to index
    %c0_67 = arith.constant 0 : index
    %c0_68 = arith.constant 0 : index
    %172 = vector.load %arg8[%171, %c0_67, %c0_68] : memref<8x16x128xbf16, #tpu.memory_space<vmem>>, vector<1x16x128xbf16>
    %173 = vector.shape_cast %172 : vector<1x16x128xbf16> to vector<16x128xbf16>
    %174 = vector.shape_cast %170 : vector<16x128xbf16> to vector<1x16x128xbf16>
    tpu.vector_store %arg8[%171, %c0_67, %c0_68], %174 {strides = array<i32>} : memref<8x16x128xbf16, #tpu.memory_space<vmem>>, vector<1x16x128xbf16>,
    %175 = arith.truncf %169 : vector<16x128xf32> to vector<16x128xbf16>
    %c7_i32_69 = arith.constant 7 : i32
    %176 = arith.subi %c7_i32_69, %c1_i32 : i32
    %177 = arith.index_cast %176 : i32 to index
    %c0_70 = arith.constant 0 : index
    %c0_71 = arith.constant 0 : index
    %178 = vector.load %arg9[%177, %c0_70, %c0_71] : memref<8x16x128xbf16, #tpu.memory_space<vmem>>, vector<1x16x128xbf16>
    %179 = vector.shape_cast %178 : vector<1x16x128xbf16> to vector<16x128xbf16>
    %180 = vector.shape_cast %175 : vector<16x128xbf16> to vector<1x16x128xbf16>
    tpu.vector_store %arg9[%177, %c0_70, %c0_71], %180 {strides = array<i32>} : memref<8x16x128xbf16, #tpu.memory_space<vmem>>, vector<1x16x128xbf16>,
    %c2_i32 = arith.constant 2 : i32
    %181 = arith.index_cast %c2_i32 : i32 to index
    %c0_72 = arith.constant 0 : index
    %c0_73 = arith.constant 0 : index
    %182 = vector.load %arg10[%181, %c0_72, %c0_73] : memref<8x16x512xf32, #tpu.memory_space<vmem>>, vector<1x16x512xf32>
    %183 = vector.shape_cast %182 : vector<1x16x512xf32> to vector<16x512xf32>
    %184 = arith.truncf %144 : vector<16x128xf32> to vector<16x128xbf16>
    %cst_74 = arith.constant dense<0.000000e+00> : vector<16x512xf32>
    %185 = tpu.matmul %184, %23, %cst_74 {dimension_numbers = #tpu.dot_dimension_numbers<[1], [0], [0], [1], [0, 0, 1, 1], [], []>} : vector<16x128xbf16>, vector<128x512xbf16>, vector<16x512xf32> -> vector<16x512xf32>
    %186 = arith.addf %183, %185 : vector<16x512xf32>
    %c7_i32_75 = arith.constant 7 : i32
    %187 = arith.subi %c7_i32_75, %c2_i32 : i32
    %188 = arith.index_cast %187 : i32 to index
    %c0_76 = arith.constant 0 : index
    %c0_77 = arith.constant 0 : index
    %189 = vector.load %arg11[%188, %c0_76, %c0_77] : memref<8x16x512xf32, #tpu.memory_space<vmem>>, vector<1x16x512xf32>
    %190 = vector.shape_cast %189 : vector<1x16x512xf32> to vector<16x512xf32>
    %191 = arith.truncf %169 : vector<16x128xf32> to vector<16x128xbf16>
    %cst_78 = arith.constant dense<0.000000e+00> : vector<16x512xf32>
    %192 = tpu.matmul %191, %24, %cst_78 {dimension_numbers = #tpu.dot_dimension_numbers<[1], [0], [0], [1], [0, 0, 1, 1], [], []>} : vector<16x128xbf16>, vector<128x512xbf16>, vector<16x512xf32> -> vector<16x512xf32>
    %193 = arith.addf %190, %192 : vector<16x512xf32>
    %194 = vector.extract_strided_slice %186 {offsets = [0, 0], sizes = [16, 128], strides = [1, 1]} : vector<16x512xf32> to vector<16x128xf32>
    %195 = arith.negf %194 : vector<16x128xf32>
    %196 = math.exp %195 : vector<16x128xf32>
    %cst_79 = arith.constant 1.000000e+00 : f32
    %197 = vector.broadcast %cst_79 : f32 to vector<16x128xf32>
    %198 = arith.addf %197, %196 : vector<16x128xf32>
    %199 = arith.divf %197, %198 : vector<16x128xf32>
    %200 = vector.extract_strided_slice %186 {offsets = [0, 128], sizes = [16, 128], strides = [1, 1]} : vector<16x512xf32> to vector<16x128xf32>
    %201 = arith.negf %200 : vector<16x128xf32>
    %202 = math.exp %201 : vector<16x128xf32>
    %cst_80 = arith.constant 1.000000e+00 : f32
    %203 = vector.broadcast %cst_80 : f32 to vector<16x128xf32>
    %204 = arith.addf %203, %202 : vector<16x128xf32>
    %205 = arith.divf %203, %204 : vector<16x128xf32>
    %206 = vector.extract_strided_slice %186 {offsets = [0, 256], sizes = [16, 128], strides = [1, 1]} : vector<16x512xf32> to vector<16x128xf32>
    %207 = math.tanh %206 : vector<16x128xf32>
    %208 = vector.extract_strided_slice %186 {offsets = [0, 384], sizes = [16, 128], strides = [1, 1]} : vector<16x512xf32> to vector<16x128xf32>
    %209 = arith.negf %208 : vector<16x128xf32>
    %210 = math.exp %209 : vector<16x128xf32>
    %cst_81 = arith.constant 1.000000e+00 : f32
    %211 = vector.broadcast %cst_81 : f32 to vector<16x128xf32>
    %212 = arith.addf %211, %210 : vector<16x128xf32>
    %213 = arith.divf %211, %212 : vector<16x128xf32>
    %214 = arith.mulf %205, %142 : vector<16x128xf32>
    %215 = arith.mulf %199, %207 : vector<16x128xf32>
    %216 = arith.addf %214, %215 : vector<16x128xf32>
    %217 = math.tanh %216 : vector<16x128xf32>
    %218 = arith.mulf %213, %217 : vector<16x128xf32>
    %219 = vector.extract_strided_slice %193 {offsets = [0, 0], sizes = [16, 128], strides = [1, 1]} : vector<16x512xf32> to vector<16x128xf32>
    %220 = arith.negf %219 : vector<16x128xf32>
    %221 = math.exp %220 : vector<16x128xf32>
    %cst_82 = arith.constant 1.000000e+00 : f32
    %222 = vector.broadcast %cst_82 : f32 to vector<16x128xf32>
    %223 = arith.addf %222, %221 : vector<16x128xf32>
    %224 = arith.divf %222, %223 : vector<16x128xf32>
    %225 = vector.extract_strided_slice %193 {offsets = [0, 128], sizes = [16, 128], strides = [1, 1]} : vector<16x512xf32> to vector<16x128xf32>
    %226 = arith.negf %225 : vector<16x128xf32>
    %227 = math.exp %226 : vector<16x128xf32>
    %cst_83 = arith.constant 1.000000e+00 : f32
    %228 = vector.broadcast %cst_83 : f32 to vector<16x128xf32>
    %229 = arith.addf %228, %227 : vector<16x128xf32>
    %230 = arith.divf %228, %229 : vector<16x128xf32>
    %231 = vector.extract_strided_slice %193 {offsets = [0, 256], sizes = [16, 128], strides = [1, 1]} : vector<16x512xf32> to vector<16x128xf32>
    %232 = math.tanh %231 : vector<16x128xf32>
    %233 = vector.extract_strided_slice %193 {offsets = [0, 384], sizes = [16, 128], strides = [1, 1]} : vector<16x512xf32> to vector<16x128xf32>
    %234 = arith.negf %233 : vector<16x128xf32>
    %235 = math.exp %234 : vector<16x128xf32>
    %cst_84 = arith.constant 1.000000e+00 : f32
    %236 = vector.broadcast %cst_84 : f32 to vector<16x128xf32>
    %237 = arith.addf %236, %235 : vector<16x128xf32>
    %238 = arith.divf %236, %237 : vector<16x128xf32>
    %239 = arith.mulf %230, %167 : vector<16x128xf32>
    %240 = arith.mulf %224, %232 : vector<16x128xf32>
    %241 = arith.addf %239, %240 : vector<16x128xf32>
    %242 = math.tanh %241 : vector<16x128xf32>
    %243 = arith.mulf %238, %242 : vector<16x128xf32>
    %244 = arith.truncf %218 : vector<16x128xf32> to vector<16x128xbf16>
    %245 = arith.index_cast %c2_i32 : i32 to index
    %c0_85 = arith.constant 0 : index
    %c0_86 = arith.constant 0 : index
    %246 = vector.load %arg8[%245, %c0_85, %c0_86] : memref<8x16x128xbf16, #tpu.memory_space<vmem>>, vector<1x16x128xbf16>
    %247 = vector.shape_cast %246 : vector<1x16x128xbf16> to vector<16x128xbf16>
    %248 = vector.shape_cast %244 : vector<16x128xbf16> to vector<1x16x128xbf16>
    tpu.vector_store %arg8[%245, %c0_85, %c0_86], %248 {strides = array<i32>} : memref<8x16x128xbf16, #tpu.memory_space<vmem>>, vector<1x16x128xbf16>,
    %249 = arith.truncf %243 : vector<16x128xf32> to vector<16x128xbf16>
    %c7_i32_87 = arith.constant 7 : i32
    %250 = arith.subi %c7_i32_87, %c2_i32 : i32
    %251 = arith.index_cast %250 : i32 to index
    %c0_88 = arith.constant 0 : index
    %c0_89 = arith.constant 0 : index
    %252 = vector.load %arg9[%251, %c0_88, %c0_89] : memref<8x16x128xbf16, #tpu.memory_space<vmem>>, vector<1x16x128xbf16>
    %253 = vector.shape_cast %252 : vector<1x16x128xbf16> to vector<16x128xbf16>
    %254 = vector.shape_cast %249 : vector<16x128xbf16> to vector<1x16x128xbf16>
    tpu.vector_store %arg9[%251, %c0_88, %c0_89], %254 {strides = array<i32>} : memref<8x16x128xbf16, #tpu.memory_space<vmem>>, vector<1x16x128xbf16>,
    %c3_i32 = arith.constant 3 : i32
    %255 = arith.index_cast %c3_i32 : i32 to index
    %c0_90 = arith.constant 0 : index
    %c0_91 = arith.constant 0 : index
    %256 = vector.load %arg10[%255, %c0_90, %c0_91] : memref<8x16x512xf32, #tpu.memory_space<vmem>>, vector<1x16x512xf32>
    %257 = vector.shape_cast %256 : vector<1x16x512xf32> to vector<16x512xf32>
    %258 = arith.truncf %218 : vector<16x128xf32> to vector<16x128xbf16>
    %cst_92 = arith.constant dense<0.000000e+00> : vector<16x512xf32>
    %259 = tpu.matmul %258, %23, %cst_92 {dimension_numbers = #tpu.dot_dimension_numbers<[1], [0], [0], [1], [0, 0, 1, 1], [], []>} : vector<16x128xbf16>, vector<128x512xbf16>, vector<16x512xf32> -> vector<16x512xf32>
    %260 = arith.addf %257, %259 : vector<16x512xf32>
    %c7_i32_93 = arith.constant 7 : i32
    %261 = arith.subi %c7_i32_93, %c3_i32 : i32
    %262 = arith.index_cast %261 : i32 to index
    %c0_94 = arith.constant 0 : index
    %c0_95 = arith.constant 0 : index
    %263 = vector.load %arg11[%262, %c0_94, %c0_95] : memref<8x16x512xf32, #tpu.memory_space<vmem>>, vector<1x16x512xf32>
    %264 = vector.shape_cast %263 : vector<1x16x512xf32> to vector<16x512xf32>
    %265 = arith.truncf %243 : vector<16x128xf32> to vector<16x128xbf16>
    %cst_96 = arith.constant dense<0.000000e+00> : vector<16x512xf32>
    %266 = tpu.matmul %265, %24, %cst_96 {dimension_numbers = #tpu.dot_dimension_numbers<[1], [0], [0], [1], [0, 0, 1, 1], [], []>} : vector<16x128xbf16>, vector<128x512xbf16>, vector<16x512xf32> -> vector<16x512xf32>
    %267 = arith.addf %264, %266 : vector<16x512xf32>
    %268 = vector.extract_strided_slice %260 {offsets = [0, 0], sizes = [16, 128], strides = [1, 1]} : vector<16x512xf32> to vector<16x128xf32>
    %269 = arith.negf %268 : vector<16x128xf32>
    %270 = math.exp %269 : vector<16x128xf32>
    %cst_97 = arith.constant 1.000000e+00 : f32
    %271 = vector.broadcast %cst_97 : f32 to vector<16x128xf32>
    %272 = arith.addf %271, %270 : vector<16x128xf32>
    %273 = arith.divf %271, %272 : vector<16x128xf32>
    %274 = vector.extract_strided_slice %260 {offsets = [0, 128], sizes = [16, 128], strides = [1, 1]} : vector<16x512xf32> to vector<16x128xf32>
    %275 = arith.negf %274 : vector<16x128xf32>
    %276 = math.exp %275 : vector<16x128xf32>
    %cst_98 = arith.constant 1.000000e+00 : f32
    %277 = vector.broadcast %cst_98 : f32 to vector<16x128xf32>
    %278 = arith.addf %277, %276 : vector<16x128xf32>
    %279 = arith.divf %277, %278 : vector<16x128xf32>
    %280 = vector.extract_strided_slice %260 {offsets = [0, 256], sizes = [16, 128], strides = [1, 1]} : vector<16x512xf32> to vector<16x128xf32>
    %281 = math.tanh %280 : vector<16x128xf32>
    %282 = vector.extract_strided_slice %260 {offsets = [0, 384], sizes = [16, 128], strides = [1, 1]} : vector<16x512xf32> to vector<16x128xf32>
    %283 = arith.negf %282 : vector<16x128xf32>
    %284 = math.exp %283 : vector<16x128xf32>
    %cst_99 = arith.constant 1.000000e+00 : f32
    %285 = vector.broadcast %cst_99 : f32 to vector<16x128xf32>
    %286 = arith.addf %285, %284 : vector<16x128xf32>
    %287 = arith.divf %285, %286 : vector<16x128xf32>
    %288 = arith.mulf %279, %216 : vector<16x128xf32>
    %289 = arith.mulf %273, %281 : vector<16x128xf32>
    %290 = arith.addf %288, %289 : vector<16x128xf32>
    %291 = math.tanh %290 : vector<16x128xf32>
    %292 = arith.mulf %287, %291 : vector<16x128xf32>
    %293 = vector.extract_strided_slice %267 {offsets = [0, 0], sizes = [16, 128], strides = [1, 1]} : vector<16x512xf32> to vector<16x128xf32>
    %294 = arith.negf %293 : vector<16x128xf32>
    %295 = math.exp %294 : vector<16x128xf32>
    %cst_100 = arith.constant 1.000000e+00 : f32
    %296 = vector.broadcast %cst_100 : f32 to vector<16x128xf32>
    %297 = arith.addf %296, %295 : vector<16x128xf32>
    %298 = arith.divf %296, %297 : vector<16x128xf32>
    %299 = vector.extract_strided_slice %267 {offsets = [0, 128], sizes = [16, 128], strides = [1, 1]} : vector<16x512xf32> to vector<16x128xf32>
    %300 = arith.negf %299 : vector<16x128xf32>
    %301 = math.exp %300 : vector<16x128xf32>
    %cst_101 = arith.constant 1.000000e+00 : f32
    %302 = vector.broadcast %cst_101 : f32 to vector<16x128xf32>
    %303 = arith.addf %302, %301 : vector<16x128xf32>
    %304 = arith.divf %302, %303 : vector<16x128xf32>
    %305 = vector.extract_strided_slice %267 {offsets = [0, 256], sizes = [16, 128], strides = [1, 1]} : vector<16x512xf32> to vector<16x128xf32>
    %306 = math.tanh %305 : vector<16x128xf32>
    %307 = vector.extract_strided_slice %267 {offsets = [0, 384], sizes = [16, 128], strides = [1, 1]} : vector<16x512xf32> to vector<16x128xf32>
    %308 = arith.negf %307 : vector<16x128xf32>
    %309 = math.exp %308 : vector<16x128xf32>
    %cst_102 = arith.constant 1.000000e+00 : f32
    %310 = vector.broadcast %cst_102 : f32 to vector<16x128xf32>
    %311 = arith.addf %310, %309 : vector<16x128xf32>
    %312 = arith.divf %310, %311 : vector<16x128xf32>
    %313 = arith.mulf %304, %241 : vector<16x128xf32>
    %314 = arith.mulf %298, %306 : vector<16x128xf32>
    %315 = arith.addf %313, %314 : vector<16x128xf32>
    %316 = math.tanh %315 : vector<16x128xf32>
    %317 = arith.mulf %312, %316 : vector<16x128xf32>
    %318 = arith.truncf %292 : vector<16x128xf32> to vector<16x128xbf16>
    %319 = arith.index_cast %c3_i32 : i32 to index
    %c0_103 = arith.constant 0 : index
    %c0_104 = arith.constant 0 : index
    %320 = vector.load %arg8[%319, %c0_103, %c0_104] : memref<8x16x128xbf16, #tpu.memory_space<vmem>>, vector<1x16x128xbf16>
    %321 = vector.shape_cast %320 : vector<1x16x128xbf16> to vector<16x128xbf16>
    %322 = vector.shape_cast %318 : vector<16x128xbf16> to vector<1x16x128xbf16>
    tpu.vector_store %arg8[%319, %c0_103, %c0_104], %322 {strides = array<i32>} : memref<8x16x128xbf16, #tpu.memory_space<vmem>>, vector<1x16x128xbf16>,
    %323 = arith.truncf %317 : vector<16x128xf32> to vector<16x128xbf16>
    %c7_i32_105 = arith.constant 7 : i32
    %324 = arith.subi %c7_i32_105, %c3_i32 : i32
    %325 = arith.index_cast %324 : i32 to index
    %c0_106 = arith.constant 0 : index
    %c0_107 = arith.constant 0 : index
    %326 = vector.load %arg9[%325, %c0_106, %c0_107] : memref<8x16x128xbf16, #tpu.memory_space<vmem>>, vector<1x16x128xbf16>
    %327 = vector.shape_cast %326 : vector<1x16x128xbf16> to vector<16x128xbf16>
    %328 = vector.shape_cast %323 : vector<16x128xbf16> to vector<1x16x128xbf16>
    tpu.vector_store %arg9[%325, %c0_106, %c0_107], %328 {strides = array<i32>} : memref<8x16x128xbf16, #tpu.memory_space<vmem>>, vector<1x16x128xbf16>,
    %c4_i32 = arith.constant 4 : i32
    %329 = arith.index_cast %c4_i32 : i32 to index
    %c0_108 = arith.constant 0 : index
    %c0_109 = arith.constant 0 : index
    %330 = vector.load %arg10[%329, %c0_108, %c0_109] : memref<8x16x512xf32, #tpu.memory_space<vmem>>, vector<1x16x512xf32>
    %331 = vector.shape_cast %330 : vector<1x16x512xf32> to vector<16x512xf32>
    %332 = arith.truncf %292 : vector<16x128xf32> to vector<16x128xbf16>
    %cst_110 = arith.constant dense<0.000000e+00> : vector<16x512xf32>
    %333 = tpu.matmul %332, %23, %cst_110 {dimension_numbers = #tpu.dot_dimension_numbers<[1], [0], [0], [1], [0, 0, 1, 1], [], []>} : vector<16x128xbf16>, vector<128x512xbf16>, vector<16x512xf32> -> vector<16x512xf32>
    %334 = arith.addf %331, %333 : vector<16x512xf32>
    %c7_i32_111 = arith.constant 7 : i32
    %335 = arith.subi %c7_i32_111, %c4_i32 : i32
    %336 = arith.index_cast %335 : i32 to index
    %c0_112 = arith.constant 0 : index
    %c0_113 = arith.constant 0 : index
    %337 = vector.load %arg11[%336, %c0_112, %c0_113] : memref<8x16x512xf32, #tpu.memory_space<vmem>>, vector<1x16x512xf32>
    %338 = vector.shape_cast %337 : vector<1x16x512xf32> to vector<16x512xf32>
    %339 = arith.truncf %317 : vector<16x128xf32> to vector<16x128xbf16>
    %cst_114 = arith.constant dense<0.000000e+00> : vector<16x512xf32>
    %340 = tpu.matmul %339, %24, %cst_114 {dimension_numbers = #tpu.dot_dimension_numbers<[1], [0], [0], [1], [0, 0, 1, 1], [], []>} : vector<16x128xbf16>, vector<128x512xbf16>, vector<16x512xf32> -> vector<16x512xf32>
    %341 = arith.addf %338, %340 : vector<16x512xf32>
    %342 = vector.extract_strided_slice %334 {offsets = [0, 0], sizes = [16, 128], strides = [1, 1]} : vector<16x512xf32> to vector<16x128xf32>
    %343 = arith.negf %342 : vector<16x128xf32>
    %344 = math.exp %343 : vector<16x128xf32>
    %cst_115 = arith.constant 1.000000e+00 : f32
    %345 = vector.broadcast %cst_115 : f32 to vector<16x128xf32>
    %346 = arith.addf %345, %344 : vector<16x128xf32>
    %347 = arith.divf %345, %346 : vector<16x128xf32>
    %348 = vector.extract_strided_slice %334 {offsets = [0, 128], sizes = [16, 128], strides = [1, 1]} : vector<16x512xf32> to vector<16x128xf32>
    %349 = arith.negf %348 : vector<16x128xf32>
    %350 = math.exp %349 : vector<16x128xf32>
    %cst_116 = arith.constant 1.000000e+00 : f32
    %351 = vector.broadcast %cst_116 : f32 to vector<16x128xf32>
    %352 = arith.addf %351, %350 : vector<16x128xf32>
    %353 = arith.divf %351, %352 : vector<16x128xf32>
    %354 = vector.extract_strided_slice %334 {offsets = [0, 256], sizes = [16, 128], strides = [1, 1]} : vector<16x512xf32> to vector<16x128xf32>
    %355 = math.tanh %354 : vector<16x128xf32>
    %356 = vector.extract_strided_slice %334 {offsets = [0, 384], sizes = [16, 128], strides = [1, 1]} : vector<16x512xf32> to vector<16x128xf32>
    %357 = arith.negf %356 : vector<16x128xf32>
    %358 = math.exp %357 : vector<16x128xf32>
    %cst_117 = arith.constant 1.000000e+00 : f32
    %359 = vector.broadcast %cst_117 : f32 to vector<16x128xf32>
    %360 = arith.addf %359, %358 : vector<16x128xf32>
    %361 = arith.divf %359, %360 : vector<16x128xf32>
    %362 = arith.mulf %353, %290 : vector<16x128xf32>
    %363 = arith.mulf %347, %355 : vector<16x128xf32>
    %364 = arith.addf %362, %363 : vector<16x128xf32>
    %365 = math.tanh %364 : vector<16x128xf32>
    %366 = arith.mulf %361, %365 : vector<16x128xf32>
    %367 = vector.extract_strided_slice %341 {offsets = [0, 0], sizes = [16, 128], strides = [1, 1]} : vector<16x512xf32> to vector<16x128xf32>
    %368 = arith.negf %367 : vector<16x128xf32>
    %369 = math.exp %368 : vector<16x128xf32>
    %cst_118 = arith.constant 1.000000e+00 : f32
    %370 = vector.broadcast %cst_118 : f32 to vector<16x128xf32>
    %371 = arith.addf %370, %369 : vector<16x128xf32>
    %372 = arith.divf %370, %371 : vector<16x128xf32>
    %373 = vector.extract_strided_slice %341 {offsets = [0, 128], sizes = [16, 128], strides = [1, 1]} : vector<16x512xf32> to vector<16x128xf32>
    %374 = arith.negf %373 : vector<16x128xf32>
    %375 = math.exp %374 : vector<16x128xf32>
    %cst_119 = arith.constant 1.000000e+00 : f32
    %376 = vector.broadcast %cst_119 : f32 to vector<16x128xf32>
    %377 = arith.addf %376, %375 : vector<16x128xf32>
    %378 = arith.divf %376, %377 : vector<16x128xf32>
    %379 = vector.extract_strided_slice %341 {offsets = [0, 256], sizes = [16, 128], strides = [1, 1]} : vector<16x512xf32> to vector<16x128xf32>
    %380 = math.tanh %379 : vector<16x128xf32>
    %381 = vector.extract_strided_slice %341 {offsets = [0, 384], sizes = [16, 128], strides = [1, 1]} : vector<16x512xf32> to vector<16x128xf32>
    %382 = arith.negf %381 : vector<16x128xf32>
    %383 = math.exp %382 : vector<16x128xf32>
    %cst_120 = arith.constant 1.000000e+00 : f32
    %384 = vector.broadcast %cst_120 : f32 to vector<16x128xf32>
    %385 = arith.addf %384, %383 : vector<16x128xf32>
    %386 = arith.divf %384, %385 : vector<16x128xf32>
    %387 = arith.mulf %378, %315 : vector<16x128xf32>
    %388 = arith.mulf %372, %380 : vector<16x128xf32>
    %389 = arith.addf %387, %388 : vector<16x128xf32>
    %390 = math.tanh %389 : vector<16x128xf32>
    %391 = arith.mulf %386, %390 : vector<16x128xf32>
    %392 = arith.truncf %366 : vector<16x128xf32> to vector<16x128xbf16>
    %393 = arith.index_cast %c4_i32 : i32 to index
    %c0_121 = arith.constant 0 : index
    %c0_122 = arith.constant 0 : index
    %394 = vector.load %arg8[%393, %c0_121, %c0_122] : memref<8x16x128xbf16, #tpu.memory_space<vmem>>, vector<1x16x128xbf16>
    %395 = vector.shape_cast %394 : vector<1x16x128xbf16> to vector<16x128xbf16>
    %396 = vector.shape_cast %392 : vector<16x128xbf16> to vector<1x16x128xbf16>
    tpu.vector_store %arg8[%393, %c0_121, %c0_122], %396 {strides = array<i32>} : memref<8x16x128xbf16, #tpu.memory_space<vmem>>, vector<1x16x128xbf16>,
    %397 = arith.truncf %391 : vector<16x128xf32> to vector<16x128xbf16>
    %c7_i32_123 = arith.constant 7 : i32
    %398 = arith.subi %c7_i32_123, %c4_i32 : i32
    %399 = arith.index_cast %398 : i32 to index
    %c0_124 = arith.constant 0 : index
    %c0_125 = arith.constant 0 : index
    %400 = vector.load %arg9[%399, %c0_124, %c0_125] : memref<8x16x128xbf16, #tpu.memory_space<vmem>>, vector<1x16x128xbf16>
    %401 = vector.shape_cast %400 : vector<1x16x128xbf16> to vector<16x128xbf16>
    %402 = vector.shape_cast %397 : vector<16x128xbf16> to vector<1x16x128xbf16>
    tpu.vector_store %arg9[%399, %c0_124, %c0_125], %402 {strides = array<i32>} : memref<8x16x128xbf16, #tpu.memory_space<vmem>>, vector<1x16x128xbf16>,
    %c5_i32 = arith.constant 5 : i32
    %403 = arith.index_cast %c5_i32 : i32 to index
    %c0_126 = arith.constant 0 : index
    %c0_127 = arith.constant 0 : index
    %404 = vector.load %arg10[%403, %c0_126, %c0_127] : memref<8x16x512xf32, #tpu.memory_space<vmem>>, vector<1x16x512xf32>
    %405 = vector.shape_cast %404 : vector<1x16x512xf32> to vector<16x512xf32>
    %406 = arith.truncf %366 : vector<16x128xf32> to vector<16x128xbf16>
    %cst_128 = arith.constant dense<0.000000e+00> : vector<16x512xf32>
    %407 = tpu.matmul %406, %23, %cst_128 {dimension_numbers = #tpu.dot_dimension_numbers<[1], [0], [0], [1], [0, 0, 1, 1], [], []>} : vector<16x128xbf16>, vector<128x512xbf16>, vector<16x512xf32> -> vector<16x512xf32>
    %408 = arith.addf %405, %407 : vector<16x512xf32>
    %c7_i32_129 = arith.constant 7 : i32
    %409 = arith.subi %c7_i32_129, %c5_i32 : i32
    %410 = arith.index_cast %409 : i32 to index
    %c0_130 = arith.constant 0 : index
    %c0_131 = arith.constant 0 : index
    %411 = vector.load %arg11[%410, %c0_130, %c0_131] : memref<8x16x512xf32, #tpu.memory_space<vmem>>, vector<1x16x512xf32>
    %412 = vector.shape_cast %411 : vector<1x16x512xf32> to vector<16x512xf32>
    %413 = arith.truncf %391 : vector<16x128xf32> to vector<16x128xbf16>
    %cst_132 = arith.constant dense<0.000000e+00> : vector<16x512xf32>
    %414 = tpu.matmul %413, %24, %cst_132 {dimension_numbers = #tpu.dot_dimension_numbers<[1], [0], [0], [1], [0, 0, 1, 1], [], []>} : vector<16x128xbf16>, vector<128x512xbf16>, vector<16x512xf32> -> vector<16x512xf32>
    %415 = arith.addf %412, %414 : vector<16x512xf32>
    %416 = vector.extract_strided_slice %408 {offsets = [0, 0], sizes = [16, 128], strides = [1, 1]} : vector<16x512xf32> to vector<16x128xf32>
    %417 = arith.negf %416 : vector<16x128xf32>
    %418 = math.exp %417 : vector<16x128xf32>
    %cst_133 = arith.constant 1.000000e+00 : f32
    %419 = vector.broadcast %cst_133 : f32 to vector<16x128xf32>
    %420 = arith.addf %419, %418 : vector<16x128xf32>
    %421 = arith.divf %419, %420 : vector<16x128xf32>
    %422 = vector.extract_strided_slice %408 {offsets = [0, 128], sizes = [16, 128], strides = [1, 1]} : vector<16x512xf32> to vector<16x128xf32>
    %423 = arith.negf %422 : vector<16x128xf32>
    %424 = math.exp %423 : vector<16x128xf32>
    %cst_134 = arith.constant 1.000000e+00 : f32
    %425 = vector.broadcast %cst_134 : f32 to vector<16x128xf32>
    %426 = arith.addf %425, %424 : vector<16x128xf32>
    %427 = arith.divf %425, %426 : vector<16x128xf32>
    %428 = vector.extract_strided_slice %408 {offsets = [0, 256], sizes = [16, 128], strides = [1, 1]} : vector<16x512xf32> to vector<16x128xf32>
    %429 = math.tanh %428 : vector<16x128xf32>
    %430 = vector.extract_strided_slice %408 {offsets = [0, 384], sizes = [16, 128], strides = [1, 1]} : vector<16x512xf32> to vector<16x128xf32>
    %431 = arith.negf %430 : vector<16x128xf32>
    %432 = math.exp %431 : vector<16x128xf32>
    %cst_135 = arith.constant 1.000000e+00 : f32
    %433 = vector.broadcast %cst_135 : f32 to vector<16x128xf32>
    %434 = arith.addf %433, %432 : vector<16x128xf32>
    %435 = arith.divf %433, %434 : vector<16x128xf32>
    %436 = arith.mulf %427, %364 : vector<16x128xf32>
    %437 = arith.mulf %421, %429 : vector<16x128xf32>
    %438 = arith.addf %436, %437 : vector<16x128xf32>
    %439 = math.tanh %438 : vector<16x128xf32>
    %440 = arith.mulf %435, %439 : vector<16x128xf32>
    %441 = vector.extract_strided_slice %415 {offsets = [0, 0], sizes = [16, 128], strides = [1, 1]} : vector<16x512xf32> to vector<16x128xf32>
    %442 = arith.negf %441 : vector<16x128xf32>
    %443 = math.exp %442 : vector<16x128xf32>
    %cst_136 = arith.constant 1.000000e+00 : f32
    %444 = vector.broadcast %cst_136 : f32 to vector<16x128xf32>
    %445 = arith.addf %444, %443 : vector<16x128xf32>
    %446 = arith.divf %444, %445 : vector<16x128xf32>
    %447 = vector.extract_strided_slice %415 {offsets = [0, 128], sizes = [16, 128], strides = [1, 1]} : vector<16x512xf32> to vector<16x128xf32>
    %448 = arith.negf %447 : vector<16x128xf32>
    %449 = math.exp %448 : vector<16x128xf32>
    %cst_137 = arith.constant 1.000000e+00 : f32
    %450 = vector.broadcast %cst_137 : f32 to vector<16x128xf32>
    %451 = arith.addf %450, %449 : vector<16x128xf32>
    %452 = arith.divf %450, %451 : vector<16x128xf32>
    %453 = vector.extract_strided_slice %415 {offsets = [0, 256], sizes = [16, 128], strides = [1, 1]} : vector<16x512xf32> to vector<16x128xf32>
    %454 = math.tanh %453 : vector<16x128xf32>
    %455 = vector.extract_strided_slice %415 {offsets = [0, 384], sizes = [16, 128], strides = [1, 1]} : vector<16x512xf32> to vector<16x128xf32>
    %456 = arith.negf %455 : vector<16x128xf32>
    %457 = math.exp %456 : vector<16x128xf32>
    %cst_138 = arith.constant 1.000000e+00 : f32
    %458 = vector.broadcast %cst_138 : f32 to vector<16x128xf32>
    %459 = arith.addf %458, %457 : vector<16x128xf32>
    %460 = arith.divf %458, %459 : vector<16x128xf32>
    %461 = arith.mulf %452, %389 : vector<16x128xf32>
    %462 = arith.mulf %446, %454 : vector<16x128xf32>
    %463 = arith.addf %461, %462 : vector<16x128xf32>
    %464 = math.tanh %463 : vector<16x128xf32>
    %465 = arith.mulf %460, %464 : vector<16x128xf32>
    %466 = arith.truncf %440 : vector<16x128xf32> to vector<16x128xbf16>
    %467 = arith.index_cast %c5_i32 : i32 to index
    %c0_139 = arith.constant 0 : index
    %c0_140 = arith.constant 0 : index
    %468 = vector.load %arg8[%467, %c0_139, %c0_140] : memref<8x16x128xbf16, #tpu.memory_space<vmem>>, vector<1x16x128xbf16>
    %469 = vector.shape_cast %468 : vector<1x16x128xbf16> to vector<16x128xbf16>
    %470 = vector.shape_cast %466 : vector<16x128xbf16> to vector<1x16x128xbf16>
    tpu.vector_store %arg8[%467, %c0_139, %c0_140], %470 {strides = array<i32>} : memref<8x16x128xbf16, #tpu.memory_space<vmem>>, vector<1x16x128xbf16>,
    %471 = arith.truncf %465 : vector<16x128xf32> to vector<16x128xbf16>
    %c7_i32_141 = arith.constant 7 : i32
    %472 = arith.subi %c7_i32_141, %c5_i32 : i32
    %473 = arith.index_cast %472 : i32 to index
    %c0_142 = arith.constant 0 : index
    %c0_143 = arith.constant 0 : index
    %474 = vector.load %arg9[%473, %c0_142, %c0_143] : memref<8x16x128xbf16, #tpu.memory_space<vmem>>, vector<1x16x128xbf16>
    %475 = vector.shape_cast %474 : vector<1x16x128xbf16> to vector<16x128xbf16>
    %476 = vector.shape_cast %471 : vector<16x128xbf16> to vector<1x16x128xbf16>
    tpu.vector_store %arg9[%473, %c0_142, %c0_143], %476 {strides = array<i32>} : memref<8x16x128xbf16, #tpu.memory_space<vmem>>, vector<1x16x128xbf16>,
    %c6_i32 = arith.constant 6 : i32
    %477 = arith.index_cast %c6_i32 : i32 to index
    %c0_144 = arith.constant 0 : index
    %c0_145 = arith.constant 0 : index
    %478 = vector.load %arg10[%477, %c0_144, %c0_145] : memref<8x16x512xf32, #tpu.memory_space<vmem>>, vector<1x16x512xf32>
    %479 = vector.shape_cast %478 : vector<1x16x512xf32> to vector<16x512xf32>
    %480 = arith.truncf %440 : vector<16x128xf32> to vector<16x128xbf16>
    %cst_146 = arith.constant dense<0.000000e+00> : vector<16x512xf32>
    %481 = tpu.matmul %480, %23, %cst_146 {dimension_numbers = #tpu.dot_dimension_numbers<[1], [0], [0], [1], [0, 0, 1, 1], [], []>} : vector<16x128xbf16>, vector<128x512xbf16>, vector<16x512xf32> -> vector<16x512xf32>
    %482 = arith.addf %479, %481 : vector<16x512xf32>
    %c7_i32_147 = arith.constant 7 : i32
    %483 = arith.subi %c7_i32_147, %c6_i32 : i32
    %484 = arith.index_cast %483 : i32 to index
    %c0_148 = arith.constant 0 : index
    %c0_149 = arith.constant 0 : index
    %485 = vector.load %arg11[%484, %c0_148, %c0_149] : memref<8x16x512xf32, #tpu.memory_space<vmem>>, vector<1x16x512xf32>
    %486 = vector.shape_cast %485 : vector<1x16x512xf32> to vector<16x512xf32>
    %487 = arith.truncf %465 : vector<16x128xf32> to vector<16x128xbf16>
    %cst_150 = arith.constant dense<0.000000e+00> : vector<16x512xf32>
    %488 = tpu.matmul %487, %24, %cst_150 {dimension_numbers = #tpu.dot_dimension_numbers<[1], [0], [0], [1], [0, 0, 1, 1], [], []>} : vector<16x128xbf16>, vector<128x512xbf16>, vector<16x512xf32> -> vector<16x512xf32>
    %489 = arith.addf %486, %488 : vector<16x512xf32>
    %490 = vector.extract_strided_slice %482 {offsets = [0, 0], sizes = [16, 128], strides = [1, 1]} : vector<16x512xf32> to vector<16x128xf32>
    %491 = arith.negf %490 : vector<16x128xf32>
    %492 = math.exp %491 : vector<16x128xf32>
    %cst_151 = arith.constant 1.000000e+00 : f32
    %493 = vector.broadcast %cst_151 : f32 to vector<16x128xf32>
    %494 = arith.addf %493, %492 : vector<16x128xf32>
    %495 = arith.divf %493, %494 : vector<16x128xf32>
    %496 = vector.extract_strided_slice %482 {offsets = [0, 128], sizes = [16, 128], strides = [1, 1]} : vector<16x512xf32> to vector<16x128xf32>
    %497 = arith.negf %496 : vector<16x128xf32>
    %498 = math.exp %497 : vector<16x128xf32>
    %cst_152 = arith.constant 1.000000e+00 : f32
    %499 = vector.broadcast %cst_152 : f32 to vector<16x128xf32>
    %500 = arith.addf %499, %498 : vector<16x128xf32>
    %501 = arith.divf %499, %500 : vector<16x128xf32>
    %502 = vector.extract_strided_slice %482 {offsets = [0, 256], sizes = [16, 128], strides = [1, 1]} : vector<16x512xf32> to vector<16x128xf32>
    %503 = math.tanh %502 : vector<16x128xf32>
    %504 = vector.extract_strided_slice %482 {offsets = [0, 384], sizes = [16, 128], strides = [1, 1]} : vector<16x512xf32> to vector<16x128xf32>
    %505 = arith.negf %504 : vector<16x128xf32>
    %506 = math.exp %505 : vector<16x128xf32>
    %cst_153 = arith.constant 1.000000e+00 : f32
    %507 = vector.broadcast %cst_153 : f32 to vector<16x128xf32>
    %508 = arith.addf %507, %506 : vector<16x128xf32>
    %509 = arith.divf %507, %508 : vector<16x128xf32>
    %510 = arith.mulf %501, %438 : vector<16x128xf32>
    %511 = arith.mulf %495, %503 : vector<16x128xf32>
    %512 = arith.addf %510, %511 : vector<16x128xf32>
    %513 = math.tanh %512 : vector<16x128xf32>
    %514 = arith.mulf %509, %513 : vector<16x128xf32>
    %515 = vector.extract_strided_slice %489 {offsets = [0, 0], sizes = [16, 128], strides = [1, 1]} : vector<16x512xf32> to vector<16x128xf32>
    %516 = arith.negf %515 : vector<16x128xf32>
    %517 = math.exp %516 : vector<16x128xf32>
    %cst_154 = arith.constant 1.000000e+00 : f32
    %518 = vector.broadcast %cst_154 : f32 to vector<16x128xf32>
    %519 = arith.addf %518, %517 : vector<16x128xf32>
    %520 = arith.divf %518, %519 : vector<16x128xf32>
    %521 = vector.extract_strided_slice %489 {offsets = [0, 128], sizes = [16, 128], strides = [1, 1]} : vector<16x512xf32> to vector<16x128xf32>
    %522 = arith.negf %521 : vector<16x128xf32>
    %523 = math.exp %522 : vector<16x128xf32>
    %cst_155 = arith.constant 1.000000e+00 : f32
    %524 = vector.broadcast %cst_155 : f32 to vector<16x128xf32>
    %525 = arith.addf %524, %523 : vector<16x128xf32>
    %526 = arith.divf %524, %525 : vector<16x128xf32>
    %527 = vector.extract_strided_slice %489 {offsets = [0, 256], sizes = [16, 128], strides = [1, 1]} : vector<16x512xf32> to vector<16x128xf32>
    %528 = math.tanh %527 : vector<16x128xf32>
    %529 = vector.extract_strided_slice %489 {offsets = [0, 384], sizes = [16, 128], strides = [1, 1]} : vector<16x512xf32> to vector<16x128xf32>
    %530 = arith.negf %529 : vector<16x128xf32>
    %531 = math.exp %530 : vector<16x128xf32>
    %cst_156 = arith.constant 1.000000e+00 : f32
    %532 = vector.broadcast %cst_156 : f32 to vector<16x128xf32>
    %533 = arith.addf %532, %531 : vector<16x128xf32>
    %534 = arith.divf %532, %533 : vector<16x128xf32>
    %535 = arith.mulf %526, %463 : vector<16x128xf32>
    %536 = arith.mulf %520, %528 : vector<16x128xf32>
    %537 = arith.addf %535, %536 : vector<16x128xf32>
    %538 = math.tanh %537 : vector<16x128xf32>
    %539 = arith.mulf %534, %538 : vector<16x128xf32>
    %540 = arith.truncf %514 : vector<16x128xf32> to vector<16x128xbf16>
    %541 = arith.index_cast %c6_i32 : i32 to index
    %c0_157 = arith.constant 0 : index
    %c0_158 = arith.constant 0 : index
    %542 = vector.load %arg8[%541, %c0_157, %c0_158] : memref<8x16x128xbf16, #tpu.memory_space<vmem>>, vector<1x16x128xbf16>
    %543 = vector.shape_cast %542 : vector<1x16x128xbf16> to vector<16x128xbf16>
    %544 = vector.shape_cast %540 : vector<16x128xbf16> to vector<1x16x128xbf16>
    tpu.vector_store %arg8[%541, %c0_157, %c0_158], %544 {strides = array<i32>} : memref<8x16x128xbf16, #tpu.memory_space<vmem>>, vector<1x16x128xbf16>,
    %545 = arith.truncf %539 : vector<16x128xf32> to vector<16x128xbf16>
    %c7_i32_159 = arith.constant 7 : i32
    %546 = arith.subi %c7_i32_159, %c6_i32 : i32
    %547 = arith.index_cast %546 : i32 to index
    %c0_160 = arith.constant 0 : index
    %c0_161 = arith.constant 0 : index
    %548 = vector.load %arg9[%547, %c0_160, %c0_161] : memref<8x16x128xbf16, #tpu.memory_space<vmem>>, vector<1x16x128xbf16>
    %549 = vector.shape_cast %548 : vector<1x16x128xbf16> to vector<16x128xbf16>
    %550 = vector.shape_cast %545 : vector<16x128xbf16> to vector<1x16x128xbf16>
    tpu.vector_store %arg9[%547, %c0_160, %c0_161], %550 {strides = array<i32>} : memref<8x16x128xbf16, #tpu.memory_space<vmem>>, vector<1x16x128xbf16>,
    %c7_i32_162 = arith.constant 7 : i32
    %551 = arith.index_cast %c7_i32_162 : i32 to index
    %c0_163 = arith.constant 0 : index
    %c0_164 = arith.constant 0 : index
    %552 = vector.load %arg10[%551, %c0_163, %c0_164] : memref<8x16x512xf32, #tpu.memory_space<vmem>>, vector<1x16x512xf32>
    %553 = vector.shape_cast %552 : vector<1x16x512xf32> to vector<16x512xf32>
    %554 = arith.truncf %514 : vector<16x128xf32> to vector<16x128xbf16>
    %cst_165 = arith.constant dense<0.000000e+00> : vector<16x512xf32>
    %555 = tpu.matmul %554, %23, %cst_165 {dimension_numbers = #tpu.dot_dimension_numbers<[1], [0], [0], [1], [0, 0, 1, 1], [], []>} : vector<16x128xbf16>, vector<128x512xbf16>, vector<16x512xf32> -> vector<16x512xf32>
    %556 = arith.addf %553, %555 : vector<16x512xf32>
    %c7_i32_166 = arith.constant 7 : i32
    %557 = arith.subi %c7_i32_166, %c7_i32_162 : i32
    %558 = arith.index_cast %557 : i32 to index
    %c0_167 = arith.constant 0 : index
    %c0_168 = arith.constant 0 : index
    %559 = vector.load %arg11[%558, %c0_167, %c0_168] : memref<8x16x512xf32, #tpu.memory_space<vmem>>, vector<1x16x512xf32>
    %560 = vector.shape_cast %559 : vector<1x16x512xf32> to vector<16x512xf32>
    %561 = arith.truncf %539 : vector<16x128xf32> to vector<16x128xbf16>
    %cst_169 = arith.constant dense<0.000000e+00> : vector<16x512xf32>
    %562 = tpu.matmul %561, %24, %cst_169 {dimension_numbers = #tpu.dot_dimension_numbers<[1], [0], [0], [1], [0, 0, 1, 1], [], []>} : vector<16x128xbf16>, vector<128x512xbf16>, vector<16x512xf32> -> vector<16x512xf32>
    %563 = arith.addf %560, %562 : vector<16x512xf32>
    %564 = vector.extract_strided_slice %556 {offsets = [0, 0], sizes = [16, 128], strides = [1, 1]} : vector<16x512xf32> to vector<16x128xf32>
    %565 = arith.negf %564 : vector<16x128xf32>
    %566 = math.exp %565 : vector<16x128xf32>
    %cst_170 = arith.constant 1.000000e+00 : f32
    %567 = vector.broadcast %cst_170 : f32 to vector<16x128xf32>
    %568 = arith.addf %567, %566 : vector<16x128xf32>
    %569 = arith.divf %567, %568 : vector<16x128xf32>
    %570 = vector.extract_strided_slice %556 {offsets = [0, 128], sizes = [16, 128], strides = [1, 1]} : vector<16x512xf32> to vector<16x128xf32>
    %571 = arith.negf %570 : vector<16x128xf32>
    %572 = math.exp %571 : vector<16x128xf32>
    %cst_171 = arith.constant 1.000000e+00 : f32
    %573 = vector.broadcast %cst_171 : f32 to vector<16x128xf32>
    %574 = arith.addf %573, %572 : vector<16x128xf32>
    %575 = arith.divf %573, %574 : vector<16x128xf32>
    %576 = vector.extract_strided_slice %556 {offsets = [0, 256], sizes = [16, 128], strides = [1, 1]} : vector<16x512xf32> to vector<16x128xf32>
    %577 = math.tanh %576 : vector<16x128xf32>
    %578 = vector.extract_strided_slice %556 {offsets = [0, 384], sizes = [16, 128], strides = [1, 1]} : vector<16x512xf32> to vector<16x128xf32>
    %579 = arith.negf %578 : vector<16x128xf32>
    %580 = math.exp %579 : vector<16x128xf32>
    %cst_172 = arith.constant 1.000000e+00 : f32
    %581 = vector.broadcast %cst_172 : f32 to vector<16x128xf32>
    %582 = arith.addf %581, %580 : vector<16x128xf32>
    %583 = arith.divf %581, %582 : vector<16x128xf32>
    %584 = arith.mulf %575, %512 : vector<16x128xf32>
    %585 = arith.mulf %569, %577 : vector<16x128xf32>
    %586 = arith.addf %584, %585 : vector<16x128xf32>
    %587 = math.tanh %586 : vector<16x128xf32>
    %588 = arith.mulf %583, %587 : vector<16x128xf32>
    %589 = vector.extract_strided_slice %563 {offsets = [0, 0], sizes = [16, 128], strides = [1, 1]} : vector<16x512xf32> to vector<16x128xf32>
    %590 = arith.negf %589 : vector<16x128xf32>
    %591 = math.exp %590 : vector<16x128xf32>
    %cst_173 = arith.constant 1.000000e+00 : f32
    %592 = vector.broadcast %cst_173 : f32 to vector<16x128xf32>
    %593 = arith.addf %592, %591 : vector<16x128xf32>
    %594 = arith.divf %592, %593 : vector<16x128xf32>
    %595 = vector.extract_strided_slice %563 {offsets = [0, 128], sizes = [16, 128], strides = [1, 1]} : vector<16x512xf32> to vector<16x128xf32>
    %596 = arith.negf %595 : vector<16x128xf32>
    %597 = math.exp %596 : vector<16x128xf32>
    %cst_174 = arith.constant 1.000000e+00 : f32
    %598 = vector.broadcast %cst_174 : f32 to vector<16x128xf32>
    %599 = arith.addf %598, %597 : vector<16x128xf32>
    %600 = arith.divf %598, %599 : vector<16x128xf32>
    %601 = vector.extract_strided_slice %563 {offsets = [0, 256], sizes = [16, 128], strides = [1, 1]} : vector<16x512xf32> to vector<16x128xf32>
    %602 = math.tanh %601 : vector<16x128xf32>
    %603 = vector.extract_strided_slice %563 {offsets = [0, 384], sizes = [16, 128], strides = [1, 1]} : vector<16x512xf32> to vector<16x128xf32>
    %604 = arith.negf %603 : vector<16x128xf32>
    %605 = math.exp %604 : vector<16x128xf32>
    %cst_175 = arith.constant 1.000000e+00 : f32
    %606 = vector.broadcast %cst_175 : f32 to vector<16x128xf32>
    %607 = arith.addf %606, %605 : vector<16x128xf32>
    %608 = arith.divf %606, %607 : vector<16x128xf32>
    %609 = arith.mulf %600, %537 : vector<16x128xf32>
    %610 = arith.mulf %594, %602 : vector<16x128xf32>
    %611 = arith.addf %609, %610 : vector<16x128xf32>
    %612 = math.tanh %611 : vector<16x128xf32>
    %613 = arith.mulf %608, %612 : vector<16x128xf32>
    %614 = arith.truncf %588 : vector<16x128xf32> to vector<16x128xbf16>
    %615 = arith.index_cast %c7_i32_162 : i32 to index
    %c0_176 = arith.constant 0 : index
    %c0_177 = arith.constant 0 : index
    %616 = vector.load %arg8[%615, %c0_176, %c0_177] : memref<8x16x128xbf16, #tpu.memory_space<vmem>>, vector<1x16x128xbf16>
    %617 = vector.shape_cast %616 : vector<1x16x128xbf16> to vector<16x128xbf16>
    %618 = vector.shape_cast %614 : vector<16x128xbf16> to vector<1x16x128xbf16>
    tpu.vector_store %arg8[%615, %c0_176, %c0_177], %618 {strides = array<i32>} : memref<8x16x128xbf16, #tpu.memory_space<vmem>>, vector<1x16x128xbf16>,
    %619 = arith.truncf %613 : vector<16x128xf32> to vector<16x128xbf16>
    %c7_i32_178 = arith.constant 7 : i32
    %620 = arith.subi %c7_i32_178, %c7_i32_162 : i32
    %621 = arith.index_cast %620 : i32 to index
    %c0_179 = arith.constant 0 : index
    %c0_180 = arith.constant 0 : index
    %622 = vector.load %arg9[%621, %c0_179, %c0_180] : memref<8x16x128xbf16, #tpu.memory_space<vmem>>, vector<1x16x128xbf16>
    %623 = vector.shape_cast %622 : vector<1x16x128xbf16> to vector<16x128xbf16>
    %624 = vector.shape_cast %619 : vector<16x128xbf16> to vector<1x16x128xbf16>
    tpu.vector_store %arg9[%621, %c0_179, %c0_180], %624 {strides = array<i32>} : memref<8x16x128xbf16, #tpu.memory_space<vmem>>, vector<1x16x128xbf16>,
    %c8_i32 = arith.constant 8 : i32
    %c0_181 = arith.constant 0 : index
    %c0_182 = arith.constant 0 : index
    %c0_183 = arith.constant 0 : index
    %625 = vector.load %arg12[%c0_181, %c0_182, %c0_183] : memref<2x16x128xf32, #tpu.memory_space<vmem>>, vector<1x16x128xf32>
    %626 = vector.shape_cast %625 : vector<1x16x128xf32> to vector<16x128xf32>
    %627 = vector.shape_cast %588 : vector<16x128xf32> to vector<1x16x128xf32>
    tpu.vector_store %arg12[%c0_181, %c0_182, %c0_183], %627 {strides = array<i32>} : memref<2x16x128xf32, #tpu.memory_space<vmem>>, vector<1x16x128xf32>,
    %c0_184 = arith.constant 0 : index
    %c0_185 = arith.constant 0 : index
    %c0_186 = arith.constant 0 : index
    %628 = vector.load %arg13[%c0_184, %c0_185, %c0_186] : memref<2x16x128xf32, #tpu.memory_space<vmem>>, vector<1x16x128xf32>
    %629 = vector.shape_cast %628 : vector<1x16x128xf32> to vector<16x128xf32>
    %630 = vector.shape_cast %586 : vector<16x128xf32> to vector<1x16x128xf32>
    tpu.vector_store %arg13[%c0_184, %c0_185, %c0_186], %630 {strides = array<i32>} : memref<2x16x128xf32, #tpu.memory_space<vmem>>, vector<1x16x128xf32>,
    %c1_187 = arith.constant 1 : index
    %c0_188 = arith.constant 0 : index
    %c0_189 = arith.constant 0 : index
    %631 = vector.load %arg12[%c1_187, %c0_188, %c0_189] : memref<2x16x128xf32, #tpu.memory_space<vmem>>, vector<1x16x128xf32>
    %632 = vector.shape_cast %631 : vector<1x16x128xf32> to vector<16x128xf32>
    %633 = vector.shape_cast %613 : vector<16x128xf32> to vector<1x16x128xf32>
    tpu.vector_store %arg12[%c1_187, %c0_188, %c0_189], %633 {strides = array<i32>} : memref<2x16x128xf32, #tpu.memory_space<vmem>>, vector<1x16x128xf32>,
    %c1_190 = arith.constant 1 : index
    %c0_191 = arith.constant 0 : index
    %c0_192 = arith.constant 0 : index
    %634 = vector.load %arg13[%c1_190, %c0_191, %c0_192] : memref<2x16x128xf32, #tpu.memory_space<vmem>>, vector<1x16x128xf32>
    %635 = vector.shape_cast %634 : vector<1x16x128xf32> to vector<16x128xf32>
    %636 = vector.shape_cast %611 : vector<16x128xf32> to vector<1x16x128xf32>
    tpu.vector_store %arg13[%c1_190, %c0_191, %c0_192], %636 {strides = array<i32>} : memref<2x16x128xf32, #tpu.memory_space<vmem>>, vector<1x16x128xf32>,
    return
  }
  func.func @transform_0(%arg0: i32) -> (i32, i32, i32) {
    %c0_i32 = arith.constant 0 : i32
    %c0_i32_0 = arith.constant 0 : i32
    %c0_i32_1 = arith.constant 0 : i32
    return %arg0, %c0_i32, %c0_i32_0 : i32, i32, i32
  }
  func.func @transform_1(%arg0: i32) -> (i32, i32, i32) {
    %c0_i32 = arith.constant 0 : i32
    %0 = arith.subi %c0_i32, %arg0 : i32
    %c0_i32_0 = arith.constant 0 : i32
    %c0_i32_1 = arith.constant 0 : i32
    %c0_i32_2 = arith.constant 0 : i32
    return %0, %c0_i32_0, %c0_i32_1 : i32, i32, i32
  }
  func.func @transform_2(%arg0: i32) -> (i32, i32) {
    %c0_i32 = arith.constant 0 : i32
    %c0_i32_0 = arith.constant 0 : i32
    %c0_i32_1 = arith.constant 0 : i32
    return %c0_i32, %c0_i32_0 : i32, i32
  }
  func.func @transform_3(%arg0: i32) -> (i32, i32) {
    %c0_i32 = arith.constant 0 : i32
    %c0_i32_0 = arith.constant 0 : i32
    %c0_i32_1 = arith.constant 0 : i32
    return %c0_i32, %c0_i32_0 : i32, i32
  }
  func.func @transform_4(%arg0: i32) -> (i32, i32) {
    %c0_i32 = arith.constant 0 : i32
    %c0_i32_0 = arith.constant 0 : i32
    %c0_i32_1 = arith.constant 0 : i32
    return %c0_i32, %c0_i32_0 : i32, i32
  }
  func.func @transform_5(%arg0: i32) -> (i32, i32) {
    %c0_i32 = arith.constant 0 : i32
    %c0_i32_0 = arith.constant 0 : i32
    %c0_i32_1 = arith.constant 0 : i32
    return %c0_i32, %c0_i32_0 : i32, i32
  }
  func.func @transform_6(%arg0: i32) -> (i32, i32) {
    %c0_i32 = arith.constant 0 : i32
    %c0_i32_0 = arith.constant 0 : i32
    %c0_i32_1 = arith.constant 0 : i32
    return %c0_i32, %c0_i32_0 : i32, i32
  }
  func.func @transform_7(%arg0: i32) -> (i32, i32, i32) {
    %c0_i32 = arith.constant 0 : i32
    %c0_i32_0 = arith.constant 0 : i32
    %c0_i32_1 = arith.constant 0 : i32
    return %arg0, %c0_i32, %c0_i32_0 : i32, i32, i32
  }
  func.func @transform_8(%arg0: i32) -> (i32, i32, i32) {
    %c0_i32 = arith.constant 0 : i32
    %0 = arith.subi %c0_i32, %arg0 : i32
    %c0_i32_0 = arith.constant 0 : i32
    %c0_i32_1 = arith.constant 0 : i32
    %c0_i32_2 = arith.constant 0 : i32
    return %0, %c0_i32_0, %c0_i32_1 : i32, i32, i32
  }
}

</mosaic_0001>

<bundles_post_ra>
// kernel: tpu_custom_call.1
= control target key start
LH: loop header
LB: loop body
LE: loop exit
PB: predicated region body
PF: predicated region fallthrough
CT: control target
= control target key end

     0   :  { %14 = vsyncpa [#allocation7], 0  ;;  %s7275_s0 = inlined_call_operand.hbm [shape: bf16[8,16,32], index: 0, kind: input, shape index: {}]   ;;  %s7276_s1 = inlined_call_operand.hbm [shape: bf16[8,16,32], index: 1, kind: input, shape index: {}]   ;;  %s7277_s2 = inlined_call_operand.hbm [shape: bf16[32,512], index: 2, kind: input, shape index: {}]   ;;  %s7278_s3 = inlined_call_operand.hbm [shape: bf16[32,512], index: 3, kind: input, shape index: {}]   ;;  %s7279_s4 = inlined_call_operand.hbm [shape: bf16[128,512], index: 4, kind: input, shape index: {}]   ;;  %s7280_s5 = inlined_call_operand.hbm [shape: bf16[128,512], index: 5, kind: input, shape index: {}]   ;;  %s7281_s6 = inlined_call_operand.hbm [shape: f32[2,512], index: 6, kind: input, shape index: {}]   ;;  %s7282_s7 = inlined_call_operand.hbm [shape: bf16[8,16,128], index: 7, kind: output, shape index: {0}]   ;;  %s7283_s8 = inlined_call_operand.hbm [shape: bf16[8,16,128], index: 8, kind: output, shape index: {1}]  }
   0x1   :  { %15 = vsyncpa [#allocation10], 0 }
   0x2   :  { %16 = vsyncpa [#allocation13], 0 }
   0x3   :  { %17 = vsyncpa [#allocation16], 0 }
   0x4   :  { %18 = vsyncpa [#allocation8], 0 }
   0x5   :  { %19 = vsyncpa [#allocation20], 0  ;;  %s5817_s27 = smov [#allocation9]   ;;  %s5607_s9 = scalar_lea.hbm %s7276_s1, 1024 }
   0x6   :  { %s42_s28 = sshll.u32 %s5817_s27, 4  ;;  %p5608_p0 = scmp.ne.s32.totalorder %s7276_s1, %s5607_s9  ;;  %s43_s28 = int_to_ptr.vmem [resolvable:$true] %s42_s28 }
   0x7   :  { %p5611_p1 = scmp.lt.u32.totalorder %s5607_s9, %s7276_s1 }
   0x9   :  { %p5613_p2 = pnand %p5611_p1, %p5608_p0 }
   0xb   :  { %5616 = shalt.err (!%p5613_p2)
}
   0xc   :  { %s5617_s14 = scalar_lea.vmem %s43_s28, 1024  ;;  %p5622_p4 = scmp.lt.s32.totalorder %s43_s28, %s43_s28 }
   0xd   :  { %p5618_p3 = scmp.ne.s32.totalorder %s43_s28, %s5617_s14  ;;  %p5623_p5 = scmp.lt.s32.totalorder %s5617_s14, %s5617_s14 }
   0xf   :  { %p5624_p6 = por %p5623_p5, %p5622_p4 }
  0x11   :  { %p5625_p7 = pnand %p5624_p6, %p5618_p3 }
  0x13   :  { %5628 = shalt.err (!%p5625_p7)
}
  0x14   :  { %s5818_s15 = smov 64   ;;  %s5819_s16 = smov 4  }
  0x15   :  { %48 = dma.hbm_to_vmem [thread:$0]  %s7276_s1, 1024, %s43_s28, [#allocation10], %s5818_s15, %s5818_s15, %s5819_s16  }
  0x16   :  { %s5820_s19 = smov [#allocation12]   ;;  %s5821_s21 = smov [#allocation15]  }
  0x17   :  { %s66_s20 = sshll.u32 %s5820_s19, 4  ;;  %s90_s22 = sshll.u32 %s5821_s21, 4  ;;  %s67_s20 = int_to_ptr.vmem [resolvable:$true] %s66_s20  ;;  %s91_s22 = int_to_ptr.vmem [resolvable:$true] %s90_s22 }
  0x18   :  { %s5629_s25 = scalar_lea.hbm %s7278_s3, 1024 }
  0x19   :  { %p5630_p8 = scmp.ne.s32.totalorder %s7278_s3, %s5629_s25  ;;  %p5633_p9 = scmp.lt.u32.totalorder %s5629_s25, %s7278_s3 }
  0x1b   :  { %p5635_p10 = pnand %p5633_p9, %p5630_p8 }
  0x1d   :  { %5638 = shalt.err (!%p5635_p10)
}
  0x1e   :  { %s5639_s1 = scalar_lea.vmem %s67_s20, 1024  ;;  %p5644_p12 = scmp.lt.s32.totalorder %s67_s20, %s67_s20 }
  0x1f   :  { %p5640_p11 = scmp.ne.s32.totalorder %s67_s20, %s5639_s1  ;;  %p5645_p13 = scmp.lt.s32.totalorder %s5639_s1, %s5639_s1 }
  0x21   :  { %p5646_p0 = por %p5645_p13, %p5644_p12 }
  0x23   :  { %p5647_p1 = pnand %p5646_p0, %p5640_p11 }
  0x25   :  { %5650 = shalt.err (!%p5647_p1)
}
  0x26   :  { %s5822_s28 = smov 256   ;;  %s5823_s9 = smov 16  }
  0x27   :  { %72 = dma.hbm_to_vmem [thread:$0]  %s7278_s3, 1024, %s67_s20, [#allocation13], %s5822_s28, %s5822_s28, %s5823_s9  }
  0x28   :  { %s5651_s14 = scalar_lea.hbm %s7280_s5, 4096 }
  0x29   :  { %p5652_p2 = scmp.ne.s32.totalorder %s7280_s5, %s5651_s14  ;;  %p5655_p3 = scmp.lt.u32.totalorder %s5651_s14, %s7280_s5 }
  0x2b   :  { %p5657_p4 = pnand %p5655_p3, %p5652_p2 }
  0x2d   :  { %5660 = shalt.err (!%p5657_p4)
}
  0x2e   :  { %s5661_s23 = scalar_lea.vmem %s91_s22, 4096  ;;  %p5666_p6 = scmp.lt.s32.totalorder %s91_s22, %s91_s22 }
  0x2f   :  { %p5662_p5 = scmp.ne.s32.totalorder %s91_s22, %s5661_s23  ;;  %p5667_p7 = scmp.lt.s32.totalorder %s5661_s23, %s5661_s23 }
  0x31   :  { %p5668_p8 = por %p5667_p7, %p5666_p6 }
  0x33   :  { %p5669_p9 = pnand %p5668_p8, %p5662_p5 }
  0x35   :  { %5672 = shalt.err (!%p5669_p9)
}
  0x36   :  { %96 = dma.hbm_to_vmem [thread:$0]  %s7280_s5, 4096, %s91_s22, [#allocation16], %s5822_s28, %s5822_s28, %s5823_s9  }
  0x37   :  { %s5824_s24 = smov [#allocation6]   ;;  %s5825_s26 = smov [#allocation11]  }
  0x38   :  { %s25_s25 = sshll.u32 %s5824_s24, 4  ;;  %s54_s27 = sshll.u32 %s5825_s26, 4  ;;  %s26_s25 = int_to_ptr.vmem [resolvable:$true] %s25_s25  ;;  %s55_s27 = int_to_ptr.vmem [resolvable:$true] %s54_s27 }
  0x39   :  { %s5673_s1 = scalar_lea.hbm %s7275_s0, 1024 }
  0x3a   :  { %p5674_p10 = scmp.ne.s32.totalorder %s7275_s0, %s5673_s1  ;;  %p5677_p11 = scmp.lt.u32.totalorder %s5673_s1, %s7275_s0 }
  0x3c   :  { %p5679_p12 = pnand %p5677_p11, %p5674_p10 }
  0x3e   :  { %5682 = shalt.err (!%p5679_p12)
}
  0x3f   :  { %s5683_s5 = scalar_lea.vmem %s26_s25, 1024  ;;  %p5688_p0 = scmp.lt.s32.totalorder %s26_s25, %s26_s25 }
  0x40   :  { %p5684_p13 = scmp.ne.s32.totalorder %s26_s25, %s5683_s5  ;;  %p5689_p1 = scmp.lt.s32.totalorder %s5683_s5, %s5683_s5 }
  0x42   :  { %p5690_p2 = por %p5689_p1, %p5688_p0 }
  0x44   :  { %p5691_p3 = pnand %p5690_p2, %p5684_p13 }
  0x46   :  { %5694 = shalt.err (!%p5691_p3)
}
  0x47   :  { %31 = dma.hbm_to_vmem [thread:$0]  %s7275_s0, 1024, %s26_s25, [#allocation7], %s5818_s15, %s5818_s15, %s5819_s16  }
  0x48   :  { %s5695_s19 = scalar_lea.hbm %s7277_s2, 1024 }
  0x49   :  { %p5696_p4 = scmp.ne.s32.totalorder %s7277_s2, %s5695_s19  ;;  %p5699_p5 = scmp.lt.u32.totalorder %s5695_s19, %s7277_s2 }
  0x4b   :  { %p5701_p6 = pnand %p5699_p5, %p5696_p4 }
  0x4d   :  { %5704 = shalt.err (!%p5701_p6)
}
  0x4e   :  { %s5705_s24 = scalar_lea.vmem %s55_s27, 1024  ;;  %p5710_p8 = scmp.lt.s32.totalorder %s55_s27, %s55_s27 }
  0x4f   :  { %p5706_p7 = scmp.ne.s32.totalorder %s55_s27, %s5705_s24  ;;  %p5711_p9 = scmp.lt.s32.totalorder %s5705_s24, %s5705_s24 }
  0x51   :  { %p5712_p10 = por %p5711_p9, %p5710_p8 }
  0x53   :  { %p5713_p11 = pnand %p5712_p10, %p5706_p7 }
  0x55   :  { %5716 = shalt.err (!%p5713_p11)
}
  0x56   :  { %60 = dma.hbm_to_vmem [thread:$0]  %s7277_s2, 1024, %s55_s27, [#allocation10], %s5822_s28, %s5822_s28, %s5823_s9  }
  0x57   :  { %s5826_s26 = smov [#allocation14]   ;;  %s5827_s30 = smov [#allocation17]  }
  0x58   :  { %s78_s29 = sshll.u32 %s5826_s26, 4  ;;  %s103_s1 = sshll.u32 %s5827_s30, 4  ;;  %s79_s29 = int_to_ptr.vmem [resolvable:$true] %s78_s29  ;;  %s104_s1 = int_to_ptr.vmem [resolvable:$true] %s103_s1 }
  0x59   :  { %s5717_s12 = scalar_lea.hbm %s7279_s4, 4096 }
  0x5a   :  { %p5718_p12 = scmp.ne.s32.totalorder %s7279_s4, %s5717_s12  ;;  %p5721_p13 = scmp.lt.u32.totalorder %s5717_s12, %s7279_s4 }
  0x5c   :  { %p5723_p0 = pnand %p5721_p13, %p5718_p12 }
  0x5e   :  { %5726 = shalt.err (!%p5723_p0)
}
  0x5f   :  { %s5727_s2 = scalar_lea.vmem %s79_s29, 4096  ;;  %p5732_p2 = scmp.lt.s32.totalorder %s79_s29, %s79_s29 }
  0x60   :  { %p5728_p1 = scmp.ne.s32.totalorder %s79_s29, %s5727_s2  ;;  %p5733_p3 = scmp.lt.s32.totalorder %s5727_s2, %s5727_s2 }
  0x62   :  { %p5734_p4 = por %p5733_p3, %p5732_p2 }
  0x64   :  { %p5735_p5 = pnand %p5734_p4, %p5728_p1 }
  0x66   :  { %5738 = shalt.err (!%p5735_p5)
}
  0x67   :  { %84 = dma.hbm_to_vmem [thread:$0]  %s7279_s4, 4096, %s79_s29, [#allocation13], %s5822_s28, %s5822_s28, %s5823_s9  }
  0x68   :  { %s5739_s21 = scalar_lea.hbm %s7281_s6, 128 }
  0x69   :  { %p5740_p6 = scmp.ne.s32.totalorder %s7281_s6, %s5739_s21  ;;  %p5743_p7 = scmp.lt.u32.totalorder %s5739_s21, %s7281_s6 }
  0x6b   :  { %p5745_p8 = pnand %p5743_p7, %p5740_p6 }
  0x6d   :  { %5748 = shalt.err (!%p5745_p8)
}
  0x6e   :  { %s5749_s0 = scalar_lea.vmem %s104_s1, 128  ;;  %p5754_p10 = scmp.lt.s32.totalorder %s104_s1, %s104_s1 }
  0x6f   :  { %p5750_p9 = scmp.ne.s32.totalorder %s104_s1, %s5749_s0  ;;  %p5755_p11 = scmp.lt.s32.totalorder %s5749_s0, %s5749_s0 }
  0x71   :  { %p5756_p12 = por %p5755_p11, %p5754_p10 }
  0x73   :  { %p5757_p13 = pnand %p5756_p12, %p5750_p9 }
  0x75   :  { %5760 = shalt.err (!%p5757_p13)
}
  0x76   :  { %106 = dma.hbm_to_vmem [thread:$0]  %s7281_s6, 128, %s104_s1, [#allocation16]  }
  0x77   :  { %5805 = dma.done.wait [#allocation7], 1024  }
  0x78   :  { %5806 = vsyncadd [#allocation7], 4294966272 }
  0x79   :  { %5807 = dma.done.wait [#allocation10], 2048  }
  0x7a   :  { %5808 = vsyncadd [#allocation10], 4294965248 }
  0x7b   :  { %5809 = dma.done.wait [#allocation13], 5120  }
  0x7c   :  { %5810 = vsyncadd [#allocation13], 4294962176 }
  0x7d   :  { %5811 = dma.done.wait [#allocation16], 4224  }
  0x7e   :  { %5812 = vsyncadd [#allocation16], 4294963072  ;;  %v7284_v0 = vmov 0   ;;  %v4831_v1 = vld [vmem:[#allocation11 + $0x4] ss:$16 sps:$4 sm:$0xff]   ;;  %vm252_vm0 = vcmask 261120  }
  0x7f   :  { %309 = vmatprep.mubr.bf16.mxu0 %v7284_v0  ;;  %422 = vmatprep.mubr.bf16.mxu1 %v7284_v0  ;;  %v4833_v2 = vld [vmem:[#allocation11 + $0xc] ss:$16 sps:$4 sm:$0xff]   ;;  %v4835_v3 = vld [vmem:[#allocation11] ss:$16 sps:$4 sm:$0xff]   ;;  %v4836_v4 = vld [vmem:[#allocation11 + $0x8] ss:$16 sps:$4 sm:$0xff]  }
  0x80   :  { %277 = vmatprep.subr.bf16.mxu0 %v4831_v1  ;;  %390 = vmatprep.subr.bf16.mxu1 %v4833_v2  ;;  %v4837_v5 = vld [vmem:[#allocation11 + $0x24] ss:$16 sps:$4 sm:$0xff]   ;;  %v4839_v6 = vld [vmem:[#allocation11 + $0x2c] ss:$16 sps:$4 sm:$0xff]   ;;  %v4841_v7 = vld [vmem:[#allocation11 + $0x20] ss:$16 sps:$4 sm:$0xff]  }
  0x81   :  { %278 = vmatpush1.bf16.msra.mxu0 %v4835_v3  ;;  %391 = vmatpush1.bf16.msra.mxu1 %v4836_v4  ;;  %v4842_v8 = vld [vmem:[#allocation11 + $0x28] ss:$16 sps:$4 sm:$0xff]   ;;  %v4843_v9 = vld [vmem:[#allocation6] sm:$0xff]   ;;  %v4850_v12 = vld [vmem:[#allocation12 + $0xc] ss:$16 sps:$4 sm:$0xff]   ;;  %s5830_s6 = smov [#allocation18]  }
  0x82   :  { %279 = vmatprep.subr.bf16.mxu0 %v4837_v5  ;;  %392 = vmatprep.subr.bf16.mxu1 %v4839_v6  ;;  %v4846_v10 = vld [vmem:[#allocation12 + $0x4] ss:$16 sps:$4 sm:$0xff]   ;;  %v4844_v11 = vld [vmem:[#allocation12] ss:$16 sps:$4 sm:$0xff]   ;;  %v4848_v13 = vld [vmem:[#allocation12 + $0x8] ss:$16 sps:$4 sm:$0xff]  }
  0x83   :  { %v4854_v14 = vld [vmem:[#allocation12 + $0x20] ss:$16 sps:$4 sm:$0xff]   ;;  %v4856_v15 = vld [vmem:[#allocation12 + $0x24] ss:$16 sps:$4 sm:$0xff]   ;;  %v4847_v16 = vld [vmem:[#allocation6 + $0x8] sm:$0xff]   ;;  %s4152_s9 = sshll.u32 %s5830_s6, 4  ;;  %s4153_s9 = int_to_ptr.vmem [resolvable:$true] %s4152_s9 }
  0x84   :  { %v4860_v17 = vld [vmem:[#allocation12 + $0x2c] ss:$16 sps:$4 sm:$0xff]   ;;  %v4858_v18 = vld [vmem:[#allocation12 + $0x28] ss:$16 sps:$4 sm:$0xff]   ;;  %v5989_v19 = vld [vmem:[#allocation14 + $0x4] ss:$16 sps:$4 sm:$0xff]   ;;  %p5766_p1 = scmp.lt.s32.totalorder %s4153_s9, %s4153_s9 }
  0x85   :  { %280 = vmatpush1.bf16.msra.mxu0 %v4841_v7  ;;  %393 = vmatpush1.bf16.msra.mxu1 %v4842_v8  ;;  %v4851_v20 = vld [vmem:[#allocation6 + $0x10] sm:$0xff]   ;;  %v5992_v21 = vld [vmem:[#allocation14 + $0xc] ss:$16 sps:$4 sm:$0xff]   ;;  %v4853_v23 = vld [vmem:[#allocation6 + $0x20] sm:$0xff]   ;;  %v7286_v8 = vmov 0.0|0.0   ;;  %s5761_s25 = scalar_lea.vmem %s4153_s9, 1024 }
  0x86   :  { %780 = vmatprep.subr.bf16.mxu0 %v4846_v10  ;;  %893 = vmatprep.subr.bf16.mxu1 %v4850_v12  ;;  %v4852_v22 = vld [vmem:[#allocation6 + $0x18] sm:$0xff]   ;;  %v4857_v24 = vld [vmem:[#allocation6 + $0x28] sm:$0xff]   ;;  %v4861_v25 = vld [vmem:[#allocation6 + $0x30] sm:$0xff]   ;;  %p5762_p0 = scmp.ne.s32.totalorder %s4153_s9, %s5761_s25  ;;  %p5767_p2 = scmp.lt.s32.totalorder %s5761_s25, %s5761_s25 }
  0x87   :  { %v4862_v26 = vld [vmem:[#allocation6 + $0x38] sm:$0xff]   ;;  %v4863_v27 = vld [vmem:[#allocation9] sm:$0xff]   ;;  %v4867_v35 = vld [vmem:[#allocation9 + $0x8] sm:$0xff]  }
  0x88   :  { %4208 = vmatmul.mubr.msk.bf16.vlgmr.msra.gmra.mrb[0].mxu0 %vm252_vm0, %v4843_v9  ;;  %4216 = vmatmul.mubr.msk.bf16.vlgmr.msra.gmra.mrb[0].mxu1 %vm252_vm0, %v4843_v9  ;;  %v6019_v28 = vld [vmem:[#allocation14] ss:$16 sps:$4 sm:$0xff]   ;;  %v6021_v29 = vld [vmem:[#allocation14 + $0x24] ss:$16 sps:$4 sm:$0xff]   ;;  %v6023_v30 = vld [vmem:[#allocation14 + $0x8] ss:$16 sps:$4 sm:$0xff]   ;;  %p5768_p3 = por %p5767_p2, %p5766_p1 }
  0x89   :  { %781 = vmatpush1.bf16.msra.mxu0 %v4844_v11  ;;  %319 = vmatprep.mubr.bf16.mxu0 %v7284_v0  ;;  %v6027_v31 = vld [vmem:[#allocation14 + $0x2c] ss:$16 sps:$4 sm:$0xff]   ;;  %v6031_v32 = vld [vmem:[#allocation14 + $0x20] ss:$16 sps:$4 sm:$0xff]   ;;  %v6035_v33 = vld [vmem:[#allocation14 + $0x44] ss:$16 sps:$4 sm:$0xff]  }
  0x8a   :  { %432 = vmatprep.mubr.bf16.mxu1 %v7284_v0  ;;  %894 = vmatpush1.bf16.msra.mxu1 %v4848_v13  ;;  %v6038_v34 = vld [vmem:[#allocation14 + $0x28] ss:$16 sps:$4 sm:$0xff]   ;;  %v6043_v36 = vld [vmem:[#allocation14 + $0x40] ss:$16 sps:$4 sm:$0xff]   ;;  %v6045_v37 = vld [vmem:[#allocation14 + $0x4c] ss:$16 sps:$4 sm:$0xff]   ;;  %p5769_p4 = pnand %p5768_p3, %p5762_p0 }
  0x8b   :  { %782 = vmatprep.subr.bf16.mxu0 %v4856_v15  ;;  %895 = vmatprep.subr.bf16.mxu1 %v4860_v17  ;;  %7401 = vst [vmem:[#allocation27_spill] sm:$0xff] %v6043_v36  ;;  %v6047_v38 = vld [vmem:[#allocation14 + $0x64] ss:$16 sps:$4 sm:$0xff]   ;;  %v6050_v39 = vld [vmem:[#allocation14 + $0x48] ss:$16 sps:$4 sm:$0xff]  }
  0x8c   :  { %7402 = vst [vmem:[#allocation28_spill] sm:$0xff] %v6047_v38  ;;  %7403 = vst [vmem:[#allocation29_spill] sm:$0xff] %v6050_v39  ;;  %v6054_v40 = vld [vmem:[#allocation14 + $0x6c] ss:$16 sps:$4 sm:$0xff]   ;;  %v6059_v41 = vld [vmem:[#allocation14 + $0x60] ss:$16 sps:$4 sm:$0xff]  }
  0x8d   :  { %783 = vmatpush1.bf16.msra.mxu0 %v4854_v14  ;;  %7404 = vst [vmem:[#allocation30_spill] sm:$0xff] %v6054_v40  ;;  %7405 = vst [vmem:[#allocation31_spill] sm:$0xff] %v6059_v41  ;;  %v6063_v42 = vld [vmem:[#allocation14 + $0x84] ss:$16 sps:$4 sm:$0xff]   ;;  %v6066_v43 = vld [vmem:[#allocation14 + $0x68] ss:$16 sps:$4 sm:$0xff]  }
  0x8e   :  { %896 = vmatpush1.bf16.msra.mxu1 %v4858_v18  ;;  %1398 = vmatprep.subr.bf16.mxu0 %v5989_v19  ;;  %7406 = vst [vmem:[#allocation32_spill] sm:$0xff] %v6063_v42  ;;  %7407 = vst [vmem:[#allocation33_spill] sm:$0xff] %v6066_v43  ;;  %v4873_v44 = vld [vmem:[#allocation9 + $0x10] sm:$0xff]   ;;  %v6072_v46 = vld [vmem:[#allocation14 + $0x8c] ss:$16 sps:$4 sm:$0xff]  }
  0x8f   :  { %1441 = vmatprep.subr.bf16.mxu1 %v5992_v21  ;;  %v6070_v45 = vld [vmem:[#allocation14 + $0x80] ss:$16 sps:$4 sm:$0xff]   ;;  %7409 = vst [vmem:[#allocation35_spill] sm:$0xff] %v6072_v46  ;;  %v6075_v47 = vld [vmem:[#allocation14 + $0xa4] ss:$16 sps:$4 sm:$0xff]   ;;  %v4880_v53 = vld [vmem:[#allocation9 + $0x18] sm:$0xff]  }
  0x90   :  { %4209 = vmatmul.mubr.msk.bf16.gmra.mrb[4].mxu0 %vm252_vm0, %v4847_v16  ;;  %4217 = vmatmul.mubr.msk.bf16.gmra.mrb[4].mxu1 %vm252_vm0, %v4847_v16  ;;  %7408 = vst [vmem:[#allocation34_spill] sm:$0xff] %v6070_v45  ;;  %7410 = vst [vmem:[#allocation36_spill] sm:$0xff] %v6075_v47  ;;  %v6078_v48 = vld [vmem:[#allocation14 + $0x88] ss:$16 sps:$4 sm:$0xff]   ;;  %v6082_v49 = vld [vmem:[#allocation14 + $0xac] ss:$16 sps:$4 sm:$0xff]  }
  0x91   :  { %329 = vmatprep.mubr.bf16.mxu0 %v7284_v0  ;;  %442 = vmatprep.mubr.bf16.mxu1 %v7284_v0  ;;  %7411 = vst [vmem:[#allocation37_spill] sm:$0xff] %v6078_v48  ;;  %7412 = vst [vmem:[#allocation38_spill] sm:$0xff] %v6082_v49  ;;  %v6087_v50 = vld [vmem:[#allocation14 + $0xa0] ss:$16 sps:$4 sm:$0xff]   ;;  %v6091_v51 = vld [vmem:[#allocation14 + $0xc4] ss:$16 sps:$4 sm:$0xff]  }
  0x92   :  { %7413 = vst [vmem:[#allocation39_spill] sm:$0xff] %v6087_v50  ;;  %7414 = vst [vmem:[#allocation40_spill] sm:$0xff] %v6091_v51  ;;  %v6094_v52 = vld [vmem:[#allocation14 + $0xa8] ss:$16 sps:$4 sm:$0xff]   ;;  %v6098_v54 = vld [vmem:[#allocation14 + $0xc0] ss:$16 sps:$4 sm:$0xff]  }
  0x93   :  { %7415 = vst [vmem:[#allocation41_spill] sm:$0xff] %v6094_v52  ;;  %7416 = vst [vmem:[#allocation42_spill] sm:$0xff] %v6098_v54  ;;  %v6100_v55 = vld [vmem:[#allocation14 + $0xcc] ss:$16 sps:$4 sm:$0xff]   ;;  %v6104_v56 = vld [vmem:[#allocation14 + $0xe4] ss:$16 sps:$4 sm:$0xff]  }
  0x94   :  { %7417 = vst [vmem:[#allocation43_spill] sm:$0xff] %v6100_v55  ;;  %7418 = vst [vmem:[#allocation44_spill] sm:$0xff] %v6104_v56  ;;  %v6106_v57 = vld [vmem:[#allocation14 + $0xc8] ss:$16 sps:$4 sm:$0xff]   ;;  %v6110_v58 = vld [vmem:[#allocation14 + $0xec] ss:$16 sps:$4 sm:$0xff]  }
  0x95   :  { %7419 = vst [vmem:[#allocation45_spill] sm:$0xff] %v6106_v57  ;;  %7420 = vst [vmem:[#allocation46_spill] sm:$0xff] %v6110_v58  ;;  %v6116_v59 = vld [vmem:[#allocation14 + $0xe0] ss:$16 sps:$4 sm:$0xff]   ;;  %v6120_v60 = vld [vmem:[#allocation14 + $0xe8] ss:$16 sps:$4 sm:$0xff]  }
  0x96   :  { %7421 = vst [vmem:[#allocation47_spill] sm:$0xff] %v6116_v59  ;;  %7422 = vst [vmem:[#allocation48_spill] sm:$0xff] %v6120_v60  ;;  %v6122_v61 = vld [vmem:[#allocation15 + $0x4] ss:$16 sps:$4 sm:$0xff]   ;;  %v6126_v63 = vld [vmem:[#allocation15 + $0xc] ss:$16 sps:$4 sm:$0xff]  }
  0x97   :  { %7423 = vst [vmem:[#allocation49_spill] sm:$0xff] %v6122_v61  ;;  %v4887_v62 = vld [vmem:[#allocation9 + $0x20] sm:$0xff]   ;;  %7424 = vst [vmem:[#allocation50_spill] sm:$0xff] %v6126_v63  ;;  %v4894_v1 = vld [vmem:[#allocation9 + $0x28] sm:$0xff]  }
  0x98   :  { %4210 = vmatmul.mubr.msk.bf16.gmra.mrb[8].mxu0 %vm252_vm0, %v4851_v20  ;;  %4218 = vmatmul.mubr.msk.bf16.gmra.mrb[8].mxu1 %vm252_vm0, %v4851_v20  ;;  %v4901_v2 = vld [vmem:[#allocation9 + $0x30] sm:$0xff]   ;;  %v4911_v3 = vld [vmem:[#allocation9 + $0x38] sm:$0xff]  }
  0x99   :  { %339 = vmatprep.mubr.bf16.mxu0 %v7284_v0  ;;  %452 = vmatprep.mubr.bf16.mxu1 %v7284_v0  ;;  %v6147_v4 = vld [vmem:[#allocation15] ss:$16 sps:$4 sm:$0xff]   ;;  %v6149_v5 = vld [vmem:[#allocation15 + $0x8] ss:$16 sps:$4 sm:$0xff]   ;;  %v6151_v6 = vld [vmem:[#allocation15 + $0x24] ss:$16 sps:$4 sm:$0xff]  }
  0x9a   :  { %v6153_v7 = vld [vmem:[#allocation15 + $0x2c] ss:$16 sps:$4 sm:$0xff]   ;;  %v6159_v9 = vld [vmem:[#allocation15 + $0x20] ss:$16 sps:$4 sm:$0xff]   ;;  %v6161_v10 = vld [vmem:[#allocation15 + $0x28] ss:$16 sps:$4 sm:$0xff]  }
  0x9b   :  { %v6165_v11 = vld [vmem:[#allocation15 + $0x44] ss:$16 sps:$4 sm:$0xff]   ;;  %v6167_v12 = vld [vmem:[#allocation15 + $0x4c] ss:$16 sps:$4 sm:$0xff]   ;;  %v6173_v13 = vld [vmem:[#allocation15 + $0x40] ss:$16 sps:$4 sm:$0xff]  }
  0x9c   :  { %v6175_v14 = vld [vmem:[#allocation15 + $0x48] ss:$16 sps:$4 sm:$0xff]   ;;  %v6179_v15 = vld [vmem:[#allocation15 + $0x64] ss:$16 sps:$4 sm:$0xff]   ;;  %v6181_v16 = vld [vmem:[#allocation15 + $0x6c] ss:$16 sps:$4 sm:$0xff]  }
  0x9d   :  { %v6185_v17 = vld [vmem:[#allocation15 + $0x60] ss:$16 sps:$4 sm:$0xff]   ;;  %v6187_v18 = vld [vmem:[#allocation15 + $0x68] ss:$16 sps:$4 sm:$0xff]   ;;  %v6191_v20 = vld [vmem:[#allocation15 + $0x84] ss:$16 sps:$4 sm:$0xff]  }
  0xa0   :  { %4211 = vmatmul.mubr.msk.bf16.gmra.mrb[12].mxu0 %vm252_vm0, %v4852_v22  ;;  %4219 = vmatmul.mubr.msk.bf16.gmra.mrb[12].mxu1 %vm252_vm0, %v4852_v22  ;;  %v6193_v22 = vld [vmem:[#allocation15 + $0x8c] ss:$16 sps:$4 sm:$0xff]  }
  0xa1   :  { %349 = vmatprep.mubr.bf16.mxu0 %v7284_v0  ;;  %462 = vmatprep.mubr.bf16.mxu1 %v7284_v0 }
  0xa8   :  { %4212 = vmatmul.mubr.msk.bf16.gmra.mrb[16].mxu0 %vm252_vm0, %v4853_v23  ;;  %4220 = vmatmul.mubr.msk.bf16.gmra.mrb[16].mxu1 %vm252_vm0, %v4853_v23  ;;  %v6197_v23 = vld [vmem:[#allocation15 + $0x80] ss:$16 sps:$4 sm:$0xff]  }
  0xa9   :  { %359 = vmatprep.mubr.bf16.mxu0 %v7284_v0  ;;  %472 = vmatprep.mubr.bf16.mxu1 %v7284_v0 }
  0xb0   :  { %4213 = vmatmul.mubr.msk.bf16.gmra.mrb[20].mxu0 %vm252_vm0, %v4857_v24  ;;  %4221 = vmatmul.mubr.msk.bf16.gmra.mrb[20].mxu1 %vm252_vm0, %v4857_v24  ;;  %v6199_v24 = vld [vmem:[#allocation15 + $0x88] ss:$16 sps:$4 sm:$0xff]  }
  0xb1   :  { %369 = vmatprep.mubr.bf16.mxu0 %v7284_v0  ;;  %482 = vmatprep.mubr.bf16.mxu1 %v7284_v0 }
  0xb8   :  { %4214 = vmatmul.mubr.msk.bf16.gmra.mrb[24].mxu0 %vm252_vm0, %v4861_v25  ;;  %4222 = vmatmul.mubr.msk.bf16.gmra.mrb[24].mxu1 %vm252_vm0, %v4861_v25  ;;  %v6203_v25 = vld [vmem:[#allocation15 + $0xa4] ss:$16 sps:$4 sm:$0xff]  }
  0xb9   :  { %379 = vmatprep.mubr.bf16.mxu0 %v7284_v0  ;;  %492 = vmatprep.mubr.bf16.mxu1 %v7284_v0 }
  0xc0   :  { %4215 = vmatmul.mubr.msk.bf16.gmra.mrb[28].mxu0 %vm252_vm0, %v4862_v26  ;;  %4223 = vmatmul.mubr.msk.bf16.gmra.mrb[28].mxu1 %vm252_vm0, %v4862_v26  ;;  %v6205_v26 = vld [vmem:[#allocation15 + $0xac] ss:$16 sps:$4 sm:$0xff]  }
  0xc1   :  { %812 = vmatprep.mubr.bf16.mxu0 %v7284_v0  ;;  %925 = vmatprep.mubr.bf16.mxu1 %v7284_v0 }
  0xc8   :  { %4240 = vmatmul.mubr.msk.bf16.vlgmr.msra.gmra.mrb[32].mxu0 %vm252_vm0, %v4863_v27  ;;  %4248 = vmatmul.mubr.msk.bf16.vlgmr.msra.gmra.mrb[32].mxu1 %vm252_vm0, %v4863_v27  ;;  %v6209_v27 = vld [vmem:[#allocation15 + $0xa0] ss:$16 sps:$4 sm:$0xff]  }
  0xc9   :  { %1399 = vmatpush1.bf16.msra.mxu0 %v6019_v28  ;;  %822 = vmatprep.mubr.bf16.mxu0 %v7284_v0 }
  0xca   :  { %935 = vmatprep.mubr.bf16.mxu1 %v7284_v0  ;;  %1400 = vmatprep.subr.bf16.mxu0 %v6021_v29 }
  0xcb   :  { %1442 = vmatpush1.bf16.msra.mxu1 %v6023_v30 }
  0xcc   :  { %1443 = vmatprep.subr.bf16.mxu1 %v6027_v31 }
  0xcd   :  { %1401 = vmatpush1.bf16.msra.mxu0 %v6031_v32 }
  0xce   :  { %1402 = vmatprep.subr.bf16.mxu0 %v6035_v33 }
  0xcf   :  { %1444 = vmatpush1.bf16.msra.mxu1 %v6038_v34 }
  0xd0   :  { %4241 = vmatmul.mubr.msk.bf16.gmra.mrb[36].mxu0 %vm252_vm0, %v4867_v35  ;;  %4249 = vmatmul.mubr.msk.bf16.gmra.mrb[36].mxu1 %vm252_vm0, %v4867_v35  ;;  %v6211_v35 = vld [vmem:[#allocation15 + $0xa8] ss:$16 sps:$4 sm:$0xff]  }
  0xd1   :  { %832 = vmatprep.mubr.bf16.mxu0 %v7284_v0  ;;  %945 = vmatprep.mubr.bf16.mxu1 %v7284_v0 }
  0xd2   :  { %1403 = vmatpush1.bf16.msra.mxu0 %v6043_v36  ;;  %1445 = vmatprep.subr.bf16.mxu1 %v6045_v37 }
  0xd3   :  { %1404 = vmatprep.subr.bf16.mxu0 %v6047_v38  ;;  %1446 = vmatpush1.bf16.msra.mxu1 %v6050_v39 }
  0xd4   :  { %1447 = vmatprep.subr.bf16.mxu1 %v6054_v40 }
  0xd6   :  { %1405 = vmatpush1.bf16.msra.mxu0 %v6059_v41 }
  0xd7   :  { %1406 = vmatprep.subr.bf16.mxu0 %v6063_v42  ;;  %1448 = vmatpush1.bf16.msra.mxu1 %v6066_v43 }
  0xd8   :  { %4242 = vmatmul.mubr.msk.bf16.gmra.mrb[40].mxu0 %vm252_vm0, %v4873_v44  ;;  %4250 = vmatmul.mubr.msk.bf16.gmra.mrb[40].mxu1 %vm252_vm0, %v4873_v44  ;;  %v6215_v44 = vld [vmem:[#allocation15 + $0xc4] ss:$16 sps:$4 sm:$0xff]  }
  0xd9   :  { %842 = vmatprep.mubr.bf16.mxu0 %v7284_v0  ;;  %955 = vmatprep.mubr.bf16.mxu1 %v7284_v0 }
  0xda   :  { %1407 = vmatpush1.bf16.msra.mxu0 %v6070_v45  ;;  %1449 = vmatprep.subr.bf16.mxu1 %v6072_v46 }
  0xdb   :  { %1408 = vmatprep.subr.bf16.mxu0 %v6075_v47  ;;  %1450 = vmatpush1.bf16.msra.mxu1 %v6078_v48 }
  0xdc   :  { %1451 = vmatprep.subr.bf16.mxu1 %v6082_v49 }
  0xde   :  { %1409 = vmatpush1.bf16.msra.mxu0 %v6087_v50 }
  0xdf   :  { %1410 = vmatprep.subr.bf16.mxu0 %v6091_v51  ;;  %1452 = vmatpush1.bf16.msra.mxu1 %v6094_v52 }
  0xe0   :  { %4243 = vmatmul.mubr.msk.bf16.gmra.mrb[44].mxu0 %vm252_vm0, %v4880_v53  ;;  %4251 = vmatmul.mubr.msk.bf16.gmra.mrb[44].mxu1 %vm252_vm0, %v4880_v53  ;;  %v6217_v53 = vld [vmem:[#allocation15 + $0xcc] ss:$16 sps:$4 sm:$0xff]  }
  0xe1   :  { %852 = vmatprep.mubr.bf16.mxu0 %v7284_v0  ;;  %965 = vmatprep.mubr.bf16.mxu1 %v7284_v0  ;;  %7425 = vst [vmem:[#allocation51_spill] sm:$0xff] %v6217_v53 }
  0xe2   :  { %1411 = vmatpush1.bf16.msra.mxu0 %v6098_v54  ;;  %1453 = vmatprep.subr.bf16.mxu1 %v6100_v55 }
  0xe3   :  { %1412 = vmatprep.subr.bf16.mxu0 %v6104_v56  ;;  %1454 = vmatpush1.bf16.msra.mxu1 %v6106_v57 }
  0xe4   :  { %1455 = vmatprep.subr.bf16.mxu1 %v6110_v58 }
  0xe6   :  { %1413 = vmatpush1.bf16.msra.mxu0 %v6116_v59 }
  0xe7   :  { %1456 = vmatpush1.bf16.msra.mxu1 %v6120_v60  ;;  %1662 = vmatprep.subr.bf16.mxu0 %v6122_v61 }
  0xe8   :  { %4244 = vmatmul.mubr.msk.bf16.gmra.mrb[48].mxu0 %vm252_vm0, %v4887_v62  ;;  %4252 = vmatmul.mubr.msk.bf16.gmra.mrb[48].mxu1 %vm252_vm0, %v4887_v62  ;;  %v6221_v62 = vld [vmem:[#allocation15 + $0xc0] ss:$16 sps:$4 sm:$0xff]  }
  0xe9   :  { %862 = vmatprep.mubr.bf16.mxu0 %v7284_v0  ;;  %975 = vmatprep.mubr.bf16.mxu1 %v7284_v0 }
  0xea   :  { %1705 = vmatprep.subr.bf16.mxu1 %v6126_v63 }
  0xf0   :  { %4245 = vmatmul.mubr.msk.bf16.gmra.mrb[52].mxu0 %vm252_vm0, %v4894_v1  ;;  %4253 = vmatmul.mubr.msk.bf16.gmra.mrb[52].mxu1 %vm252_vm0, %v4894_v1  ;;  %v6223_v1 = vld [vmem:[#allocation15 + $0xc8] ss:$16 sps:$4 sm:$0xff]  }
  0xf1   :  { %872 = vmatprep.mubr.bf16.mxu0 %v7284_v0  ;;  %985 = vmatprep.mubr.bf16.mxu1 %v7284_v0 }
  0xf8   :  { %4246 = vmatmul.mubr.msk.bf16.gmra.mrb[56].mxu0 %vm252_vm0, %v4901_v2  ;;  %4254 = vmatmul.mubr.msk.bf16.gmra.mrb[56].mxu1 %vm252_vm0, %v4901_v2  ;;  %v6227_v2 = vld [vmem:[#allocation15 + $0xe4] ss:$16 sps:$4 sm:$0xff]  }
  0xf9   :  { %882 = vmatprep.mubr.bf16.mxu0 %v7284_v0  ;;  %995 = vmatprep.mubr.bf16.mxu1 %v7284_v0 }
 0x100   :  { %4247 = vmatmul.mubr.msk.bf16.gmra.mrb[60].mxu0 %vm252_vm0, %v4911_v3  ;;  %4255 = vmatmul.mubr.msk.bf16.gmra.mrb[60].mxu1 %vm252_vm0, %v4911_v3  ;;  %v6229_v3 = vld [vmem:[#allocation15 + $0xec] ss:$16 sps:$4 sm:$0xff]  }
 0x101   :  { %1430 = vmatprep.mubr.bf16.mxu0 %v7284_v0  ;;  %1473 = vmatprep.mubr.bf16.mxu1 %v7284_v0  ;;  %7426 = vst [vmem:[#allocation52_spill] sm:$0xff] %v6229_v3 }
 0x108   :  { %1431 = vmatmul.mubr.bf16.vlgmr.msra.gmra.mrb[0].mxu0 %v7286_v8  ;;  %1474 = vmatmul.mubr.bf16.vlgmr.msra.gmra.mrb[0].mxu1 %v7286_v8  ;;  %v6235_v8 = vld [vmem:[#allocation15 + $0xe8] ss:$16 sps:$4 sm:$0xff]  }
 0x109   :  { %1663 = vmatpush1.bf16.msra.mxu0 %v6147_v4  ;;  %1706 = vmatpush1.bf16.msra.mxu1 %v6149_v5 }
 0x10a   :  { %1664 = vmatprep.subr.bf16.mxu0 %v6151_v6  ;;  %1707 = vmatprep.subr.bf16.mxu1 %v6153_v7 }
 0x10b   :  { %1694 = vmatprep.mubr.bf16.mxu0 %v7284_v0  ;;  %1737 = vmatprep.mubr.bf16.mxu1 %v7284_v0  ;;  %v6233_v0 = vld [vmem:[#allocation15 + $0xe0] ss:$16 sps:$4 sm:$0xff]  }
 0x10d   :  { %1665 = vmatpush1.bf16.msra.mxu0 %v6159_v9  ;;  %1708 = vmatpush1.bf16.msra.mxu1 %v6161_v10 }
 0x10e   :  { %1666 = vmatprep.subr.bf16.mxu0 %v6165_v11  ;;  %1709 = vmatprep.subr.bf16.mxu1 %v6167_v12 }
 0x111   :  { %1667 = vmatpush1.bf16.msra.mxu0 %v6173_v13  ;;  %1710 = vmatpush1.bf16.msra.mxu1 %v6175_v14 }
 0x112   :  { %1668 = vmatprep.subr.bf16.mxu0 %v6179_v15  ;;  %1711 = vmatprep.subr.bf16.mxu1 %v6181_v16 }
 0x115   :  { %1669 = vmatpush1.bf16.msra.mxu0 %v6185_v17  ;;  %1712 = vmatpush1.bf16.msra.mxu1 %v6187_v18 }
 0x116   :  { %1670 = vmatprep.subr.bf16.mxu0 %v6191_v20  ;;  %1713 = vmatprep.subr.bf16.mxu1 %v6193_v22 }
 0x119   :  { %1671 = vmatpush1.bf16.msra.mxu0 %v6197_v23  ;;  %1714 = vmatpush1.bf16.msra.mxu1 %v6199_v24 }
 0x11a   :  { %1672 = vmatprep.subr.bf16.mxu0 %v6203_v25  ;;  %1715 = vmatprep.subr.bf16.mxu1 %v6205_v26 }
 0x11d   :  { %1673 = vmatpush1.bf16.msra.mxu0 %v6209_v27  ;;  %1716 = vmatpush1.bf16.msra.mxu1 %v6211_v35 }
 0x11e   :  { %1674 = vmatprep.subr.bf16.mxu0 %v6215_v44  ;;  %1717 = vmatprep.subr.bf16.mxu1 %v6217_v53  ;;  %v7427_v53 = vmov 0.0|0.0  }
 0x121   :  { %1675 = vmatpush1.bf16.msra.mxu0 %v6221_v62  ;;  %1718 = vmatpush1.bf16.msra.mxu1 %v6223_v1 }
 0x122   :  { %1676 = vmatprep.subr.bf16.mxu0 %v6227_v2  ;;  %1719 = vmatprep.subr.bf16.mxu1 %v6229_v3  ;;  %v7428_v3 = vmov 0  }
 0x125   :  { %1677 = vmatpush1.bf16.msra.mxu0 %v6233_v0  ;;  %1720 = vmatpush1.bf16.msra.mxu1 %v6235_v8 }
 0x126   :  { %1882 = vmatprep.subr.bf16.mxu0 %v5989_v19  ;;  %1925 = vmatprep.subr.bf16.mxu1 %v5992_v21 }
 0x128   :  { %1695 = vmatmul.mubr.bf16.vlgmr.msra.gmra.mrb[60].mxu0 %v7427_v53  ;;  %1738 = vmatmul.mubr.bf16.vlgmr.msra.gmra.mrb[60].mxu1 %v7427_v53  ;;  %v504_v53 = vlaneseq }
 0x129   :  { %1883 = vmatpush1.bf16.msra.mxu0 %v6019_v28  ;;  %1926 = vmatpush1.bf16.msra.mxu1 %v6023_v30 }
 0x12a   :  { %1884 = vmatprep.subr.bf16.mxu0 %v6021_v29  ;;  %1927 = vmatprep.subr.bf16.mxu1 %v6027_v31 }
 0x12b   :  { %1914 = vmatprep.mubr.bf16.mxu0 %v7428_v3  ;;  %1957 = vmatprep.mubr.bf16.mxu1 %v7428_v3 }
 0x12d   :  { %1885 = vmatpush1.bf16.msra.mxu0 %v6031_v32  ;;  %1928 = vmatpush1.bf16.msra.mxu1 %v6038_v34 }
 0x12e   :  { %1886 = vmatprep.subr.bf16.mxu0 %v6035_v33  ;;  %1929 = vmatprep.subr.bf16.mxu1 %v6045_v37 }
 0x131   :  { %1887 = vmatpush1.bf16.msra.mxu0 %v6043_v36  ;;  %1930 = vmatpush1.bf16.msra.mxu1 %v6050_v39 }
 0x132   :  { %1888 = vmatprep.subr.bf16.mxu0 %v6047_v38  ;;  %1931 = vmatprep.subr.bf16.mxu1 %v6054_v40 }
 0x135   :  { %1889 = vmatpush1.bf16.msra.mxu0 %v6059_v41  ;;  %1932 = vmatpush1.bf16.msra.mxu1 %v6066_v43 }
 0x136   :  { %1890 = vmatprep.subr.bf16.mxu0 %v6063_v42  ;;  %1933 = vmatprep.subr.bf16.mxu1 %v6072_v46 }
 0x139   :  { %1891 = vmatpush1.bf16.msra.mxu0 %v6070_v45  ;;  %1934 = vmatpush1.bf16.msra.mxu1 %v6078_v48 }
 0x13a   :  { %1892 = vmatprep.subr.bf16.mxu0 %v6075_v47  ;;  %1935 = vmatprep.subr.bf16.mxu1 %v6082_v49 }
 0x13d   :  { %1893 = vmatpush1.bf16.msra.mxu0 %v6087_v50  ;;  %1936 = vmatpush1.bf16.msra.mxu1 %v6094_v52 }
 0x13e   :  { %1894 = vmatprep.subr.bf16.mxu0 %v6091_v51  ;;  %1937 = vmatprep.subr.bf16.mxu1 %v6100_v55  ;;  %v6279_v51 = vshrl.u32 %v504_v53, 7 }
 0x140   :  { %v506_v55 = vsub.s32 0, %v6279_v51  ;;  %v7319_v45 = vsub.s32 2, %v6279_v51 }
 0x141   :  { %1895 = vmatpush1.bf16.msra.mxu0 %v6098_v54  ;;  %1938 = vmatpush1.bf16.msra.mxu1 %v6106_v57  ;;  %v145_v54 = vld [vmem:[#allocation17] ss:$2 sm:$0xf]  ;;  %v510_v57 = vsub.s32 1, %v6279_v51 }
 0x142   :  { %1896 = vmatprep.subr.bf16.mxu0 %v6104_v56  ;;  %1939 = vmatprep.subr.bf16.mxu1 %v6110_v58  ;;  %v6283_v52 = vrot.slane %v145_v54, %v506_v55 }
 0x143   :  { %v6285_v56 = vrot.slane %v145_v54, %v510_v57 }
 0x144   :  { %7429 = vst [vmem:[#allocation53_spill] sm:$0xff] %v6283_v52 }
 0x145   :  { %1897 = vmatpush1.bf16.msra.mxu0 %v6116_v59  ;;  %1940 = vmatpush1.bf16.msra.mxu1 %v6120_v60  ;;  %7430 = vst [vmem:[#allocation54_spill] sm:$0xff] %v6285_v56  ;;  %v7315_v60 = vsub.s32 3, %v6279_v51 }
 0x146   :  { %1985 = vmatprep.subr.bf16.mxu0 %v6122_v61  ;;  %2028 = vmatprep.subr.bf16.mxu1 %v6126_v63 }
 0x147   :  { %v6294_v40 = vrot.slane %v145_v54, %v7315_v60 }
 0x149   :  { %7431 = vst [vmem:[#allocation55_spill] sm:$0xff] %v6294_v40 }
 0x1db   :  { %v1432_v58 = vpop.f32.mrb[0].mxu0  ;;  %v1475_v59 = vpop.f32.mrb[0].mxu1 }
 0x1dc   :  { %v4560_v61 = vadd.f32 %v1432_v58, %v6283_v52  ;;  %v1434_v50 = vpop.f32.mrb[1].mxu0  ;;  %v1477_v63 = vpop.f32.mrb[1].mxu1 }
 0x1dd   :  { %v4561_v53 = vadd.f32 %v1434_v50, %v6285_v56  ;;  %v1436_v49 = vpop.f32.mrb[2].mxu0  ;;  %v1479_v47 = vpop.f32.mrb[2].mxu1  ;;  %v4593_v39 = vadd.f32 %v1477_v63, %v6294_v40 }
 0x1de   :  { %v4320_v48 = vmul.f32 -1.442695, %v4560_v61  ;;  %v4562_v46 = vadd.f32 %v1436_v49, %v6283_v52  ;;  %v1438_v42 = vpop.f32.mrb[3].mxu0  ;;  %v1481_v43 = vpop.f32.mrb[3].mxu1  ;;  %v6299_v61 = vrot.slane %v145_v54, %v7319_v45 }
 0x1df   :  { %v4322_v41 = vmul.f32 -1.442695, %v4561_v53  ;;  %v4563_v58 = vadd.f32 %v1438_v42, %v6285_v56  ;;  %v4595_v49 = vadd.f32 %v1481_v43, %v6294_v40  ;;  %v4324_v60 = vmul.f32 -1.442695, %v4593_v39 }
 0x1e0   :  { %4967 = vpow2.f32 %v4320_v48  ;;  %v4321_v38 = vmul.f32 -1.442695, %v4562_v46  ;;  %7432 = vst [vmem:[#allocation56_spill] sm:$0xff] %v6299_v61  ;;  %v4592_v53 = vadd.f32 %v1475_v59, %v6299_v61 }
 0x1e1   :  { %4969 = vpow2.f32 %v4322_v41  ;;  %v4323_v50 = vmul.f32 -1.442695, %v4563_v58  ;;  %v4325_v52 = vmul.f32 -1.442695, %v4595_v49  ;;  %v4594_v41 = vadd.f32 %v1479_v47, %v6299_v61 }
 0x1e2   :  { %4971 = vpow2.f32 %v4321_v38  ;;  %v147_v58 = vld [vmem:[#allocation17 + $0x1] ss:$2 sm:$0xf] }
 0x1e3   :  { %4973 = vpow2.f32 %v4323_v50 }
 0x1e4   :  { %4975 = vtanh.f32 %v4592_v53  ;;  %v6305_v53 = vrot.slane %v147_v58, %v506_v55 }
 0x1e5   :  { %4977 = vpow2.f32 %v4324_v60 }
 0x1e6   :  { %4979 = vpow2.f32 %v4325_v52 }
 0x1ea   :  { %v4968_v36 = vpop.eup %4967 }
 0x1eb   :  { %v4970_v42 = vpop.eup %4969  ;;  %v1762_v46 = vadd.f32 1.0, %v4968_v36 }
 0x1ec   :  { %v1774_v48 = vadd.f32 1.0, %v4970_v42  ;;  %v4972_v54 = vpop.eup %4971 }
 0x1ed   :  { %4981 = vrcp.f32 %v1762_v46  ;;  %v1763_v38 = vadd.f32 1.0, %v4972_v54  ;;  %v4974_v63 = vpop.eup %4973  ;;  %v6307_v46 = vrot.slane %v147_v58, %v510_v57 }
 0x1ee   :  { %4983 = vrcp.f32 %v1774_v48  ;;  %v1775_v43 = vadd.f32 1.0, %v4974_v63  ;;  %v4976_v39 = vpop.eup %4975 }
 0x1ef   :  { %4985 = vtanh.f32 %v4594_v41  ;;  %v4978_v59 = vpop.eup %4977  ;;  %7433 = vst [vmem:[#allocation57_spill] sm:$0xff] %v6307_v46 }
 0x1f0   :  { %4987 = vrcp.f32 %v1763_v38  ;;  %v4980_v50 = vpop.eup %4979  ;;  %v1788_v42 = vadd.f32 1.0, %v4978_v59 }
 0x1f1   :  { %4989 = vrcp.f32 %v1775_v43  ;;  %v1789_v54 = vadd.f32 1.0, %v4980_v50 }
 0x1f2   :  { %4991 = vrcp.f32 %v1788_v42 }
 0x1f3   :  { %4993 = vrcp.f32 %v1789_v54  ;;  %v7435_v54 = vsub.s32 2, %v6279_v51 }
 0x1f7   :  { %v4982_v49 = vpop.eup %4981 }
 0x1f8   :  { %v4984_v36 = vpop.eup %4983  ;;  %v1796_v60 = vmul.f32 %v4982_v49, %v4976_v39 }
 0x1f9   :  { %v4986_v47 = vpop.eup %4985  ;;  %v1794_v52 = vmul.f32 0.0, %v4984_v36 }
 0x1fa   :  { %v4988_v48 = vpop.eup %4987 }
 0x1fb   :  { %v6309_v41 = vadd.f32 %v1796_v60, %v1794_v52  ;;  %v1797_v38 = vmul.f32 %v4988_v48, %v4986_v47  ;;  %v1696_v63 = vpop.f32.mrb[60].mxu0  ;;  %v1739_v43 = vpop.f32.mrb[60].mxu1 }
 0x1fc   :  { %v4990_v45 = vpop.eup %4989  ;;  %v4652_v61 = vadd.f32 %v1696_v63, %v6305_v53  ;;  %v1698_v40 = vpop.f32.mrb[61].mxu0  ;;  %v6325_v63 = vrot.slane %v147_v58, %v7435_v54 }
 0x1fd   :  { %v1741_v56 = vpop.f32.mrb[61].mxu1  ;;  %v1795_v55 = vmul.f32 0.0, %v4990_v45  ;;  %v4653_v39 = vadd.f32 %v1698_v40, %v6307_v46  ;;  %v1700_v49 = vpop.f32.mrb[62].mxu0  ;;  %4995 = vtanh.f32 %v6309_v41  ;;  %v7434_v45 = vsub.s32 3, %v6279_v51 }
 0x1fe   :  { %v1743_v59 = vpop.f32.mrb[62].mxu1  ;;  %v4326_v57 = vmul.f32 -1.442695, %v4652_v61  ;;  %v4654_v50 = vadd.f32 %v1700_v49, %v6305_v53  ;;  %v1702_v36 = vpop.f32.mrb[63].mxu0 }
 0x1ff   :  { %v1745_v60 = vpop.f32.mrb[63].mxu1  ;;  %v6315_v47 = vadd.f32 %v1797_v38, %v1795_v55  ;;  %v4328_v52 = vmul.f32 -1.442695, %v4653_v39  ;;  %v4655_v48 = vadd.f32 %v1702_v36, %v6307_v46  ;;  %v6320_v42 = vrot.slane %v147_v58, %v7434_v45  ;;  %v4992_v55 = vpop.eup %4991 }
 0x200   :  { %4997 = vpow2.f32 %v4326_v57  ;;  %v4327_v40 = vmul.f32 -1.442695, %v4654_v50  ;;  %v4684_v39 = vadd.f32 %v1739_v43, %v6325_v63  ;;  %v4994_v49 = vpop.eup %4993 }
 0x201   :  { %4999 = vtanh.f32 %v6315_v47  ;;  %v4329_v61 = vmul.f32 -1.442695, %v4655_v48  ;;  %v4685_v38 = vadd.f32 %v1741_v56, %v6320_v42  ;;  %v4687_v36 = vadd.f32 %v1745_v60, %v6320_v42 }
 0x202   :  { %5001 = vpow2.f32 %v4328_v52  ;;  %v4686_v52 = vadd.f32 %v1743_v59, %v6325_v63 }
 0x203   :  { %5003 = vpow2.f32 %v4327_v40  ;;  %v4330_v57 = vmul.f32 -1.442695, %v4685_v38  ;;  %v4331_v58 = vmul.f32 -1.442695, %v4687_v36 }
 0x204   :  { %5005 = vpow2.f32 %v4329_v61 }
 0x205   :  { %5007 = vtanh.f32 %v4684_v39 }
 0x206   :  { %5009 = vpow2.f32 %v4330_v57 }
 0x207   :  { %v4996_v50 = vpop.eup %4995 }
 0x208   :  { %v1802_v56 = vmul.f32 %v4996_v50, %v4992_v55 }
 0x20a   :  { %v4998_v45 = vpop.eup %4997 }
 0x20b   :  { %v5000_v48 = vpop.eup %4999  ;;  %v1810_v46 = vadd.f32 1.0, %v4998_v45 }
 0x20c   :  { %v5002_v51 = vpop.eup %5001  ;;  %v1803_v40 = vmul.f32 %v5000_v48, %v4994_v49 }
 0x20d   :  { %5011 = vrcp.f32 %v1810_v46  ;;  %v1822_v61 = vadd.f32 1.0, %v5002_v51  ;;  %v5004_v54 = vpop.eup %5003 }
 0x20e   :  { %5013 = vtanh.f32 %v4686_v52  ;;  %v1852_v43 = vpack.c.bf16 %v1803_v40, %v1802_v56  ;;  %v1811_v38 = vadd.f32 1.0, %v5004_v54  ;;  %v5006_v60 = vpop.eup %5005 }
 0x20f   :  { %5015 = vrcp.f32 %v1822_v61  ;;  %v1823_v59 = vadd.f32 1.0, %v5006_v60  ;;  %v5008_v46 = vpop.eup %5007 }
 0x210   :  { %5017 = vpow2.f32 %v4331_v58  ;;  %4484 = vst [vmem:[#allocation18] sm:$0xff] %v1852_v43   ;;  %1915 = vmatmul.mubr.bf16.vlgmr.msra.gmra.mrb[4].mxu0 %v1852_v43  ;;  %1958 = vmatmul.mubr.bf16.vlgmr.msra.gmra.mrb[4].mxu1 %v1852_v43  ;;  %v5010_v55 = vpop.eup %5009  ;;  %v7436_v43 = vld [vmem:[#allocation51_spill] sm:$0xff] }
 0x211   :  { %5019 = vrcp.f32 %v1811_v38  ;;  %1986 = vmatpush1.bf16.msra.mxu0 %v6147_v4  ;;  %2029 = vmatpush1.bf16.msra.mxu1 %v6149_v5  ;;  %v1836_v48 = vadd.f32 1.0, %v5010_v55 }
 0x212   :  { %1987 = vmatprep.subr.bf16.mxu0 %v6151_v6  ;;  %2030 = vmatprep.subr.bf16.mxu1 %v6153_v7  ;;  %5021 = vrcp.f32 %v1823_v59  ;;  %v7437_v59 = vld [vmem:[#allocation52_spill] sm:$0xff] }
 0x213   :  { %2017 = vmatprep.mubr.bf16.mxu0 %v7428_v3  ;;  %2060 = vmatprep.mubr.bf16.mxu1 %v7428_v3  ;;  %5023 = vrcp.f32 %v1836_v48  ;;  %v7452_v48 = vld [vmem:[#allocation40_spill] sm:$0xff] }
 0x215   :  { %1988 = vmatpush1.bf16.msra.mxu0 %v6159_v9  ;;  %2031 = vmatpush1.bf16.msra.mxu1 %v6161_v10 }
 0x216   :  { %1989 = vmatprep.subr.bf16.mxu0 %v6165_v11  ;;  %2032 = vmatprep.subr.bf16.mxu1 %v6167_v12 }
 0x217   :  { %v5012_v39 = vpop.eup %5011 }
 0x218   :  { %v5014_v49 = vpop.eup %5013  ;;  %v1844_v57 = vmul.f32 %v5012_v39, %v5008_v46 }
 0x219   :  { %v5016_v36 = vpop.eup %5015  ;;  %1990 = vmatpush1.bf16.msra.mxu0 %v6173_v13  ;;  %2033 = vmatpush1.bf16.msra.mxu1 %v6175_v14 }
 0x21a   :  { %v5018_v50 = vpop.eup %5017  ;;  %v1842_v45 = vmul.f32 0.0, %v5016_v36  ;;  %1991 = vmatprep.subr.bf16.mxu0 %v6179_v15  ;;  %2034 = vmatprep.subr.bf16.mxu1 %v6181_v16  ;;  %v7444_v36 = vld [vmem:[#allocation32_spill] sm:$0xff] }
 0x21b   :  { %v5020_v52 = vpop.eup %5019  ;;  %v1837_v40 = vadd.f32 1.0, %v5018_v50  ;;  %v7449_v50 = vld [vmem:[#allocation38_spill] sm:$0xff] }
 0x21c   :  { %v6345_v51 = vadd.f32 %v1844_v57, %v1842_v45  ;;  %v1845_v58 = vmul.f32 %v5020_v52, %v5014_v49  ;;  %v5022_v56 = vpop.eup %5021  ;;  %v7450_v45 = vld [vmem:[#allocation39_spill] sm:$0xff]  ;;  %v7451_v52 = vld [vmem:[#allocation41_spill] sm:$0xff] }
 0x21d   :  { %1992 = vmatpush1.bf16.msra.mxu0 %v6185_v17  ;;  %2035 = vmatpush1.bf16.msra.mxu1 %v6187_v18  ;;  %v1843_v61 = vmul.f32 0.0, %v5022_v56  ;;  %v5024_v38 = vpop.eup %5023  ;;  %v7454_v56 = vld [vmem:[#allocation42_spill] sm:$0xff] }
 0x21e   :  { %1993 = vmatprep.subr.bf16.mxu0 %v6191_v20  ;;  %2036 = vmatprep.subr.bf16.mxu1 %v6193_v22  ;;  %5025 = vtanh.f32 %v6345_v51 }
 0x21f   :  { %v6352_v54 = vadd.f32 %v1845_v58, %v1843_v61  ;;  %5027 = vrcp.f32 %v1837_v40  ;;  %v7453_v58 = vld [vmem:[#allocation43_spill] sm:$0xff]  ;;  %v7455_v40 = vld [vmem:[#allocation45_spill] sm:$0xff]  ;;  %v7456_v61 = vld [vmem:[#allocation44_spill] sm:$0xff] }
 0x221   :  { %1994 = vmatpush1.bf16.msra.mxu0 %v6197_v23  ;;  %2037 = vmatpush1.bf16.msra.mxu1 %v6199_v24  ;;  %5029 = vtanh.f32 %v6352_v54 }
 0x222   :  { %1995 = vmatprep.subr.bf16.mxu0 %v6203_v25  ;;  %2038 = vmatprep.subr.bf16.mxu1 %v6205_v26 }
 0x225   :  { %1996 = vmatpush1.bf16.msra.mxu0 %v6209_v27  ;;  %2039 = vmatpush1.bf16.msra.mxu1 %v6211_v35 }
 0x226   :  { %1997 = vmatprep.subr.bf16.mxu0 %v6215_v44  ;;  %2040 = vmatprep.subr.bf16.mxu1 %v7436_v43 }
 0x228   :  { %v5026_v60 = vpop.eup %5025 }
 0x229   :  { %1998 = vmatpush1.bf16.msra.mxu0 %v6221_v62  ;;  %2041 = vmatpush1.bf16.msra.mxu1 %v6223_v1  ;;  %v5028_v46 = vpop.eup %5027  ;;  %v1850_v39 = vmul.f32 %v5026_v60, %v5024_v38  ;;  %v7457_v38 = vld [vmem:[#allocation46_spill] sm:$0xff]  ;;  %v7458_v60 = vld [vmem:[#allocation47_spill] sm:$0xff] }
 0x22a   :  { %1999 = vmatprep.subr.bf16.mxu0 %v6227_v2  ;;  %2042 = vmatprep.subr.bf16.mxu1 %v7437_v59 }
 0x22b   :  { %v5030_v55 = vpop.eup %5029 }
 0x22c   :  { %v1851_v49 = vmul.f32 %v5030_v55, %v5028_v46  ;;  %v7459_v46 = vld [vmem:[#allocation48_spill] sm:$0xff]  ;;  %v7460_v55 = vld [vmem:[#allocation49_spill] sm:$0xff] }
 0x22d   :  { %2000 = vmatpush1.bf16.msra.mxu0 %v6233_v0  ;;  %2043 = vmatpush1.bf16.msra.mxu1 %v6235_v8 }
 0x22e   :  { %2206 = vmatprep.subr.bf16.mxu0 %v5989_v19  ;;  %2249 = vmatprep.subr.bf16.mxu1 %v5992_v21  ;;  %v1862_v57 = vpack.c.bf16 %v1851_v49, %v1850_v39  ;;  %v7438_v19 = vld [vmem:[#allocation27_spill] sm:$0xff]  ;;  %v7439_v21 = vld [vmem:[#allocation29_spill] sm:$0xff]  ;;  %v7461_v39 = vld [vmem:[#allocation50_spill] sm:$0xff] }
 0x230   :  { %4489 = vst [vmem:[#allocation19 + $0x38] sm:$0xff] %v1862_v57   ;;  %2018 = vmatmul.mubr.bf16.vlgmr.msra.gmra.mrb[56].mxu0 %v1862_v57  ;;  %2061 = vmatmul.mubr.bf16.vlgmr.msra.gmra.mrb[56].mxu1 %v1862_v57 }
 0x231   :  { %2207 = vmatpush1.bf16.msra.mxu0 %v6019_v28  ;;  %2250 = vmatpush1.bf16.msra.mxu1 %v6023_v30  ;;  %v7440_v28 = vld [vmem:[#allocation28_spill] sm:$0xff]  ;;  %v7442_v30 = vld [vmem:[#allocation31_spill] sm:$0xff] }
 0x232   :  { %2208 = vmatprep.subr.bf16.mxu0 %v6021_v29  ;;  %2251 = vmatprep.subr.bf16.mxu1 %v6027_v31  ;;  %v7441_v29 = vld [vmem:[#allocation30_spill] sm:$0xff]  ;;  %v7443_v31 = vld [vmem:[#allocation33_spill] sm:$0xff] }
 0x233   :  { %2238 = vmatprep.mubr.bf16.mxu0 %v7428_v3  ;;  %2281 = vmatprep.mubr.bf16.mxu1 %v7428_v3 }
 0x235   :  { %2209 = vmatpush1.bf16.msra.mxu0 %v6031_v32  ;;  %2252 = vmatpush1.bf16.msra.mxu1 %v6038_v34  ;;  %v7445_v32 = vld [vmem:[#allocation35_spill] sm:$0xff]  ;;  %v7446_v34 = vld [vmem:[#allocation34_spill] sm:$0xff] }
 0x236   :  { %2210 = vmatprep.subr.bf16.mxu0 %v6035_v33  ;;  %2253 = vmatprep.subr.bf16.mxu1 %v6045_v37  ;;  %v7447_v33 = vld [vmem:[#allocation37_spill] sm:$0xff]  ;;  %v7448_v37 = vld [vmem:[#allocation36_spill] sm:$0xff] }
 0x239   :  { %2211 = vmatpush1.bf16.msra.mxu0 %v7438_v19  ;;  %2254 = vmatpush1.bf16.msra.mxu1 %v7439_v21  ;;  %v7462_v19 = vld [vmem:[#allocation53_spill] sm:$0xff] }
 0x23a   :  { %2212 = vmatprep.subr.bf16.mxu0 %v7440_v28  ;;  %2255 = vmatprep.subr.bf16.mxu1 %v7441_v29 }
 0x23d   :  { %2213 = vmatpush1.bf16.msra.mxu0 %v7442_v30  ;;  %2256 = vmatpush1.bf16.msra.mxu1 %v7443_v31  ;;  %v7463_v30 = vld [vmem:[#allocation54_spill] sm:$0xff] }
 0x23e   :  { %2214 = vmatprep.subr.bf16.mxu0 %v7444_v36  ;;  %2257 = vmatprep.subr.bf16.mxu1 %v7445_v32 }
 0x241   :  { %2215 = vmatpush1.bf16.msra.mxu0 %v7446_v34  ;;  %2258 = vmatpush1.bf16.msra.mxu1 %v7447_v33 }
 0x242   :  { %2216 = vmatprep.subr.bf16.mxu0 %v7448_v37  ;;  %2259 = vmatprep.subr.bf16.mxu1 %v7449_v50 }
 0x245   :  { %2217 = vmatpush1.bf16.msra.mxu0 %v7450_v45  ;;  %2260 = vmatpush1.bf16.msra.mxu1 %v7451_v52 }
 0x246   :  { %2218 = vmatprep.subr.bf16.mxu0 %v7452_v48  ;;  %2261 = vmatprep.subr.bf16.mxu1 %v7453_v58 }
 0x249   :  { %2219 = vmatpush1.bf16.msra.mxu0 %v7454_v56  ;;  %2262 = vmatpush1.bf16.msra.mxu1 %v7455_v40  ;;  %v7464_v56 = vld [vmem:[#allocation55_spill] sm:$0xff] }
 0x24a   :  { %2220 = vmatprep.subr.bf16.mxu0 %v7456_v61  ;;  %2263 = vmatprep.subr.bf16.mxu1 %v7457_v38  ;;  %v7465_v61 = vld [vmem:[#allocation56_spill] sm:$0xff] }
 0x24d   :  { %2221 = vmatpush1.bf16.msra.mxu0 %v7458_v60  ;;  %2264 = vmatpush1.bf16.msra.mxu1 %v7459_v46 }
 0x24e   :  { %2309 = vmatprep.subr.bf16.mxu0 %v7460_v55  ;;  %2352 = vmatprep.subr.bf16.mxu1 %v7461_v39 }
 0x2e3   :  { %v1916_v49 = vpop.f32.mrb[4].mxu0  ;;  %v1959_v57 = vpop.f32.mrb[4].mxu1 }
 0x2e4   :  { %v4564_v21 = vadd.f32 %v1916_v49, %v7462_v19  ;;  %v1918_v28 = vpop.f32.mrb[5].mxu0  ;;  %v1961_v29 = vpop.f32.mrb[5].mxu1  ;;  %v4596_v38 = vadd.f32 %v1959_v57, %v7465_v61 }
 0x2e5   :  { %v4565_v31 = vadd.f32 %v1918_v28, %v7463_v30  ;;  %v1920_v36 = vpop.f32.mrb[6].mxu0  ;;  %v1963_v32 = vpop.f32.mrb[6].mxu1  ;;  %v4597_v40 = vadd.f32 %v1961_v29, %v7464_v56 }
 0x2e6   :  { %v4336_v34 = vmul.f32 -1.442695, %v4564_v21  ;;  %v4566_v33 = vadd.f32 %v1920_v36, %v7462_v19  ;;  %v1922_v37 = vpop.f32.mrb[7].mxu0  ;;  %v1965_v50 = vpop.f32.mrb[7].mxu1  ;;  %v4598_v55 = vadd.f32 %v1963_v32, %v7465_v61 }
 0x2e7   :  { %v4338_v45 = vmul.f32 -1.442695, %v4565_v31  ;;  %v4567_v52 = vadd.f32 %v1922_v37, %v7463_v30  ;;  %v4340_v60 = vmul.f32 -1.442695, %v4597_v40  ;;  %v4599_v46 = vadd.f32 %v1965_v50, %v7464_v56 }
 0x2e8   :  { %5031 = vpow2.f32 %v4336_v34  ;;  %v4337_v48 = vmul.f32 -1.442695, %v4566_v33 }
 0x2e9   :  { %5033 = vpow2.f32 %v4338_v45  ;;  %v4339_v58 = vmul.f32 -1.442695, %v4567_v52  ;;  %v4341_v28 = vmul.f32 -1.442695, %v4599_v46 }
 0x2ea   :  { %5035 = vpow2.f32 %v4337_v48 }
 0x2eb   :  { %5037 = vpow2.f32 %v4339_v58 }
 0x2ec   :  { %5039 = vtanh.f32 %v4596_v38 }
 0x2ed   :  { %5041 = vpow2.f32 %v4340_v60 }
 0x2ee   :  { %5043 = vtanh.f32 %v4598_v55 }
 0x2f2   :  { %v5032_v39 = vpop.eup %5031 }
 0x2f3   :  { %v5034_v49 = vpop.eup %5033  ;;  %v2085_v21 = vadd.f32 1.0, %v5032_v39 }
 0x2f4   :  { %v2097_v31 = vadd.f32 1.0, %v5034_v49  ;;  %v5036_v36 = vpop.eup %5035 }
 0x2f5   :  { %5045 = vrcp.f32 %v2085_v21  ;;  %v2086_v29 = vadd.f32 1.0, %v5036_v36  ;;  %v5038_v34 = vpop.eup %5037 }
 0x2f6   :  { %5047 = vrcp.f32 %v2097_v31  ;;  %v2098_v57 = vadd.f32 1.0, %v5038_v34  ;;  %v5040_v33 = vpop.eup %5039  ;;  %v7466_v34 = vld [vmem:[#allocation57_spill] sm:$0xff] }
 0x2f7   :  { %5049 = vpow2.f32 %v4341_v28  ;;  %v5042_v37 = vpop.eup %5041 }
 0x2f8   :  { %5051 = vrcp.f32 %v2086_v29  ;;  %v5044_v32 = vpop.eup %5043  ;;  %v2111_v38 = vadd.f32 1.0, %v5042_v37 }
 0x2f9   :  { %5053 = vrcp.f32 %v2098_v57 }
 0x2fa   :  { %5055 = vrcp.f32 %v2111_v38 }
 0x2ff   :  { %v5046_v50 = vpop.eup %5045 }
 0x300   :  { %v5048_v45 = vpop.eup %5047  ;;  %v2119_v52 = vmul.f32 %v5046_v50, %v5040_v33 }
 0x301   :  { %v5050_v48 = vpop.eup %5049  ;;  %v2117_v58 = vmul.f32 %v5048_v45, %v6309_v41 }
 0x302   :  { %v5052_v40 = vpop.eup %5051  ;;  %v2112_v39 = vadd.f32 1.0, %v5050_v48 }
 0x303   :  { %v6414_v60 = vadd.f32 %v2119_v52, %v2117_v58  ;;  %v2120_v46 = vmul.f32 %v5052_v40, %v5044_v32  ;;  %v5054_v55 = vpop.eup %5053  ;;  %v2019_v49 = vpop.f32.mrb[56].mxu0 }
 0x304   :  { %v2062_v21 = vpop.f32.mrb[56].mxu1  ;;  %v2118_v28 = vmul.f32 %v5054_v55, %v6315_v47  ;;  %v4648_v31 = vadd.f32 %v2019_v49, %v6305_v53  ;;  %v2021_v36 = vpop.f32.mrb[57].mxu0 }
 0x305   :  { %v2064_v29 = vpop.f32.mrb[57].mxu1  ;;  %v4649_v57 = vadd.f32 %v2021_v36, %v7466_v34  ;;  %v2023_v33 = vpop.f32.mrb[58].mxu0  ;;  %5057 = vtanh.f32 %v6414_v60  ;;  %v4680_v55 = vadd.f32 %v2062_v21, %v6325_v63 }
 0x306   :  { %v2066_v41 = vpop.f32.mrb[58].mxu1  ;;  %v6420_v37 = vadd.f32 %v2120_v46, %v2118_v28  ;;  %v4342_v32 = vmul.f32 -1.442695, %v4648_v31  ;;  %v4650_v50 = vadd.f32 %v2023_v33, %v6305_v53  ;;  %v2025_v45 = vpop.f32.mrb[59].mxu0  ;;  %5059 = vrcp.f32 %v2112_v39 }
 0x307   :  { %v2068_v52 = vpop.f32.mrb[59].mxu1  ;;  %v4344_v47 = vmul.f32 -1.442695, %v4649_v57  ;;  %v4651_v48 = vadd.f32 %v2025_v45, %v7466_v34  ;;  %v4681_v38 = vadd.f32 %v2064_v29, %v6320_v42  ;;  %v5056_v46 = vpop.eup %5055  ;;  %v4682_v36 = vadd.f32 %v2066_v41, %v6325_v63 }
 0x308   :  { %5061 = vtanh.f32 %v6420_v37  ;;  %v4343_v58 = vmul.f32 -1.442695, %v4650_v50  ;;  %v4683_v39 = vadd.f32 %v2068_v52, %v6320_v42 }
 0x309   :  { %5063 = vpow2.f32 %v4342_v32  ;;  %v4345_v40 = vmul.f32 -1.442695, %v4651_v48  ;;  %v4346_v28 = vmul.f32 -1.442695, %v4681_v38 }
 0x30a   :  { %5065 = vpow2.f32 %v4344_v47  ;;  %v4347_v29 = vmul.f32 -1.442695, %v4683_v39  ;;  %v6513_v39 = vld [vmem:[#allocation14 + $0x60] ss:$16 sps:$4 sm:$0xff]  }
 0x30b   :  { %5067 = vpow2.f32 %v4343_v58 }
 0x30c   :  { %5069 = vpow2.f32 %v4345_v40 }
 0x30d   :  { %5071 = vtanh.f32 %v4680_v55 }
 0x30e   :  { %5073 = vpow2.f32 %v4346_v28  ;;  %v6510_v28 = vld [vmem:[#allocation14 + $0x6c] ss:$16 sps:$4 sm:$0xff]  }
 0x30f   :  { %v5058_v49 = vpop.eup %5057  ;;  %5075 = vtanh.f32 %v4682_v36  ;;  %v6519_v36 = vld [vmem:[#allocation14 + $0x84] ss:$16 sps:$4 sm:$0xff]  }
 0x310   :  { %v5060_v31 = vpop.eup %5059  ;;  %v2125_v32 = vmul.f32 %v5058_v49, %v5056_v46 }
 0x312   :  { %v5062_v57 = vpop.eup %5061 }
 0x313   :  { %v5064_v33 = vpop.eup %5063  ;;  %v2126_v50 = vmul.f32 %v5062_v57, %v5060_v31  ;;  %v6516_v31 = vld [vmem:[#allocation14 + $0x68] ss:$16 sps:$4 sm:$0xff]   ;;  %v6522_v57 = vld [vmem:[#allocation14 + $0x8c] ss:$16 sps:$4 sm:$0xff]  }
 0x314   :  { %v5066_v45 = vpop.eup %5065  ;;  %v2133_v47 = vadd.f32 1.0, %v5064_v33  ;;  %v6525_v33 = vld [vmem:[#allocation14 + $0x80] ss:$16 sps:$4 sm:$0xff]  }
 0x315   :  { %v2145_v48 = vadd.f32 1.0, %v5066_v45  ;;  %v2175_v58 = vpack.c.bf16 %v2126_v50, %v2125_v32  ;;  %v5068_v21 = vpop.eup %5067  ;;  %v6528_v32 = vld [vmem:[#allocation14 + $0x88] ss:$16 sps:$4 sm:$0xff]   ;;  %v6531_v50 = vld [vmem:[#allocation14 + $0xa4] ss:$16 sps:$4 sm:$0xff]  }
 0x316   :  { %5077 = vrcp.f32 %v2133_v47  ;;  %v2134_v40 = vadd.f32 1.0, %v5068_v21  ;;  %v5070_v41 = vpop.eup %5069  ;;  %7467 = vst [vmem:[#allocation51_spill] sm:$0xff] %v6531_v50  ;;  %v6534_v45 = vld [vmem:[#allocation14 + $0xac] ss:$16 sps:$4 sm:$0xff]   ;;  %v6537_v47 = vld [vmem:[#allocation14 + $0xa0] ss:$16 sps:$4 sm:$0xff]  }
 0x317   :  { %5079 = vrcp.f32 %v2145_v48  ;;  %4494 = vst [vmem:[#allocation18 + $0x8] sm:$0xff] %v2175_v58   ;;  %2239 = vmatmul.mubr.bf16.vlgmr.msra.gmra.mrb[8].mxu0 %v2175_v58  ;;  %2282 = vmatmul.mubr.bf16.vlgmr.msra.gmra.mrb[8].mxu1 %v2175_v58  ;;  %v2146_v52 = vadd.f32 1.0, %v5070_v41  ;;  %v5072_v38 = vpop.eup %5071  ;;  %7468 = vst [vmem:[#allocation52_spill] sm:$0xff] %v6534_v45  ;;  %v6543_v48 = vld [vmem:[#allocation14 + $0xc4] ss:$16 sps:$4 sm:$0xff]  }
 0x318   :  { %5081 = vpow2.f32 %v4347_v29  ;;  %2310 = vmatpush1.bf16.msra.mxu0 %v6147_v4  ;;  %2353 = vmatpush1.bf16.msra.mxu1 %v6149_v5  ;;  %v5074_v4 = vpop.eup %5073  ;;  %7469 = vst [vmem:[#allocation27_spill] sm:$0xff] %v6537_v47  ;;  %v6540_v29 = vld [vmem:[#allocation14 + $0xa8] ss:$16 sps:$4 sm:$0xff]   ;;  %7471 = vst [vmem:[#allocation28_spill] sm:$0xff] %v6543_v48  ;;  %v6546_v58 = vld [vmem:[#allocation14 + $0xcc] ss:$16 sps:$4 sm:$0xff]  }
 0x319   :  { %5083 = vrcp.f32 %v2134_v40  ;;  %2311 = vmatprep.subr.bf16.mxu0 %v6151_v6  ;;  %2354 = vmatprep.subr.bf16.mxu1 %v6153_v7  ;;  %v5076_v5 = vpop.eup %5075  ;;  %7470 = vst [vmem:[#allocation29_spill] sm:$0xff] %v6540_v29  ;;  %7472 = vst [vmem:[#allocation30_spill] sm:$0xff] %v6546_v58  ;;  %v6549_v21 = vld [vmem:[#allocation14 + $0xc0] ss:$16 sps:$4 sm:$0xff]   ;;  %v6552_v40 = vld [vmem:[#allocation14 + $0xc8] ss:$16 sps:$4 sm:$0xff]  }
 0x31a   :  { %2341 = vmatprep.mubr.bf16.mxu0 %v7428_v3  ;;  %2384 = vmatprep.mubr.bf16.mxu1 %v7428_v3  ;;  %5085 = vrcp.f32 %v2146_v52  ;;  %7473 = vst [vmem:[#allocation31_spill] sm:$0xff] %v6549_v21  ;;  %7474 = vst [vmem:[#allocation33_spill] sm:$0xff] %v6552_v40  ;;  %v6555_v41 = vld [vmem:[#allocation14 + $0xe4] ss:$16 sps:$4 sm:$0xff]   ;;  %v6558_v52 = vld [vmem:[#allocation14 + $0xec] ss:$16 sps:$4 sm:$0xff]  }
 0x31b   :  { %7475 = vst [vmem:[#allocation32_spill] sm:$0xff] %v6555_v41  ;;  %7476 = vst [vmem:[#allocation35_spill] sm:$0xff] %v6558_v52 }
 0x31c   :  { %2312 = vmatpush1.bf16.msra.mxu0 %v6159_v9  ;;  %2355 = vmatpush1.bf16.msra.mxu1 %v6161_v10 }
 0x31d   :  { %2313 = vmatprep.subr.bf16.mxu0 %v6165_v11  ;;  %2356 = vmatprep.subr.bf16.mxu1 %v6167_v12  ;;  %v2159_v11 = vadd.f32 1.0, %v5074_v4  ;;  %v6564_v4 = vld [vmem:[#allocation14 + $0xe8] ss:$16 sps:$4 sm:$0xff]  }
 0x31e   :  { %7478 = vst [vmem:[#allocation37_spill] sm:$0xff] %v6564_v4 }
 0x31f   :  { %5087 = vrcp.f32 %v2159_v11 }
 0x320   :  { %v5078_v46 = vpop.eup %5077  ;;  %2314 = vmatpush1.bf16.msra.mxu0 %v6173_v13  ;;  %2357 = vmatpush1.bf16.msra.mxu1 %v6175_v14 }
 0x321   :  { %v5080_v6 = vpop.eup %5079  ;;  %v2167_v7 = vmul.f32 %v5078_v46, %v5072_v38  ;;  %2315 = vmatprep.subr.bf16.mxu0 %v6179_v15  ;;  %2358 = vmatprep.subr.bf16.mxu1 %v6181_v16  ;;  %v6561_v38 = vld [vmem:[#allocation14 + $0xe0] ss:$16 sps:$4 sm:$0xff]   ;;  %v6570_v46 = vld [vmem:[#allocation15 + $0xc] ss:$16 sps:$4 sm:$0xff]  }
 0x322   :  { %v5082_v9 = vpop.eup %5081  ;;  %v2165_v10 = vmul.f32 %v5080_v6, %v6345_v51  ;;  %v6498_v51 = vld [vmem:[#allocation14 + $0x4c] ss:$16 sps:$4 sm:$0xff]   ;;  %7477 = vst [vmem:[#allocation34_spill] sm:$0xff] %v6561_v38  ;;  %7480 = vst [vmem:[#allocation38_spill] sm:$0xff] %v6570_v46 }
 0x323   :  { %v5084_v55 = vpop.eup %5083  ;;  %v2160_v14 = vadd.f32 1.0, %v5082_v9 }
 0x324   :  { %v6444_v49 = vadd.f32 %v2167_v7, %v2165_v10  ;;  %v2168_v12 = vmul.f32 %v5084_v55, %v5076_v5  ;;  %2316 = vmatpush1.bf16.msra.mxu0 %v6185_v17  ;;  %2359 = vmatpush1.bf16.msra.mxu1 %v6187_v18  ;;  %v5086_v13 = vpop.eup %5085  ;;  %v6567_v5 = vld [vmem:[#allocation15 + $0x4] ss:$16 sps:$4 sm:$0xff]  }
 0x325   :  { %2317 = vmatprep.subr.bf16.mxu0 %v6191_v20  ;;  %2360 = vmatprep.subr.bf16.mxu1 %v6193_v22  ;;  %v2166_v15 = vmul.f32 %v5086_v13, %v6352_v54  ;;  %v6501_v54 = vld [vmem:[#allocation14 + $0x40] ss:$16 sps:$4 sm:$0xff]   ;;  %7479 = vst [vmem:[#allocation36_spill] sm:$0xff] %v6567_v5 }
 0x326   :  { %5089 = vtanh.f32 %v6444_v49 }
 0x327   :  { %v6452_v16 = vadd.f32 %v2168_v12, %v2166_v15  ;;  %5091 = vrcp.f32 %v2160_v14 }
 0x328   :  { %2318 = vmatpush1.bf16.msra.mxu0 %v6197_v23  ;;  %2361 = vmatpush1.bf16.msra.mxu1 %v6199_v24 }
 0x329   :  { %2319 = vmatprep.subr.bf16.mxu0 %v6203_v25  ;;  %2362 = vmatprep.subr.bf16.mxu1 %v6205_v26  ;;  %5093 = vtanh.f32 %v6452_v16  ;;  %v5088_v17 = vpop.eup %5087  ;;  %v6469_v25 = vld [vmem:[#allocation14 + $0x4] ss:$16 sps:$4 sm:$0xff]   ;;  %v6472_v26 = vld [vmem:[#allocation14 + $0xc] ss:$16 sps:$4 sm:$0xff]  }
 0x32c   :  { %2320 = vmatpush1.bf16.msra.mxu0 %v6209_v27  ;;  %2363 = vmatpush1.bf16.msra.mxu1 %v6211_v35  ;;  %v6475_v35 = vld [vmem:[#allocation14] ss:$16 sps:$4 sm:$0xff]  }
 0x32d   :  { %2321 = vmatprep.subr.bf16.mxu0 %v6215_v44  ;;  %2364 = vmatprep.subr.bf16.mxu1 %v7436_v43  ;;  %v6484_v44 = vld [vmem:[#allocation14 + $0x2c] ss:$16 sps:$4 sm:$0xff]   ;;  %v6504_v43 = vld [vmem:[#allocation14 + $0x48] ss:$16 sps:$4 sm:$0xff]  }
 0x330   :  { %2322 = vmatpush1.bf16.msra.mxu0 %v6221_v62  ;;  %2365 = vmatpush1.bf16.msra.mxu1 %v6223_v1  ;;  %v5090_v18 = vpop.eup %5089  ;;  %v6489_v62 = vld [vmem:[#allocation14 + $0x20] ss:$16 sps:$4 sm:$0xff]   ;;  %v6492_v1 = vld [vmem:[#allocation14 + $0x28] ss:$16 sps:$4 sm:$0xff]  }
 0x331   :  { %2323 = vmatprep.subr.bf16.mxu0 %v6227_v2  ;;  %2366 = vmatprep.subr.bf16.mxu1 %v7437_v59  ;;  %v5092_v20 = vpop.eup %5091  ;;  %v2173_v23 = vmul.f32 %v5090_v18, %v5088_v17  ;;  %v6495_v2 = vld [vmem:[#allocation14 + $0x44] ss:$16 sps:$4 sm:$0xff]  }
 0x332   :  { %v6507_v59 = vld [vmem:[#allocation14 + $0x64] ss:$16 sps:$4 sm:$0xff]  }
 0x333   :  { %v5094_v22 = vpop.eup %5093 }
 0x334   :  { %2324 = vmatpush1.bf16.msra.mxu0 %v6233_v0  ;;  %2367 = vmatpush1.bf16.msra.mxu1 %v6235_v8  ;;  %v2174_v24 = vmul.f32 %v5094_v22, %v5092_v20  ;;  %v6478_v0 = vld [vmem:[#allocation14 + $0x8] ss:$16 sps:$4 sm:$0xff]   ;;  %v6481_v8 = vld [vmem:[#allocation14 + $0x24] ss:$16 sps:$4 sm:$0xff]  }
 0x335   :  { %2530 = vmatprep.subr.bf16.mxu0 %v6469_v25  ;;  %2573 = vmatprep.subr.bf16.mxu1 %v6472_v26 }
 0x336   :  { %v2186_v27 = vpack.c.bf16 %v2174_v24, %v2173_v23 }
 0x338   :  { %4499 = vst [vmem:[#allocation19 + $0x30] sm:$0xff] %v2186_v27   ;;  %2342 = vmatmul.mubr.bf16.vlgmr.msra.gmra.mrb[52].mxu0 %v2186_v27  ;;  %2385 = vmatmul.mubr.bf16.vlgmr.msra.gmra.mrb[52].mxu1 %v2186_v27 }
 0x339   :  { %2531 = vmatpush1.bf16.msra.mxu0 %v6475_v35  ;;  %2574 = vmatpush1.bf16.msra.mxu1 %v6478_v0 }
 0x33a   :  { %2532 = vmatprep.subr.bf16.mxu0 %v6481_v8  ;;  %2575 = vmatprep.subr.bf16.mxu1 %v6484_v44 }
 0x33b   :  { %2562 = vmatprep.mubr.bf16.mxu0 %v7428_v3  ;;  %2605 = vmatprep.mubr.bf16.mxu1 %v7428_v3 }
 0x33d   :  { %2533 = vmatpush1.bf16.msra.mxu0 %v6489_v62  ;;  %2576 = vmatpush1.bf16.msra.mxu1 %v6492_v1 }
 0x33e   :  { %2534 = vmatprep.subr.bf16.mxu0 %v6495_v2  ;;  %2577 = vmatprep.subr.bf16.mxu1 %v6498_v51 }
 0x341   :  { %2535 = vmatpush1.bf16.msra.mxu0 %v6501_v54  ;;  %2578 = vmatpush1.bf16.msra.mxu1 %v6504_v43 }
 0x342   :  { %2536 = vmatprep.subr.bf16.mxu0 %v6507_v59  ;;  %2579 = vmatprep.subr.bf16.mxu1 %v6510_v28 }
 0x345   :  { %2537 = vmatpush1.bf16.msra.mxu0 %v6513_v39  ;;  %2580 = vmatpush1.bf16.msra.mxu1 %v6516_v31 }
 0x346   :  { %2538 = vmatprep.subr.bf16.mxu0 %v6519_v36  ;;  %2581 = vmatprep.subr.bf16.mxu1 %v6522_v57 }
 0x349   :  { %2539 = vmatpush1.bf16.msra.mxu0 %v6525_v33  ;;  %2582 = vmatpush1.bf16.msra.mxu1 %v6528_v32 }
 0x34a   :  { %2540 = vmatprep.subr.bf16.mxu0 %v6531_v50  ;;  %2583 = vmatprep.subr.bf16.mxu1 %v6534_v45 }
 0x34d   :  { %2541 = vmatpush1.bf16.msra.mxu0 %v6537_v47  ;;  %2584 = vmatpush1.bf16.msra.mxu1 %v6540_v29 }
 0x34e   :  { %2542 = vmatprep.subr.bf16.mxu0 %v6543_v48  ;;  %2585 = vmatprep.subr.bf16.mxu1 %v6546_v58 }
 0x351   :  { %2543 = vmatpush1.bf16.msra.mxu0 %v6549_v21  ;;  %2586 = vmatpush1.bf16.msra.mxu1 %v6552_v40 }
 0x352   :  { %2544 = vmatprep.subr.bf16.mxu0 %v6555_v41  ;;  %2587 = vmatprep.subr.bf16.mxu1 %v6558_v52 }
 0x355   :  { %2545 = vmatpush1.bf16.msra.mxu0 %v6561_v38  ;;  %2588 = vmatpush1.bf16.msra.mxu1 %v6564_v4 }
 0x356   :  { %2633 = vmatprep.subr.bf16.mxu0 %v6567_v5  ;;  %2676 = vmatprep.subr.bf16.mxu1 %v6570_v46 }
 0x3ea   :  { %v2240_v6 = vpop.f32.mrb[8].mxu0  ;;  %v2283_v7 = vpop.f32.mrb[8].mxu1 }
 0x3eb   :  { %v4568_v9 = vadd.f32 %v2240_v6, %v7462_v19  ;;  %v2242_v10 = vpop.f32.mrb[9].mxu0  ;;  %v2285_v55 = vpop.f32.mrb[9].mxu1  ;;  %v4600_v6 = vadd.f32 %v2283_v7, %v7465_v61 }
 0x3ec   :  { %v4569_v11 = vadd.f32 %v2242_v10, %v7463_v30  ;;  %v2244_v12 = vpop.f32.mrb[10].mxu0  ;;  %v2287_v13 = vpop.f32.mrb[10].mxu1  ;;  %v4601_v27 = vadd.f32 %v2285_v55, %v7464_v56 }
 0x3ed   :  { %v4352_v14 = vmul.f32 -1.442695, %v4568_v9  ;;  %v4570_v15 = vadd.f32 %v2244_v12, %v7462_v19  ;;  %v2246_v17 = vpop.f32.mrb[11].mxu0  ;;  %v2289_v18 = vpop.f32.mrb[11].mxu1  ;;  %v4602_v12 = vadd.f32 %v2287_v13, %v7465_v61 }
 0x3ee   :  { %v4354_v20 = vmul.f32 -1.442695, %v4569_v11  ;;  %v4571_v22 = vadd.f32 %v2246_v17, %v7463_v30  ;;  %v4356_v10 = vmul.f32 -1.442695, %v4601_v27  ;;  %v4603_v9 = vadd.f32 %v2289_v18, %v7464_v56 }
 0x3ef   :  { %5095 = vpow2.f32 %v4352_v14  ;;  %v4353_v23 = vmul.f32 -1.442695, %v4570_v15 }
 0x3f0   :  { %5097 = vpow2.f32 %v4354_v20  ;;  %v4355_v24 = vmul.f32 -1.442695, %v4571_v22  ;;  %v4357_v14 = vmul.f32 -1.442695, %v4603_v9 }
 0x3f1   :  { %5099 = vpow2.f32 %v4353_v23 }
 0x3f2   :  { %5101 = vpow2.f32 %v4355_v24 }
 0x3f3   :  { %5103 = vtanh.f32 %v4600_v6 }
 0x3f4   :  { %5105 = vpow2.f32 %v4356_v10 }
 0x3f5   :  { %5107 = vtanh.f32 %v4602_v12 }
 0x3f9   :  { %v5096_v19 = vpop.eup %5095 }
 0x3fa   :  { %v5098_v11 = vpop.eup %5097  ;;  %v2409_v46 = vadd.f32 1.0, %v5096_v19 }
 0x3fb   :  { %v2421_v15 = vadd.f32 1.0, %v5098_v11  ;;  %v5100_v17 = vpop.eup %5099 }
 0x3fc   :  { %5109 = vrcp.f32 %v2409_v46  ;;  %v2410_v55 = vadd.f32 1.0, %v5100_v17  ;;  %v5102_v20 = vpop.eup %5101 }
 0x3fd   :  { %5111 = vrcp.f32 %v2421_v15  ;;  %v2422_v7 = vadd.f32 1.0, %v5102_v20  ;;  %v5104_v18 = vpop.eup %5103 }
 0x3fe   :  { %5113 = vpow2.f32 %v4357_v14  ;;  %v5106_v22 = vpop.eup %5105 }
 0x3ff   :  { %5115 = vrcp.f32 %v2410_v55  ;;  %v5108_v13 = vpop.eup %5107  ;;  %v2435_v9 = vadd.f32 1.0, %v5106_v22 }
 0x400   :  { %5117 = vrcp.f32 %v2422_v7 }
 0x401   :  { %5119 = vrcp.f32 %v2435_v9 }
 0x406   :  { %v5110_v23 = vpop.eup %5109 }
 0x407   :  { %v5112_v24 = vpop.eup %5111  ;;  %v2443_v27 = vmul.f32 %v5110_v23, %v5104_v18 }
 0x408   :  { %v5114_v19 = vpop.eup %5113  ;;  %v2441_v6 = vmul.f32 %v5112_v24, %v6414_v60 }
 0x409   :  { %v5116_v10 = vpop.eup %5115  ;;  %v2436_v15 = vadd.f32 1.0, %v5114_v19 }
 0x40a   :  { %v6582_v12 = vadd.f32 %v2443_v27, %v2441_v6  ;;  %v2444_v46 = vmul.f32 %v5116_v10, %v5108_v13  ;;  %v5118_v11 = vpop.eup %5117 }
 0x40b   :  { %v2442_v14 = vmul.f32 %v5118_v11, %v6420_v37  ;;  %v2343_v17 = vpop.f32.mrb[52].mxu0  ;;  %v2386_v55 = vpop.f32.mrb[52].mxu1 }
 0x40c   :  { %v4644_v20 = vadd.f32 %v2343_v17, %v6305_v53  ;;  %v2345_v7 = vpop.f32.mrb[53].mxu0  ;;  %v2388_v61 = vpop.f32.mrb[53].mxu1  ;;  %5121 = vtanh.f32 %v6582_v12 }
 0x40d   :  { %v6587_v18 = vadd.f32 %v2444_v46, %v2442_v14  ;;  %v4645_v60 = vadd.f32 %v2345_v7, %v7466_v34  ;;  %v2347_v22 = vpop.f32.mrb[54].mxu0  ;;  %v2390_v23 = vpop.f32.mrb[54].mxu1  ;;  %5123 = vrcp.f32 %v2436_v15  ;;  %v4677_v46 = vadd.f32 %v2388_v61, %v6320_v42 }
 0x40e   :  { %v4358_v13 = vmul.f32 -1.442695, %v4644_v20  ;;  %v4646_v24 = vadd.f32 %v2347_v22, %v6305_v53  ;;  %v2349_v37 = vpop.f32.mrb[55].mxu0  ;;  %v2392_v27 = vpop.f32.mrb[55].mxu1  ;;  %v4676_v15 = vadd.f32 %v2386_v55, %v6325_v63 }
 0x40f   :  { %5125 = vtanh.f32 %v6587_v18  ;;  %v4360_v19 = vmul.f32 -1.442695, %v4645_v60  ;;  %v4647_v6 = vadd.f32 %v2349_v37, %v7466_v34  ;;  %v5120_v11 = vpop.eup %5119  ;;  %v4362_v17 = vmul.f32 -1.442695, %v4677_v46 }
 0x410   :  { %5127 = vpow2.f32 %v4358_v13  ;;  %v4359_v10 = vmul.f32 -1.442695, %v4646_v24  ;;  %v4679_v20 = vadd.f32 %v2392_v27, %v6320_v42  ;;  %v4678_v60 = vadd.f32 %v2390_v23, %v6325_v63  ;;  %v6597_v27 = vld [vmem:[#allocation15] ss:$16 sps:$4 sm:$0xff]  }
 0x411   :  { %5129 = vpow2.f32 %v4360_v19  ;;  %v4361_v9 = vmul.f32 -1.442695, %v4647_v6 }
 0x412   :  { %5131 = vpow2.f32 %v4359_v10  ;;  %v4363_v61 = vmul.f32 -1.442695, %v4679_v20  ;;  %v6611_v20 = vld [vmem:[#allocation15 + $0x20] ss:$16 sps:$4 sm:$0xff]  }
 0x413   :  { %5133 = vpow2.f32 %v4361_v9  ;;  %7481 = vst [vmem:[#allocation39_spill] sm:$0xff] %v6611_v20 }
 0x414   :  { %5135 = vtanh.f32 %v4676_v15 }
 0x415   :  { %5137 = vpow2.f32 %v4362_v17  ;;  %v6606_v17 = vld [vmem:[#allocation15 + $0x2c] ss:$16 sps:$4 sm:$0xff]  }
 0x416   :  { %v5122_v14 = vpop.eup %5121  ;;  %5139 = vtanh.f32 %v4678_v60 }
 0x417   :  { %v5124_v7 = vpop.eup %5123  ;;  %v2449_v13 = vmul.f32 %v5122_v14, %v5120_v11  ;;  %v6600_v11 = vld [vmem:[#allocation15 + $0x8] ss:$16 sps:$4 sm:$0xff]   ;;  %v6603_v14 = vld [vmem:[#allocation15 + $0x24] ss:$16 sps:$4 sm:$0xff]  }
 0x419   :  { %v5126_v22 = vpop.eup %5125 }
 0x41a   :  { %v5128_v37 = vpop.eup %5127  ;;  %v2450_v24 = vmul.f32 %v5126_v22, %v5124_v7  ;;  %v6614_v7 = vld [vmem:[#allocation15 + $0x28] ss:$16 sps:$4 sm:$0xff]   ;;  %v6617_v22 = vld [vmem:[#allocation15 + $0x44] ss:$16 sps:$4 sm:$0xff]  }
 0x41b   :  { %v5130_v19 = vpop.eup %5129  ;;  %v2457_v6 = vadd.f32 1.0, %v5128_v37  ;;  %7482 = vst [vmem:[#allocation41_spill] sm:$0xff] %v6614_v7  ;;  %7483 = vst [vmem:[#allocation40_spill] sm:$0xff] %v6617_v22  ;;  %v6620_v37 = vld [vmem:[#allocation15 + $0x4c] ss:$16 sps:$4 sm:$0xff]  }
 0x41c   :  { %v2469_v10 = vadd.f32 1.0, %v5130_v19  ;;  %v2499_v9 = vpack.c.bf16 %v2450_v24, %v2449_v13  ;;  %v5132_v55 = vpop.eup %5131  ;;  %7484 = vst [vmem:[#allocation43_spill] sm:$0xff] %v6620_v37 }
 0x41d   :  { %5141 = vrcp.f32 %v2457_v6  ;;  %v2458_v46 = vadd.f32 1.0, %v5132_v55  ;;  %v5134_v23 = vpop.eup %5133  ;;  %v6623_v6 = vld [vmem:[#allocation15 + $0x40] ss:$16 sps:$4 sm:$0xff]   ;;  %v6629_v55 = vld [vmem:[#allocation15 + $0x64] ss:$16 sps:$4 sm:$0xff]  }
 0x41e   :  { %5143 = vrcp.f32 %v2469_v10  ;;  %4504 = vst [vmem:[#allocation18 + $0x10] sm:$0xff] %v2499_v9   ;;  %2563 = vmatmul.mubr.bf16.vlgmr.msra.gmra.mrb[12].mxu0 %v2499_v9  ;;  %2606 = vmatmul.mubr.bf16.vlgmr.msra.gmra.mrb[12].mxu1 %v2499_v9  ;;  %v2470_v15 = vadd.f32 1.0, %v5134_v23  ;;  %v5136_v60 = vpop.eup %5135  ;;  %7485 = vst [vmem:[#allocation42_spill] sm:$0xff] %v6623_v6 }
 0x41f   :  { %5145 = vpow2.f32 %v4363_v61  ;;  %2634 = vmatpush1.bf16.msra.mxu0 %v6597_v27  ;;  %2677 = vmatpush1.bf16.msra.mxu1 %v6600_v11  ;;  %v5138_v13 = vpop.eup %5137  ;;  %v6626_v61 = vld [vmem:[#allocation15 + $0x48] ss:$16 sps:$4 sm:$0xff]   ;;  %7487 = vst [vmem:[#allocation44_spill] sm:$0xff] %v6629_v55 }
 0x420   :  { %5147 = vrcp.f32 %v2458_v46  ;;  %2635 = vmatprep.subr.bf16.mxu0 %v6603_v14  ;;  %2678 = vmatprep.subr.bf16.mxu1 %v6606_v17  ;;  %v5140_v24 = vpop.eup %5139  ;;  %7486 = vst [vmem:[#allocation45_spill] sm:$0xff] %v6626_v61  ;;  %v6632_v46 = vld [vmem:[#allocation15 + $0x6c] ss:$16 sps:$4 sm:$0xff]  }
 0x421   :  { %2665 = vmatprep.mubr.bf16.mxu0 %v7428_v3  ;;  %2708 = vmatprep.mubr.bf16.mxu1 %v7428_v3  ;;  %5149 = vrcp.f32 %v2470_v15 }
 0x423   :  { %2636 = vmatpush1.bf16.msra.mxu0 %v6611_v20  ;;  %2679 = vmatpush1.bf16.msra.mxu1 %v6614_v7  ;;  %v6638_v20 = vld [vmem:[#allocation15 + $0x60] ss:$16 sps:$4 sm:$0xff]  }
 0x424   :  { %2637 = vmatprep.subr.bf16.mxu0 %v6617_v22  ;;  %2680 = vmatprep.subr.bf16.mxu1 %v6620_v37  ;;  %v2483_v22 = vadd.f32 1.0, %v5138_v13 }
 0x426   :  { %5151 = vrcp.f32 %v2483_v22  ;;  %v6673_v22 = vld [vmem:[#allocation15 + $0xc4] ss:$16 sps:$4 sm:$0xff]  }
 0x427   :  { %v5142_v19 = vpop.eup %5141  ;;  %2638 = vmatpush1.bf16.msra.mxu0 %v6623_v6  ;;  %2681 = vmatpush1.bf16.msra.mxu1 %v6626_v61  ;;  %v6644_v61 = vld [vmem:[#allocation15 + $0x84] ss:$16 sps:$4 sm:$0xff]   ;;  %7493 = vst [vmem:[#allocation54_spill] sm:$0xff] %v6673_v22 }
 0x428   :  { %v5144_v10 = vpop.eup %5143  ;;  %v2491_v9 = vmul.f32 %v5142_v19, %v5136_v60  ;;  %2639 = vmatprep.subr.bf16.mxu0 %v6629_v55  ;;  %2682 = vmatprep.subr.bf16.mxu1 %v6632_v46  ;;  %v6641_v60 = vld [vmem:[#allocation15 + $0x68] ss:$16 sps:$4 sm:$0xff]  }
 0x429   :  { %v5146_v23 = vpop.eup %5145  ;;  %v2489_v15 = vmul.f32 %v5144_v10, %v6444_v49  ;;  %v6647_v49 = vld [vmem:[#allocation15 + $0x8c] ss:$16 sps:$4 sm:$0xff]   ;;  %v6657_v10 = vld [vmem:[#allocation15 + $0x88] ss:$16 sps:$4 sm:$0xff]  }
 0x42a   :  { %v5148_v37 = vpop.eup %5147  ;;  %v2484_v55 = vadd.f32 1.0, %v5146_v23  ;;  %7488 = vst [vmem:[#allocation46_spill] sm:$0xff] %v6657_v10  ;;  %v6663_v23 = vld [vmem:[#allocation15 + $0xac] ss:$16 sps:$4 sm:$0xff]  }
 0x42b   :  { %v6636_v6 = vadd.f32 %v2491_v9, %v2489_v15  ;;  %v2492_v7 = vmul.f32 %v5148_v37, %v5140_v24  ;;  %2640 = vmatpush1.bf16.msra.mxu0 %v6638_v20  ;;  %2683 = vmatpush1.bf16.msra.mxu1 %v6641_v60  ;;  %v5150_v19 = vpop.eup %5149  ;;  %v6654_v24 = vld [vmem:[#allocation15 + $0x80] ss:$16 sps:$4 sm:$0xff]   ;;  %v6660_v9 = vld [vmem:[#allocation15 + $0xa4] ss:$16 sps:$4 sm:$0xff]   ;;  %7490 = vst [vmem:[#allocation48_spill] sm:$0xff] %v6663_v23 }
 0x42c   :  { %2641 = vmatprep.subr.bf16.mxu0 %v6644_v61  ;;  %2684 = vmatprep.subr.bf16.mxu1 %v6647_v49  ;;  %v2490_v37 = vmul.f32 %v5150_v19, %v6452_v16  ;;  %7489 = vst [vmem:[#allocation47_spill] sm:$0xff] %v6660_v9  ;;  %v6667_v16 = vld [vmem:[#allocation15 + $0xa0] ss:$16 sps:$4 sm:$0xff]   ;;  %v6682_v19 = vld [vmem:[#allocation15 + $0xc8] ss:$16 sps:$4 sm:$0xff]  }
 0x42d   :  { %5153 = vtanh.f32 %v6636_v6  ;;  %7491 = vst [vmem:[#allocation49_spill] sm:$0xff] %v6667_v16  ;;  %v6679_v15 = vld [vmem:[#allocation15 + $0xc0] ss:$16 sps:$4 sm:$0xff]   ;;  %7496 = vst [vmem:[#allocation58_spill] sm:$0xff] %v6682_v19 }
 0x42e   :  { %v6652_v13 = vadd.f32 %v2492_v7, %v2490_v37  ;;  %5155 = vrcp.f32 %v2484_v55  ;;  %v6670_v7 = vld [vmem:[#allocation15 + $0xa8] ss:$16 sps:$4 sm:$0xff]   ;;  %v6676_v55 = vld [vmem:[#allocation15 + $0xcc] ss:$16 sps:$4 sm:$0xff]   ;;  %7495 = vst [vmem:[#allocation57_spill] sm:$0xff] %v6679_v15 }
 0x42f   :  { %2642 = vmatpush1.bf16.msra.mxu0 %v6654_v24  ;;  %2685 = vmatpush1.bf16.msra.mxu1 %v6657_v10  ;;  %7492 = vst [vmem:[#allocation50_spill] sm:$0xff] %v6670_v7  ;;  %7494 = vst [vmem:[#allocation55_spill] sm:$0xff] %v6676_v55 }
 0x430   :  { %2643 = vmatprep.subr.bf16.mxu0 %v6660_v9  ;;  %2686 = vmatprep.subr.bf16.mxu1 %v6663_v23  ;;  %5157 = vtanh.f32 %v6652_v13  ;;  %v5152_v37 = vpop.eup %5151  ;;  %v6691_v9 = vld [vmem:[#allocation15 + $0xe0] ss:$16 sps:$4 sm:$0xff]  }
 0x433   :  { %2644 = vmatpush1.bf16.msra.mxu0 %v6667_v16  ;;  %2687 = vmatpush1.bf16.msra.mxu1 %v6670_v7  ;;  %v6685_v16 = vld [vmem:[#allocation15 + $0xe4] ss:$16 sps:$4 sm:$0xff]   ;;  %v6688_v7 = vld [vmem:[#allocation15 + $0xec] ss:$16 sps:$4 sm:$0xff]  }
 0x434   :  { %2645 = vmatprep.subr.bf16.mxu0 %v6673_v22  ;;  %2688 = vmatprep.subr.bf16.mxu1 %v6676_v55  ;;  %7497 = vst [vmem:[#allocation59_spill] sm:$0xff] %v6685_v16 }
 0x437   :  { %2646 = vmatpush1.bf16.msra.mxu0 %v6679_v15  ;;  %2689 = vmatpush1.bf16.msra.mxu1 %v6682_v19  ;;  %v5154_v22 = vpop.eup %5153  ;;  %v6694_v15 = vld [vmem:[#allocation15 + $0xe8] ss:$16 sps:$4 sm:$0xff]  }
 0x438   :  { %2647 = vmatprep.subr.bf16.mxu0 %v6685_v16  ;;  %2690 = vmatprep.subr.bf16.mxu1 %v6688_v7  ;;  %v5156_v23 = vpop.eup %5155  ;;  %v2497_v19 = vmul.f32 %v5154_v22, %v5152_v37  ;;  %v7499_v22 = vld [vmem:[#allocation53_spill] sm:$0xff] }
 0x43a   :  { %v5158_v55 = vpop.eup %5157 }
 0x43b   :  { %2648 = vmatpush1.bf16.msra.mxu0 %v6691_v9  ;;  %2691 = vmatpush1.bf16.msra.mxu1 %v6694_v15  ;;  %v2498_v10 = vmul.f32 %v5158_v55, %v5156_v23 }
 0x43c   :  { %2854 = vmatprep.subr.bf16.mxu0 %v6469_v25  ;;  %2897 = vmatprep.subr.bf16.mxu1 %v6472_v26 }
 0x43d   :  { %v2510_v16 = vpack.c.bf16 %v2498_v10, %v2497_v19  ;;  %v7498_v10 = vld [vmem:[#allocation38_spill] sm:$0xff] }
 0x43f   :  { %4509 = vst [vmem:[#allocation19 + $0x28] sm:$0xff] %v2510_v16   ;;  %2666 = vmatmul.mubr.bf16.vlgmr.msra.gmra.mrb[48].mxu0 %v2510_v16  ;;  %2709 = vmatmul.mubr.bf16.vlgmr.msra.gmra.mrb[48].mxu1 %v2510_v16 }
 0x440   :  { %2855 = vmatpush1.bf16.msra.mxu0 %v6475_v35  ;;  %2898 = vmatpush1.bf16.msra.mxu1 %v6478_v0 }
 0x441   :  { %2856 = vmatprep.subr.bf16.mxu0 %v6481_v8  ;;  %2899 = vmatprep.subr.bf16.mxu1 %v6484_v44 }
 0x442   :  { %2886 = vmatprep.mubr.bf16.mxu0 %v7428_v3  ;;  %2929 = vmatprep.mubr.bf16.mxu1 %v7428_v3 }
 0x444   :  { %2857 = vmatpush1.bf16.msra.mxu0 %v6489_v62  ;;  %2900 = vmatpush1.bf16.msra.mxu1 %v6492_v1 }
 0x445   :  { %2858 = vmatprep.subr.bf16.mxu0 %v6495_v2  ;;  %2901 = vmatprep.subr.bf16.mxu1 %v6498_v51 }
 0x448   :  { %2859 = vmatpush1.bf16.msra.mxu0 %v6501_v54  ;;  %2902 = vmatpush1.bf16.msra.mxu1 %v6504_v43 }
 0x449   :  { %2860 = vmatprep.subr.bf16.mxu0 %v6507_v59  ;;  %2903 = vmatprep.subr.bf16.mxu1 %v6510_v28 }
 0x44c   :  { %2861 = vmatpush1.bf16.msra.mxu0 %v6513_v39  ;;  %2904 = vmatpush1.bf16.msra.mxu1 %v6516_v31 }
 0x44d   :  { %2862 = vmatprep.subr.bf16.mxu0 %v6519_v36  ;;  %2905 = vmatprep.subr.bf16.mxu1 %v6522_v57 }
 0x450   :  { %2863 = vmatpush1.bf16.msra.mxu0 %v6525_v33  ;;  %2906 = vmatpush1.bf16.msra.mxu1 %v6528_v32 }
 0x451   :  { %2864 = vmatprep.subr.bf16.mxu0 %v6531_v50  ;;  %2907 = vmatprep.subr.bf16.mxu1 %v6534_v45 }
 0x454   :  { %2865 = vmatpush1.bf16.msra.mxu0 %v6537_v47  ;;  %2908 = vmatpush1.bf16.msra.mxu1 %v6540_v29  ;;  %v7500_v47 = vld [vmem:[#allocation56_spill] sm:$0xff] }
 0x455   :  { %2866 = vmatprep.subr.bf16.mxu0 %v6543_v48  ;;  %2909 = vmatprep.subr.bf16.mxu1 %v6546_v58 }
 0x458   :  { %2867 = vmatpush1.bf16.msra.mxu0 %v6549_v21  ;;  %2910 = vmatpush1.bf16.msra.mxu1 %v6552_v40 }
 0x459   :  { %2868 = vmatprep.subr.bf16.mxu0 %v6555_v41  ;;  %2911 = vmatprep.subr.bf16.mxu1 %v6558_v52 }
 0x45c   :  { %2869 = vmatpush1.bf16.msra.mxu0 %v6561_v38  ;;  %2912 = vmatpush1.bf16.msra.mxu1 %v6564_v4 }
 0x45d   :  { %2957 = vmatprep.subr.bf16.mxu0 %v6567_v5  ;;  %3000 = vmatprep.subr.bf16.mxu1 %v7498_v10 }
 0x4f1   :  { %v2564_v23 = vpop.f32.mrb[12].mxu0  ;;  %v2607_v16 = vpop.f32.mrb[12].mxu1 }
 0x4f2   :  { %v4572_v55 = vadd.f32 %v2564_v23, %v7499_v22  ;;  %v2566_v19 = vpop.f32.mrb[13].mxu0  ;;  %v2609_v37 = vpop.f32.mrb[13].mxu1 }
 0x4f3   :  { %v4573_v40 = vadd.f32 %v2566_v19, %v7463_v30  ;;  %v2568_v21 = vpop.f32.mrb[14].mxu0  ;;  %v2611_v41 = vpop.f32.mrb[14].mxu1  ;;  %v4605_v23 = vadd.f32 %v2609_v37, %v7464_v56  ;;  %v4604_v19 = vadd.f32 %v2607_v16, %v7500_v47 }
 0x4f4   :  { %v4368_v58 = vmul.f32 -1.442695, %v4572_v55  ;;  %v4574_v52 = vadd.f32 %v2568_v21, %v7499_v22  ;;  %v2570_v38 = vpop.f32.mrb[15].mxu0  ;;  %v2613_v48 = vpop.f32.mrb[15].mxu1  ;;  %v4606_v21 = vadd.f32 %v2611_v41, %v7500_v47 }
 0x4f5   :  { %v4370_v4 = vmul.f32 -1.442695, %v4573_v40  ;;  %v4575_v5 = vadd.f32 %v2570_v38, %v7463_v30  ;;  %v4372_v45 = vmul.f32 -1.442695, %v4605_v23  ;;  %v4607_v55 = vadd.f32 %v2613_v48, %v7464_v56 }
 0x4f6   :  { %5159 = vpow2.f32 %v4368_v58  ;;  %v4369_v10 = vmul.f32 -1.442695, %v4574_v52 }
 0x4f7   :  { %5161 = vpow2.f32 %v4370_v4  ;;  %v4371_v29 = vmul.f32 -1.442695, %v4575_v5  ;;  %v4373_v58 = vmul.f32 -1.442695, %v4607_v55 }
 0x4f8   :  { %5163 = vpow2.f32 %v4369_v10 }
 0x4f9   :  { %5165 = vpow2.f32 %v4371_v29 }
 0x4fa   :  { %5167 = vtanh.f32 %v4604_v19 }
 0x4fb   :  { %5169 = vpow2.f32 %v4372_v45 }
 0x4fc   :  { %5171 = vtanh.f32 %v4606_v21 }
 0x500   :  { %v5160_v22 = vpop.eup %5159 }
 0x501   :  { %v5162_v40 = vpop.eup %5161  ;;  %v2733_v50 = vadd.f32 1.0, %v5160_v22 }
 0x502   :  { %v2745_v52 = vadd.f32 1.0, %v5162_v40  ;;  %v5164_v38 = vpop.eup %5163 }
 0x503   :  { %5173 = vrcp.f32 %v2733_v50  ;;  %v2734_v4 = vadd.f32 1.0, %v5164_v38  ;;  %v5166_v29 = vpop.eup %5165 }
 0x504   :  { %5175 = vrcp.f32 %v2745_v52  ;;  %v2746_v5 = vadd.f32 1.0, %v5166_v29  ;;  %v5168_v48 = vpop.eup %5167 }
 0x505   :  { %5177 = vpow2.f32 %v4373_v58  ;;  %v5170_v10 = vpop.eup %5169 }
 0x506   :  { %5179 = vrcp.f32 %v2734_v4  ;;  %v5172_v41 = vpop.eup %5171  ;;  %v2759_v55 = vadd.f32 1.0, %v5170_v10 }
 0x507   :  { %5181 = vrcp.f32 %v2746_v5 }
 0x508   :  { %5183 = vrcp.f32 %v2759_v55 }
 0x50d   :  { %v5174_v16 = vpop.eup %5173 }
 0x50e   :  { %v5176_v37 = vpop.eup %5175  ;;  %v2767_v23 = vmul.f32 %v5174_v16, %v5168_v48 }
 0x50f   :  { %v5178_v22 = vpop.eup %5177  ;;  %v2765_v45 = vmul.f32 %v5176_v37, %v6582_v12 }
 0x510   :  { %v5180_v19 = vpop.eup %5179  ;;  %v2760_v52 = vadd.f32 1.0, %v5178_v22 }
 0x511   :  { %v6742_v21 = vadd.f32 %v2767_v23, %v2765_v45  ;;  %v2768_v50 = vmul.f32 %v5180_v19, %v5172_v41  ;;  %v5182_v40 = vpop.eup %5181 }
 0x512   :  { %v2766_v58 = vmul.f32 %v5182_v40, %v6587_v18  ;;  %v2667_v38 = vpop.f32.mrb[48].mxu0  ;;  %v2710_v4 = vpop.f32.mrb[48].mxu1 }
 0x513   :  { %v4640_v29 = vadd.f32 %v2667_v38, %v6305_v53  ;;  %v2669_v5 = vpop.f32.mrb[49].mxu0  ;;  %v2712_v47 = vpop.f32.mrb[49].mxu1  ;;  %5185 = vtanh.f32 %v6742_v21 }
 0x514   :  { %v6747_v48 = vadd.f32 %v2768_v50, %v2766_v58  ;;  %v4641_v12 = vadd.f32 %v2669_v5, %v7466_v34  ;;  %v2671_v10 = vpop.f32.mrb[50].mxu0  ;;  %v2714_v16 = vpop.f32.mrb[50].mxu1  ;;  %5187 = vrcp.f32 %v2760_v52  ;;  %v4673_v50 = vadd.f32 %v2712_v47, %v6320_v42 }
 0x515   :  { %v4374_v41 = vmul.f32 -1.442695, %v4640_v29  ;;  %v4642_v37 = vadd.f32 %v2671_v10, %v6305_v53  ;;  %v2673_v18 = vpop.f32.mrb[51].mxu0  ;;  %v2716_v23 = vpop.f32.mrb[51].mxu1  ;;  %v4672_v52 = vadd.f32 %v2710_v4, %v6325_v63 }
 0x516   :  { %5189 = vtanh.f32 %v6747_v48  ;;  %v4376_v22 = vmul.f32 -1.442695, %v4641_v12  ;;  %v4643_v45 = vadd.f32 %v2673_v18, %v7466_v34  ;;  %v5184_v40 = vpop.eup %5183  ;;  %v4378_v38 = vmul.f32 -1.442695, %v4673_v50 }
 0x517   :  { %5191 = vpow2.f32 %v4374_v41  ;;  %v4375_v19 = vmul.f32 -1.442695, %v4642_v37  ;;  %v4675_v29 = vadd.f32 %v2716_v23, %v6320_v42  ;;  %v4674_v12 = vadd.f32 %v2714_v16, %v6325_v63 }
 0x518   :  { %5193 = vpow2.f32 %v4376_v22  ;;  %v4377_v55 = vmul.f32 -1.442695, %v4643_v45 }
 0x519   :  { %5195 = vpow2.f32 %v4375_v19  ;;  %v4379_v47 = vmul.f32 -1.442695, %v4675_v29  ;;  %v7504_v29 = vld [vmem:[#allocation43_spill] sm:$0xff] }
 0x51a   :  { %5197 = vpow2.f32 %v4377_v55 }
 0x51b   :  { %5199 = vtanh.f32 %v4672_v52  ;;  %v7502_v52 = vld [vmem:[#allocation41_spill] sm:$0xff] }
 0x51c   :  { %5201 = vpow2.f32 %v4378_v38  ;;  %v7503_v38 = vld [vmem:[#allocation40_spill] sm:$0xff] }
 0x51d   :  { %v5186_v58 = vpop.eup %5185  ;;  %5203 = vtanh.f32 %v4674_v12 }
 0x51e   :  { %v5188_v5 = vpop.eup %5187  ;;  %v2773_v41 = vmul.f32 %v5186_v58, %v5184_v40  ;;  %v7501_v40 = vld [vmem:[#allocation39_spill] sm:$0xff] }
 0x520   :  { %v5190_v10 = vpop.eup %5189 }
 0x521   :  { %v5192_v18 = vpop.eup %5191  ;;  %v2774_v37 = vmul.f32 %v5190_v10, %v5188_v5 }
 0x522   :  { %v5194_v22 = vpop.eup %5193  ;;  %v2781_v45 = vadd.f32 1.0, %v5192_v18  ;;  %v7505_v18 = vld [vmem:[#allocation42_spill] sm:$0xff] }
 0x523   :  { %v2793_v19 = vadd.f32 1.0, %v5194_v22  ;;  %v2823_v55 = vpack.c.bf16 %v2774_v37, %v2773_v41  ;;  %v5196_v4 = vpop.eup %5195  ;;  %v7506_v41 = vld [vmem:[#allocation45_spill] sm:$0xff] }
 0x524   :  { %5205 = vrcp.f32 %v2781_v45  ;;  %v2782_v50 = vadd.f32 1.0, %v5196_v4  ;;  %v5198_v16 = vpop.eup %5197  ;;  %v7507_v45 = vld [vmem:[#allocation44_spill] sm:$0xff] }
 0x525   :  { %5207 = vrcp.f32 %v2793_v19  ;;  %4514 = vst [vmem:[#allocation18 + $0x18] sm:$0xff] %v2823_v55   ;;  %2887 = vmatmul.mubr.bf16.vlgmr.msra.gmra.mrb[16].mxu0 %v2823_v55  ;;  %2930 = vmatmul.mubr.bf16.vlgmr.msra.gmra.mrb[16].mxu1 %v2823_v55  ;;  %v2794_v23 = vadd.f32 1.0, %v5198_v16  ;;  %v5200_v58 = vpop.eup %5199 }
 0x526   :  { %5209 = vpow2.f32 %v4379_v47  ;;  %2958 = vmatpush1.bf16.msra.mxu0 %v6597_v27  ;;  %3001 = vmatpush1.bf16.msra.mxu1 %v6600_v11  ;;  %v5202_v5 = vpop.eup %5201 }
 0x527   :  { %5211 = vrcp.f32 %v2782_v50  ;;  %2959 = vmatprep.subr.bf16.mxu0 %v6603_v14  ;;  %3002 = vmatprep.subr.bf16.mxu1 %v6606_v17  ;;  %v5204_v12 = vpop.eup %5203  ;;  %v2807_v4 = vadd.f32 1.0, %v5202_v5  ;;  %v7508_v5 = vld [vmem:[#allocation46_spill] sm:$0xff] }
 0x528   :  { %2989 = vmatprep.mubr.bf16.mxu0 %v7428_v3  ;;  %3032 = vmatprep.mubr.bf16.mxu1 %v7428_v3  ;;  %5213 = vrcp.f32 %v2794_v23 }
 0x529   :  { %5215 = vrcp.f32 %v2807_v4 }
 0x52a   :  { %2960 = vmatpush1.bf16.msra.mxu0 %v7501_v40  ;;  %3003 = vmatpush1.bf16.msra.mxu1 %v7502_v52 }
 0x52b   :  { %2961 = vmatprep.subr.bf16.mxu0 %v7503_v38  ;;  %3004 = vmatprep.subr.bf16.mxu1 %v7504_v29 }
 0x52e   :  { %v5206_v10 = vpop.eup %5205  ;;  %2962 = vmatpush1.bf16.msra.mxu0 %v7505_v18  ;;  %3005 = vmatpush1.bf16.msra.mxu1 %v7506_v41 }
 0x52f   :  { %v5208_v37 = vpop.eup %5207  ;;  %v2815_v22 = vmul.f32 %v5206_v10, %v5200_v58  ;;  %2963 = vmatprep.subr.bf16.mxu0 %v7507_v45  ;;  %3006 = vmatprep.subr.bf16.mxu1 %v6632_v46  ;;  %v7510_v10 = vld [vmem:[#allocation48_spill] sm:$0xff] }
 0x530   :  { %v5210_v47 = vpop.eup %5209  ;;  %v2813_v19 = vmul.f32 %v5208_v37, %v6636_v6  ;;  %v7511_v37 = vld [vmem:[#allocation49_spill] sm:$0xff] }
 0x531   :  { %v5212_v55 = vpop.eup %5211  ;;  %v2808_v41 = vadd.f32 1.0, %v5210_v47  ;;  %v7514_v47 = vld [vmem:[#allocation55_spill] sm:$0xff] }
 0x532   :  { %v6772_v50 = vadd.f32 %v2815_v22, %v2813_v19  ;;  %v2816_v16 = vmul.f32 %v5212_v55, %v5204_v12  ;;  %2964 = vmatpush1.bf16.msra.mxu0 %v6638_v20  ;;  %3007 = vmatpush1.bf16.msra.mxu1 %v6641_v60  ;;  %v5214_v23 = vpop.eup %5213  ;;  %v7509_v12 = vld [vmem:[#allocation47_spill] sm:$0xff]  ;;  %v7512_v22 = vld [vmem:[#allocation50_spill] sm:$0xff]  ;;  %v7515_v19 = vld [vmem:[#allocation57_spill] sm:$0xff] }
 0x533   :  { %2965 = vmatprep.subr.bf16.mxu0 %v6644_v61  ;;  %3008 = vmatprep.subr.bf16.mxu1 %v6647_v49  ;;  %v2814_v58 = vmul.f32 %v5214_v23, %v6652_v13  ;;  %v7513_v13 = vld [vmem:[#allocation54_spill] sm:$0xff]  ;;  %v5216_v4 = vpop.eup %5215 }
 0x534   :  { %5217 = vtanh.f32 %v6772_v50  ;;  %v7516_v55 = vld [vmem:[#allocation58_spill] sm:$0xff] }
 0x535   :  { %v6780_v6 = vadd.f32 %v2816_v16, %v2814_v58  ;;  %5219 = vrcp.f32 %v2808_v41  ;;  %v7517_v41 = vld [vmem:[#allocation59_spill] sm:$0xff] }
 0x536   :  { %2966 = vmatpush1.bf16.msra.mxu0 %v6654_v24  ;;  %3009 = vmatpush1.bf16.msra.mxu1 %v7508_v5 }
 0x537   :  { %2967 = vmatprep.subr.bf16.mxu0 %v7509_v12  ;;  %3010 = vmatprep.subr.bf16.mxu1 %v7510_v10  ;;  %5221 = vtanh.f32 %v6780_v6 }
 0x53a   :  { %2968 = vmatpush1.bf16.msra.mxu0 %v7511_v37  ;;  %3011 = vmatpush1.bf16.msra.mxu1 %v7512_v22 }
 0x53b   :  { %2969 = vmatprep.subr.bf16.mxu0 %v7513_v13  ;;  %3012 = vmatprep.subr.bf16.mxu1 %v7514_v47 }
 0x53e   :  { %2970 = vmatpush1.bf16.msra.mxu0 %v7515_v19  ;;  %3013 = vmatpush1.bf16.msra.mxu1 %v7516_v55  ;;  %v5218_v16 = vpop.eup %5217 }
 0x53f   :  { %2971 = vmatprep.subr.bf16.mxu0 %v7517_v41  ;;  %3014 = vmatprep.subr.bf16.mxu1 %v6688_v7  ;;  %v5220_v23 = vpop.eup %5219  ;;  %v2821_v22 = vmul.f32 %v5218_v16, %v5216_v4 }
 0x541   :  { %v5222_v58 = vpop.eup %5221 }
 0x542   :  { %2972 = vmatpush1.bf16.msra.mxu0 %v6691_v9  ;;  %3015 = vmatpush1.bf16.msra.mxu1 %v6694_v15  ;;  %v2822_v13 = vmul.f32 %v5222_v58, %v5220_v23 }
 0x543   :  { %3178 = vmatprep.subr.bf16.mxu0 %v6469_v25  ;;  %3221 = vmatprep.subr.bf16.mxu1 %v6472_v26  ;;  %v7518_v25 = vld [vmem:[#allocation51_spill] sm:$0xff]  ;;  %v7519_v26 = vld [vmem:[#allocation52_spill] sm:$0xff] }
 0x544   :  { %v2834_v19 = vpack.c.bf16 %v2822_v13, %v2821_v22 }
 0x546   :  { %4519 = vst [vmem:[#allocation19 + $0x20] sm:$0xff] %v2834_v19   ;;  %2990 = vmatmul.mubr.bf16.vlgmr.msra.gmra.mrb[44].mxu0 %v2834_v19  ;;  %3033 = vmatmul.mubr.bf16.vlgmr.msra.gmra.mrb[44].mxu1 %v2834_v19 }
 0x547   :  { %3179 = vmatpush1.bf16.msra.mxu0 %v6475_v35  ;;  %3222 = vmatpush1.bf16.msra.mxu1 %v6478_v0  ;;  %v7520_v35 = vld [vmem:[#allocation27_spill] sm:$0xff]  ;;  %v7521_v0 = vld [vmem:[#allocation29_spill] sm:$0xff] }
 0x548   :  { %3180 = vmatprep.subr.bf16.mxu0 %v6481_v8  ;;  %3223 = vmatprep.subr.bf16.mxu1 %v6484_v44  ;;  %v7522_v8 = vld [vmem:[#allocation28_spill] sm:$0xff]  ;;  %v7523_v44 = vld [vmem:[#allocation30_spill] sm:$0xff] }
 0x549   :  { %3210 = vmatprep.mubr.bf16.mxu0 %v7428_v3  ;;  %3253 = vmatprep.mubr.bf16.mxu1 %v7428_v3 }
 0x54b   :  { %3181 = vmatpush1.bf16.msra.mxu0 %v6489_v62  ;;  %3224 = vmatpush1.bf16.msra.mxu1 %v6492_v1  ;;  %v7524_v62 = vld [vmem:[#allocation31_spill] sm:$0xff]  ;;  %v7525_v1 = vld [vmem:[#allocation33_spill] sm:$0xff] }
 0x54c   :  { %3182 = vmatprep.subr.bf16.mxu0 %v6495_v2  ;;  %3225 = vmatprep.subr.bf16.mxu1 %v6498_v51  ;;  %v7526_v2 = vld [vmem:[#allocation32_spill] sm:$0xff]  ;;  %v7527_v51 = vld [vmem:[#allocation35_spill] sm:$0xff] }
 0x54f   :  { %3183 = vmatpush1.bf16.msra.mxu0 %v6501_v54  ;;  %3226 = vmatpush1.bf16.msra.mxu1 %v6504_v43  ;;  %v7528_v54 = vld [vmem:[#allocation34_spill] sm:$0xff]  ;;  %v7529_v43 = vld [vmem:[#allocation37_spill] sm:$0xff] }
 0x550   :  { %3184 = vmatprep.subr.bf16.mxu0 %v6507_v59  ;;  %3227 = vmatprep.subr.bf16.mxu1 %v6510_v28  ;;  %v7530_v59 = vld [vmem:[#allocation36_spill] sm:$0xff]  ;;  %v7531_v28 = vld [vmem:[#allocation38_spill] sm:$0xff] }
 0x553   :  { %3185 = vmatpush1.bf16.msra.mxu0 %v6513_v39  ;;  %3228 = vmatpush1.bf16.msra.mxu1 %v6516_v31 }
 0x554   :  { %3186 = vmatprep.subr.bf16.mxu0 %v6519_v36  ;;  %3229 = vmatprep.subr.bf16.mxu1 %v6522_v57  ;;  %v7532_v36 = vld [vmem:[#allocation53_spill] sm:$0xff] }
 0x557   :  { %3187 = vmatpush1.bf16.msra.mxu0 %v6525_v33  ;;  %3230 = vmatpush1.bf16.msra.mxu1 %v6528_v32 }
 0x558   :  { %3188 = vmatprep.subr.bf16.mxu0 %v7518_v25  ;;  %3231 = vmatprep.subr.bf16.mxu1 %v7519_v26 }
 0x55b   :  { %3189 = vmatpush1.bf16.msra.mxu0 %v7520_v35  ;;  %3232 = vmatpush1.bf16.msra.mxu1 %v7521_v0 }
 0x55c   :  { %3190 = vmatprep.subr.bf16.mxu0 %v7522_v8  ;;  %3233 = vmatprep.subr.bf16.mxu1 %v7523_v44  ;;  %v7533_v44 = vld [vmem:[#allocation56_spill] sm:$0xff] }
 0x55f   :  { %3191 = vmatpush1.bf16.msra.mxu0 %v7524_v62  ;;  %3234 = vmatpush1.bf16.msra.mxu1 %v7525_v1 }
 0x560   :  { %3192 = vmatprep.subr.bf16.mxu0 %v7526_v2  ;;  %3235 = vmatprep.subr.bf16.mxu1 %v7527_v51 }
 0x563   :  { %3193 = vmatpush1.bf16.msra.mxu0 %v7528_v54  ;;  %3236 = vmatpush1.bf16.msra.mxu1 %v7529_v43 }
 0x564   :  { %3281 = vmatprep.subr.bf16.mxu0 %v7530_v59  ;;  %3324 = vmatprep.subr.bf16.mxu1 %v7531_v28 }
 0x5f8   :  { %v2888_v39 = vpop.f32.mrb[16].mxu0  ;;  %v2931_v31 = vpop.f32.mrb[16].mxu1 }
 0x5f9   :  { %v4576_v57 = vadd.f32 %v2888_v39, %v7532_v36  ;;  %v2890_v33 = vpop.f32.mrb[17].mxu0  ;;  %v2933_v32 = vpop.f32.mrb[17].mxu1  ;;  %v4608_v62 = vadd.f32 %v2931_v31, %v7533_v44 }
 0x5fa   :  { %v4577_v22 = vadd.f32 %v2890_v33, %v7463_v30  ;;  %v2892_v13 = vpop.f32.mrb[18].mxu0  ;;  %v2935_v19 = vpop.f32.mrb[18].mxu1  ;;  %v4609_v8 = vadd.f32 %v2933_v32, %v7464_v56 }
 0x5fb   :  { %v4384_v4 = vmul.f32 -1.442695, %v4576_v57  ;;  %v4578_v16 = vadd.f32 %v2892_v13, %v7532_v36  ;;  %v2894_v23 = vpop.f32.mrb[19].mxu0  ;;  %v2937_v58 = vpop.f32.mrb[19].mxu1  ;;  %v4610_v51 = vadd.f32 %v2935_v19, %v7533_v44 }
 0x5fc   :  { %v4386_v25 = vmul.f32 -1.442695, %v4577_v22  ;;  %v4579_v26 = vadd.f32 %v2894_v23, %v7463_v30  ;;  %v4388_v1 = vmul.f32 -1.442695, %v4609_v8  ;;  %v4611_v2 = vadd.f32 %v2937_v58, %v7464_v56 }
 0x5fd   :  { %5223 = vpow2.f32 %v4384_v4  ;;  %v4385_v35 = vmul.f32 -1.442695, %v4578_v16 }
 0x5fe   :  { %5225 = vpow2.f32 %v4386_v25  ;;  %v4387_v0 = vmul.f32 -1.442695, %v4579_v26  ;;  %v4389_v28 = vmul.f32 -1.442695, %v4611_v2 }
 0x5ff   :  { %5227 = vpow2.f32 %v4385_v35 }
 0x600   :  { %5229 = vpow2.f32 %v4387_v0 }
 0x601   :  { %5231 = vtanh.f32 %v4608_v62 }
 0x602   :  { %5233 = vpow2.f32 %v4388_v1 }
 0x603   :  { %5235 = vtanh.f32 %v4610_v51 }
 0x607   :  { %v5224_v54 = vpop.eup %5223 }
 0x608   :  { %v5226_v43 = vpop.eup %5225  ;;  %v3057_v59 = vadd.f32 1.0, %v5224_v54 }
 0x609   :  { %v3069_v39 = vadd.f32 1.0, %v5226_v43  ;;  %v5228_v57 = vpop.eup %5227 }
 0x60a   :  { %5237 = vrcp.f32 %v3057_v59  ;;  %v3058_v33 = vadd.f32 1.0, %v5228_v57  ;;  %v5230_v32 = vpop.eup %5229 }
 0x60b   :  { %5239 = vrcp.f32 %v3069_v39  ;;  %v3070_v31 = vadd.f32 1.0, %v5230_v32  ;;  %v5232_v22 = vpop.eup %5231 }
 0x60c   :  { %5241 = vpow2.f32 %v4389_v28  ;;  %v5234_v13 = vpop.eup %5233 }
 0x60d   :  { %5243 = vrcp.f32 %v3058_v33  ;;  %v5236_v19 = vpop.eup %5235  ;;  %v3083_v35 = vadd.f32 1.0, %v5234_v13 }
 0x60e   :  { %5245 = vrcp.f32 %v3070_v31 }
 0x60f   :  { %5247 = vrcp.f32 %v3083_v35 }
 0x614   :  { %v5238_v4 = vpop.eup %5237 }
 0x615   :  { %v5240_v16 = vpop.eup %5239  ;;  %v3091_v23 = vmul.f32 %v5238_v4, %v5232_v22 }
 0x616   :  { %v5242_v58 = vpop.eup %5241  ;;  %v3089_v25 = vmul.f32 %v5240_v16, %v6742_v21 }
 0x617   :  { %v5244_v26 = vpop.eup %5243  ;;  %v3084_v1 = vadd.f32 1.0, %v5242_v58 }
 0x618   :  { %v6842_v0 = vadd.f32 %v3091_v23, %v3089_v25  ;;  %v3092_v8 = vmul.f32 %v5244_v26, %v5236_v19  ;;  %v5246_v62 = vpop.eup %5245 }
 0x619   :  { %v3090_v2 = vmul.f32 %v5246_v62, %v6747_v48  ;;  %v2991_v51 = vpop.f32.mrb[44].mxu0  ;;  %v3034_v54 = vpop.f32.mrb[44].mxu1 }
 0x61a   :  { %v4636_v43 = vadd.f32 %v2991_v51, %v6305_v53  ;;  %v2993_v59 = vpop.f32.mrb[45].mxu0  ;;  %v3036_v28 = vpop.f32.mrb[45].mxu1  ;;  %5249 = vtanh.f32 %v6842_v0  ;;  %v4668_v25 = vadd.f32 %v3034_v54, %v6325_v63 }
 0x61b   :  { %v6847_v39 = vadd.f32 %v3092_v8, %v3090_v2  ;;  %v4637_v21 = vadd.f32 %v2993_v59, %v7466_v34  ;;  %v2995_v57 = vpop.f32.mrb[46].mxu0  ;;  %v3038_v33 = vpop.f32.mrb[46].mxu1  ;;  %5251 = vrcp.f32 %v3084_v1  ;;  %v4669_v23 = vadd.f32 %v3036_v28, %v6320_v42 }
 0x61c   :  { %v4390_v32 = vmul.f32 -1.442695, %v4636_v43  ;;  %v4638_v31 = vadd.f32 %v2995_v57, %v6305_v53  ;;  %v2997_v48 = vpop.f32.mrb[47].mxu0  ;;  %v3040_v22 = vpop.f32.mrb[47].mxu1  ;;  %v4670_v1 = vadd.f32 %v3038_v33, %v6325_v63 }
 0x61d   :  { %5253 = vtanh.f32 %v6847_v39  ;;  %v4392_v13 = vmul.f32 -1.442695, %v4637_v21  ;;  %v4639_v19 = vadd.f32 %v2997_v48, %v7466_v34  ;;  %v5248_v58 = vpop.eup %5247  ;;  %v4394_v35 = vmul.f32 -1.442695, %v4669_v23 }
 0x61e   :  { %5255 = vpow2.f32 %v4390_v32  ;;  %v4391_v4 = vmul.f32 -1.442695, %v4638_v31  ;;  %v4671_v8 = vadd.f32 %v3040_v22, %v6320_v42 }
 0x61f   :  { %5257 = vpow2.f32 %v4392_v13  ;;  %v4393_v16 = vmul.f32 -1.442695, %v4639_v19 }
 0x620   :  { %5259 = vpow2.f32 %v4391_v4  ;;  %v4395_v28 = vmul.f32 -1.442695, %v4671_v8  ;;  %v6929_v8 = vld [vmem:[#allocation14 + $0x40] ss:$16 sps:$4 sm:$0xff]  }
 0x621   :  { %5261 = vpow2.f32 %v4393_v16 }
 0x622   :  { %5263 = vtanh.f32 %v4668_v25  ;;  %v6920_v25 = vld [vmem:[#allocation14 + $0x28] ss:$16 sps:$4 sm:$0xff]  }
 0x623   :  { %5265 = vpow2.f32 %v4394_v35  ;;  %v6926_v35 = vld [vmem:[#allocation14 + $0x4c] ss:$16 sps:$4 sm:$0xff]  }
 0x624   :  { %v5250_v26 = vpop.eup %5249  ;;  %5267 = vtanh.f32 %v4670_v1  ;;  %v6935_v1 = vld [vmem:[#allocation14 + $0x64] ss:$16 sps:$4 sm:$0xff]  }
 0x625   :  { %v5252_v62 = vpop.eup %5251  ;;  %v3097_v43 = vmul.f32 %v5250_v26, %v5248_v58  ;;  %v6923_v26 = vld [vmem:[#allocation14 + $0x44] ss:$16 sps:$4 sm:$0xff]  }
 0x627   :  { %v5254_v2 = vpop.eup %5253 }
 0x628   :  { %v5256_v51 = vpop.eup %5255  ;;  %v3098_v59 = vmul.f32 %v5254_v2, %v5252_v62  ;;  %v6932_v62 = vld [vmem:[#allocation14 + $0x48] ss:$16 sps:$4 sm:$0xff]   ;;  %v6938_v2 = vld [vmem:[#allocation14 + $0x6c] ss:$16 sps:$4 sm:$0xff]  }
 0x629   :  { %v5258_v21 = vpop.eup %5257  ;;  %v3105_v57 = vadd.f32 1.0, %v5256_v51  ;;  %v6941_v51 = vld [vmem:[#allocation14 + $0x60] ss:$16 sps:$4 sm:$0xff]  }
 0x62a   :  { %v3117_v32 = vadd.f32 1.0, %v5258_v21  ;;  %v3147_v31 = vpack.c.bf16 %v3098_v59, %v3097_v43  ;;  %v5260_v54 = vpop.eup %5259  ;;  %v6944_v43 = vld [vmem:[#allocation14 + $0x68] ss:$16 sps:$4 sm:$0xff]   ;;  %v6947_v59 = vld [vmem:[#allocation14 + $0x84] ss:$16 sps:$4 sm:$0xff]  }
 0x62b   :  { %5269 = vrcp.f32 %v3105_v57  ;;  %v3106_v48 = vadd.f32 1.0, %v5260_v54  ;;  %v5262_v33 = vpop.eup %5261  ;;  %v6950_v21 = vld [vmem:[#allocation14 + $0x8c] ss:$16 sps:$4 sm:$0xff]   ;;  %v6953_v57 = vld [vmem:[#allocation14 + $0x80] ss:$16 sps:$4 sm:$0xff]  }
 0x62c   :  { %5271 = vrcp.f32 %v3117_v32  ;;  %4524 = vst [vmem:[#allocation18 + $0x20] sm:$0xff] %v3147_v31   ;;  %3211 = vmatmul.mubr.bf16.vlgmr.msra.gmra.mrb[20].mxu0 %v3147_v31  ;;  %3254 = vmatmul.mubr.bf16.vlgmr.msra.gmra.mrb[20].mxu1 %v3147_v31  ;;  %v3118_v22 = vadd.f32 1.0, %v5262_v33  ;;  %v5264_v13 = vpop.eup %5263  ;;  %v6959_v32 = vld [vmem:[#allocation14 + $0xa4] ss:$16 sps:$4 sm:$0xff]   ;;  %v6962_v31 = vld [vmem:[#allocation14 + $0xac] ss:$16 sps:$4 sm:$0xff]  }
 0x62d   :  { %5273 = vpow2.f32 %v4395_v28  ;;  %3282 = vmatpush1.bf16.msra.mxu0 %v6597_v27  ;;  %3325 = vmatpush1.bf16.msra.mxu1 %v6600_v11  ;;  %v5266_v27 = vpop.eup %5265  ;;  %v6956_v28 = vld [vmem:[#allocation14 + $0x88] ss:$16 sps:$4 sm:$0xff]   ;;  %v6965_v54 = vld [vmem:[#allocation14 + $0xa0] ss:$16 sps:$4 sm:$0xff]   ;;  %v6971_v33 = vld [vmem:[#allocation14 + $0xc4] ss:$16 sps:$4 sm:$0xff]  }
 0x62e   :  { %5275 = vrcp.f32 %v3106_v48  ;;  %3283 = vmatprep.subr.bf16.mxu0 %v6603_v14  ;;  %3326 = vmatprep.subr.bf16.mxu1 %v6606_v17  ;;  %v5268_v11 = vpop.eup %5267  ;;  %v7534_v14 = vld [vmem:[#allocation45_spill] sm:$0xff] }
 0x62f   :  { %3313 = vmatprep.mubr.bf16.mxu0 %v7428_v3  ;;  %3356 = vmatprep.mubr.bf16.mxu1 %v7428_v3  ;;  %5277 = vrcp.f32 %v3118_v22  ;;  %v6968_v48 = vld [vmem:[#allocation14 + $0xa8] ss:$16 sps:$4 sm:$0xff]   ;;  %v6974_v22 = vld [vmem:[#allocation14 + $0xcc] ss:$16 sps:$4 sm:$0xff]  }
 0x631   :  { %3284 = vmatpush1.bf16.msra.mxu0 %v7501_v40  ;;  %3327 = vmatpush1.bf16.msra.mxu1 %v7502_v52 }
 0x632   :  { %3285 = vmatprep.subr.bf16.mxu0 %v7503_v38  ;;  %3328 = vmatprep.subr.bf16.mxu1 %v7504_v29  ;;  %v3131_v38 = vadd.f32 1.0, %v5266_v27  ;;  %v6980_v27 = vld [vmem:[#allocation14 + $0xc8] ss:$16 sps:$4 sm:$0xff]  }
 0x634   :  { %5279 = vrcp.f32 %v3131_v38 }
 0x635   :  { %v5270_v19 = vpop.eup %5269  ;;  %3286 = vmatpush1.bf16.msra.mxu0 %v7505_v18  ;;  %3329 = vmatpush1.bf16.msra.mxu1 %v7534_v14  ;;  %v6989_v14 = vld [vmem:[#allocation14 + $0xe0] ss:$16 sps:$4 sm:$0xff]  }
 0x636   :  { %v5272_v17 = vpop.eup %5271  ;;  %v3139_v4 = vmul.f32 %v5270_v19, %v5264_v13  ;;  %3287 = vmatprep.subr.bf16.mxu0 %v7507_v45  ;;  %3330 = vmatprep.subr.bf16.mxu1 %v6632_v46  ;;  %v6977_v13 = vld [vmem:[#allocation14 + $0xc0] ss:$16 sps:$4 sm:$0xff]   ;;  %v6986_v19 = vld [vmem:[#allocation14 + $0xec] ss:$16 sps:$4 sm:$0xff]  }
 0x637   :  { %v5274_v40 = vpop.eup %5273  ;;  %v3137_v52 = vmul.f32 %v5272_v17, %v6772_v50  ;;  %v6992_v17 = vld [vmem:[#allocation14 + $0xe8] ss:$16 sps:$4 sm:$0xff]  }
 0x638   :  { %v5276_v16 = vpop.eup %5275  ;;  %v3132_v58 = vadd.f32 1.0, %v5274_v40  ;;  %v6998_v40 = vld [vmem:[#allocation15 + $0xc] ss:$16 sps:$4 sm:$0xff]  }
 0x639   :  { %v6872_v23 = vadd.f32 %v3139_v4, %v3137_v52  ;;  %v3140_v29 = vmul.f32 %v5276_v16, %v5268_v11  ;;  %3288 = vmatpush1.bf16.msra.mxu0 %v6638_v20  ;;  %3331 = vmatpush1.bf16.msra.mxu1 %v6641_v60  ;;  %v5278_v18 = vpop.eup %5277  ;;  %v7535_v20 = vld [vmem:[#allocation50_spill] sm:$0xff]  ;;  %v7537_v60 = vld [vmem:[#allocation57_spill] sm:$0xff]  ;;  %7538 = vst [vmem:[#allocation39_spill] sm:$0xff] %v6998_v40 }
 0x63a   :  { %3289 = vmatprep.subr.bf16.mxu0 %v6644_v61  ;;  %3332 = vmatprep.subr.bf16.mxu1 %v6647_v49  ;;  %v3138_v46 = vmul.f32 %v5278_v18, %v6780_v6  ;;  %v7536_v61 = vld [vmem:[#allocation54_spill] sm:$0xff] }
 0x63b   :  { %5281 = vtanh.f32 %v6872_v23  ;;  %v6983_v11 = vld [vmem:[#allocation14 + $0xe4] ss:$16 sps:$4 sm:$0xff]  }
 0x63c   :  { %v6880_v45 = vadd.f32 %v3140_v29, %v3138_v46  ;;  %5283 = vrcp.f32 %v3132_v58  ;;  %v6995_v4 = vld [vmem:[#allocation15 + $0x4] ss:$16 sps:$4 sm:$0xff]  }
 0x63d   :  { %3290 = vmatpush1.bf16.msra.mxu0 %v6654_v24  ;;  %3333 = vmatpush1.bf16.msra.mxu1 %v7508_v5 }
 0x63e   :  { %3291 = vmatprep.subr.bf16.mxu0 %v7509_v12  ;;  %3334 = vmatprep.subr.bf16.mxu1 %v7510_v10  ;;  %5285 = vtanh.f32 %v6880_v45  ;;  %v5280_v49 = vpop.eup %5279  ;;  %v6897_v10 = vld [vmem:[#allocation14 + $0x4] ss:$16 sps:$4 sm:$0xff]  }
 0x641   :  { %3292 = vmatpush1.bf16.msra.mxu0 %v7511_v37  ;;  %3335 = vmatpush1.bf16.msra.mxu1 %v7535_v20  ;;  %v6900_v37 = vld [vmem:[#allocation14 + $0xc] ss:$16 sps:$4 sm:$0xff]  }
 0x642   :  { %3293 = vmatprep.subr.bf16.mxu0 %v7536_v61  ;;  %3336 = vmatprep.subr.bf16.mxu1 %v7514_v47 }
 0x645   :  { %3294 = vmatpush1.bf16.msra.mxu0 %v7537_v60  ;;  %3337 = vmatpush1.bf16.msra.mxu1 %v7516_v55  ;;  %v5282_v24 = vpop.eup %5281  ;;  %v6912_v55 = vld [vmem:[#allocation14 + $0x2c] ss:$16 sps:$4 sm:$0xff]  }
 0x646   :  { %3295 = vmatprep.subr.bf16.mxu0 %v7517_v41  ;;  %3338 = vmatprep.subr.bf16.mxu1 %v6688_v7  ;;  %v5284_v50 = vpop.eup %5283  ;;  %v3145_v5 = vmul.f32 %v5282_v24, %v5280_v49  ;;  %v6903_v7 = vld [vmem:[#allocation14] ss:$16 sps:$4 sm:$0xff]  }
 0x647   :  { %v6917_v41 = vld [vmem:[#allocation14 + $0x20] ss:$16 sps:$4 sm:$0xff]  }
 0x648   :  { %v5286_v6 = vpop.eup %5285 }
 0x649   :  { %3296 = vmatpush1.bf16.msra.mxu0 %v6691_v9  ;;  %3339 = vmatpush1.bf16.msra.mxu1 %v6694_v15  ;;  %v3146_v12 = vmul.f32 %v5286_v6, %v5284_v50  ;;  %v6906_v9 = vld [vmem:[#allocation14 + $0x8] ss:$16 sps:$4 sm:$0xff]   ;;  %v6909_v15 = vld [vmem:[#allocation14 + $0x24] ss:$16 sps:$4 sm:$0xff]  }
 0x64a   :  { %3502 = vmatprep.subr.bf16.mxu0 %v6897_v10  ;;  %3545 = vmatprep.subr.bf16.mxu1 %v6900_v37 }
 0x64b   :  { %v3158_v47 = vpack.c.bf16 %v3146_v12, %v3145_v5 }
 0x64d   :  { %4529 = vst [vmem:[#allocation19 + $0x18] sm:$0xff] %v3158_v47   ;;  %3314 = vmatmul.mubr.bf16.vlgmr.msra.gmra.mrb[40].mxu0 %v3158_v47  ;;  %3357 = vmatmul.mubr.bf16.vlgmr.msra.gmra.mrb[40].mxu1 %v3158_v47 }
 0x64e   :  { %3503 = vmatpush1.bf16.msra.mxu0 %v6903_v7  ;;  %3546 = vmatpush1.bf16.msra.mxu1 %v6906_v9 }
 0x64f   :  { %3504 = vmatprep.subr.bf16.mxu0 %v6909_v15  ;;  %3547 = vmatprep.subr.bf16.mxu1 %v6912_v55 }
 0x650   :  { %3534 = vmatprep.mubr.bf16.mxu0 %v7428_v3  ;;  %3577 = vmatprep.mubr.bf16.mxu1 %v7428_v3 }
 0x652   :  { %3505 = vmatpush1.bf16.msra.mxu0 %v6917_v41  ;;  %3548 = vmatpush1.bf16.msra.mxu1 %v6920_v25 }
 0x653   :  { %3506 = vmatprep.subr.bf16.mxu0 %v6923_v26  ;;  %3549 = vmatprep.subr.bf16.mxu1 %v6926_v35 }
 0x656   :  { %3507 = vmatpush1.bf16.msra.mxu0 %v6929_v8  ;;  %3550 = vmatpush1.bf16.msra.mxu1 %v6932_v62 }
 0x657   :  { %3508 = vmatprep.subr.bf16.mxu0 %v6935_v1  ;;  %3551 = vmatprep.subr.bf16.mxu1 %v6938_v2 }
 0x65a   :  { %3509 = vmatpush1.bf16.msra.mxu0 %v6941_v51  ;;  %3552 = vmatpush1.bf16.msra.mxu1 %v6944_v43 }
 0x65b   :  { %3510 = vmatprep.subr.bf16.mxu0 %v6947_v59  ;;  %3553 = vmatprep.subr.bf16.mxu1 %v6950_v21 }
 0x65e   :  { %3511 = vmatpush1.bf16.msra.mxu0 %v6953_v57  ;;  %3554 = vmatpush1.bf16.msra.mxu1 %v6956_v28 }
 0x65f   :  { %3512 = vmatprep.subr.bf16.mxu0 %v6959_v32  ;;  %3555 = vmatprep.subr.bf16.mxu1 %v6962_v31 }
 0x662   :  { %3513 = vmatpush1.bf16.msra.mxu0 %v6965_v54  ;;  %3556 = vmatpush1.bf16.msra.mxu1 %v6968_v48 }
 0x663   :  { %3514 = vmatprep.subr.bf16.mxu0 %v6971_v33  ;;  %3557 = vmatprep.subr.bf16.mxu1 %v6974_v22 }
 0x666   :  { %3515 = vmatpush1.bf16.msra.mxu0 %v6977_v13  ;;  %3558 = vmatpush1.bf16.msra.mxu1 %v6980_v27 }
 0x667   :  { %3516 = vmatprep.subr.bf16.mxu0 %v6983_v11  ;;  %3559 = vmatprep.subr.bf16.mxu1 %v6986_v19 }
 0x66a   :  { %3517 = vmatpush1.bf16.msra.mxu0 %v6989_v14  ;;  %3560 = vmatpush1.bf16.msra.mxu1 %v6992_v17 }
 0x66b   :  { %3605 = vmatprep.subr.bf16.mxu0 %v6995_v4  ;;  %3648 = vmatprep.subr.bf16.mxu1 %v6998_v40 }
 0x6ff   :  { %v3212_v52 = vpop.f32.mrb[20].mxu0  ;;  %v3255_v16 = vpop.f32.mrb[20].mxu1 }
 0x700   :  { %v4580_v38 = vadd.f32 %v3212_v52, %v7532_v36  ;;  %v3214_v29 = vpop.f32.mrb[21].mxu0  ;;  %v3257_v18 = vpop.f32.mrb[21].mxu1  ;;  %v4612_v52 = vadd.f32 %v3255_v16, %v7533_v44 }
 0x701   :  { %v4581_v58 = vadd.f32 %v3214_v29, %v7463_v30  ;;  %v3216_v46 = vpop.f32.mrb[22].mxu0  ;;  %v3259_v20 = vpop.f32.mrb[22].mxu1  ;;  %v4613_v47 = vadd.f32 %v3257_v18, %v7464_v56 }
 0x702   :  { %v4400_v61 = vmul.f32 -1.442695, %v4580_v38  ;;  %v4582_v60 = vadd.f32 %v3216_v46, %v7532_v36  ;;  %v3218_v49 = vpop.f32.mrb[23].mxu0  ;;  %v3261_v24 = vpop.f32.mrb[23].mxu1  ;;  %v4614_v46 = vadd.f32 %v3259_v20, %v7533_v44 }
 0x703   :  { %v4402_v50 = vmul.f32 -1.442695, %v4581_v58  ;;  %v4583_v6 = vadd.f32 %v3218_v49, %v7463_v30  ;;  %v4404_v29 = vmul.f32 -1.442695, %v4613_v47  ;;  %v4615_v38 = vadd.f32 %v3261_v24, %v7464_v56 }
 0x704   :  { %5287 = vpow2.f32 %v4400_v61  ;;  %v4401_v5 = vmul.f32 -1.442695, %v4582_v60 }
 0x705   :  { %5289 = vpow2.f32 %v4402_v50  ;;  %v4403_v12 = vmul.f32 -1.442695, %v4583_v6  ;;  %v4405_v61 = vmul.f32 -1.442695, %v4615_v38 }
 0x706   :  { %5291 = vpow2.f32 %v4401_v5 }
 0x707   :  { %5293 = vpow2.f32 %v4403_v12 }
 0x708   :  { %5295 = vtanh.f32 %v4612_v52 }
 0x709   :  { %5297 = vpow2.f32 %v4404_v29 }
 0x70a   :  { %5299 = vtanh.f32 %v4614_v46 }
 0x70e   :  { %v5288_v36 = vpop.eup %5287 }
 0x70f   :  { %v5290_v58 = vpop.eup %5289  ;;  %v3381_v40 = vadd.f32 1.0, %v5288_v36 }
 0x710   :  { %v3393_v60 = vadd.f32 1.0, %v5290_v58  ;;  %v5292_v49 = vpop.eup %5291 }
 0x711   :  { %5301 = vrcp.f32 %v3381_v40  ;;  %v3382_v18 = vadd.f32 1.0, %v5292_v49  ;;  %v5294_v50 = vpop.eup %5293 }
 0x712   :  { %5303 = vrcp.f32 %v3393_v60  ;;  %v3394_v16 = vadd.f32 1.0, %v5294_v50  ;;  %v5296_v24 = vpop.eup %5295 }
 0x713   :  { %5305 = vpow2.f32 %v4405_v61  ;;  %v5298_v6 = vpop.eup %5297 }
 0x714   :  { %5307 = vrcp.f32 %v3382_v18  ;;  %v5300_v20 = vpop.eup %5299  ;;  %v3407_v38 = vadd.f32 1.0, %v5298_v6 }
 0x715   :  { %5309 = vrcp.f32 %v3394_v16 }
 0x716   :  { %5311 = vrcp.f32 %v3407_v38 }
 0x71b   :  { %v5302_v5 = vpop.eup %5301 }
 0x71c   :  { %v5304_v12 = vpop.eup %5303  ;;  %v3415_v47 = vmul.f32 %v5302_v5, %v5296_v24 }
 0x71d   :  { %v5306_v36 = vpop.eup %5305  ;;  %v3413_v52 = vmul.f32 %v5304_v12, %v6842_v0 }
 0x71e   :  { %v5308_v29 = vpop.eup %5307  ;;  %v3408_v60 = vadd.f32 1.0, %v5306_v36 }
 0x71f   :  { %v7010_v46 = vadd.f32 %v3415_v47, %v3413_v52  ;;  %v3416_v40 = vmul.f32 %v5308_v29, %v5300_v20  ;;  %v5310_v58 = vpop.eup %5309 }
 0x720   :  { %v3414_v61 = vmul.f32 %v5310_v58, %v6847_v39  ;;  %v3315_v49 = vpop.f32.mrb[40].mxu0  ;;  %v3358_v18 = vpop.f32.mrb[40].mxu1 }
 0x721   :  { %v4632_v50 = vadd.f32 %v3315_v49, %v6305_v53  ;;  %v3317_v16 = vpop.f32.mrb[41].mxu0  ;;  %v3360_v44 = vpop.f32.mrb[41].mxu1  ;;  %5313 = vtanh.f32 %v7010_v46 }
 0x722   :  { %v7015_v24 = vadd.f32 %v3416_v40, %v3414_v61  ;;  %v4633_v0 = vadd.f32 %v3317_v16, %v7466_v34  ;;  %v3319_v6 = vpop.f32.mrb[42].mxu0  ;;  %v3362_v5 = vpop.f32.mrb[42].mxu1  ;;  %5315 = vrcp.f32 %v3408_v60  ;;  %v4665_v40 = vadd.f32 %v3360_v44, %v6320_v42 }
 0x723   :  { %v4406_v20 = vmul.f32 -1.442695, %v4632_v50  ;;  %v4634_v12 = vadd.f32 %v3319_v6, %v6305_v53  ;;  %v3321_v39 = vpop.f32.mrb[43].mxu0  ;;  %v3364_v47 = vpop.f32.mrb[43].mxu1  ;;  %v4664_v60 = vadd.f32 %v3358_v18, %v6325_v63 }
 0x724   :  { %5317 = vtanh.f32 %v7015_v24  ;;  %v4408_v36 = vmul.f32 -1.442695, %v4633_v0  ;;  %v4635_v52 = vadd.f32 %v3321_v39, %v7466_v34  ;;  %v5312_v58 = vpop.eup %5311  ;;  %v4410_v49 = vmul.f32 -1.442695, %v4665_v40 }
 0x725   :  { %5319 = vpow2.f32 %v4406_v20  ;;  %v4407_v29 = vmul.f32 -1.442695, %v4634_v12  ;;  %v4667_v50 = vadd.f32 %v3364_v47, %v6320_v42  ;;  %v4666_v0 = vadd.f32 %v3362_v5, %v6325_v63  ;;  %v7025_v47 = vld [vmem:[#allocation15] ss:$16 sps:$4 sm:$0xff]  }
 0x726   :  { %5321 = vpow2.f32 %v4408_v36  ;;  %v4409_v38 = vmul.f32 -1.442695, %v4635_v52 }
 0x727   :  { %5323 = vpow2.f32 %v4407_v29  ;;  %v4411_v44 = vmul.f32 -1.442695, %v4667_v50  ;;  %v7039_v50 = vld [vmem:[#allocation15 + $0x20] ss:$16 sps:$4 sm:$0xff]  }
 0x728   :  { %5325 = vpow2.f32 %v4409_v38  ;;  %7539 = vst [vmem:[#allocation41_spill] sm:$0xff] %v7039_v50 }
 0x729   :  { %5327 = vtanh.f32 %v4664_v60 }
 0x72a   :  { %5329 = vpow2.f32 %v4410_v49  ;;  %v7034_v49 = vld [vmem:[#allocation15 + $0x2c] ss:$16 sps:$4 sm:$0xff]  }
 0x72b   :  { %v5314_v61 = vpop.eup %5313  ;;  %5331 = vtanh.f32 %v4666_v0 }
 0x72c   :  { %v5316_v16 = vpop.eup %5315  ;;  %v3421_v20 = vmul.f32 %v5314_v61, %v5312_v58  ;;  %v7028_v58 = vld [vmem:[#allocation15 + $0x8] ss:$16 sps:$4 sm:$0xff]   ;;  %v7031_v61 = vld [vmem:[#allocation15 + $0x24] ss:$16 sps:$4 sm:$0xff]  }
 0x72e   :  { %v5318_v6 = vpop.eup %5317 }
 0x72f   :  { %v5320_v39 = vpop.eup %5319  ;;  %v3422_v12 = vmul.f32 %v5318_v6, %v5316_v16  ;;  %v7042_v16 = vld [vmem:[#allocation15 + $0x28] ss:$16 sps:$4 sm:$0xff]   ;;  %v7045_v6 = vld [vmem:[#allocation15 + $0x44] ss:$16 sps:$4 sm:$0xff]  }
 0x730   :  { %v5322_v36 = vpop.eup %5321  ;;  %v3429_v52 = vadd.f32 1.0, %v5320_v39  ;;  %7540 = vst [vmem:[#allocation40_spill] sm:$0xff] %v7042_v16  ;;  %7541 = vst [vmem:[#allocation43_spill] sm:$0xff] %v7045_v6  ;;  %v7048_v39 = vld [vmem:[#allocation15 + $0x4c] ss:$16 sps:$4 sm:$0xff]  }
 0x731   :  { %v3441_v29 = vadd.f32 1.0, %v5322_v36  ;;  %v3471_v38 = vpack.c.bf16 %v3422_v12, %v3421_v20  ;;  %v5324_v18 = vpop.eup %5323  ;;  %7542 = vst [vmem:[#allocation42_spill] sm:$0xff] %v7048_v39 }
 0x732   :  { %5333 = vrcp.f32 %v3429_v52  ;;  %v3430_v40 = vadd.f32 1.0, %v5324_v18  ;;  %v5326_v5 = vpop.eup %5325  ;;  %v7051_v52 = vld [vmem:[#allocation15 + $0x40] ss:$16 sps:$4 sm:$0xff]   ;;  %v7057_v18 = vld [vmem:[#allocation15 + $0x64] ss:$16 sps:$4 sm:$0xff]  }
 0x733   :  { %5335 = vrcp.f32 %v3441_v29  ;;  %4534 = vst [vmem:[#allocation18 + $0x28] sm:$0xff] %v3471_v38   ;;  %3535 = vmatmul.mubr.bf16.vlgmr.msra.gmra.mrb[24].mxu0 %v3471_v38  ;;  %3578 = vmatmul.mubr.bf16.vlgmr.msra.gmra.mrb[24].mxu1 %v3471_v38  ;;  %v3442_v60 = vadd.f32 1.0, %v5326_v5  ;;  %v5328_v0 = vpop.eup %5327  ;;  %7543 = vst [vmem:[#allocation44_spill] sm:$0xff] %v7051_v52 }
 0x734   :  { %5337 = vpow2.f32 %v4411_v44  ;;  %3606 = vmatpush1.bf16.msra.mxu0 %v7025_v47  ;;  %3649 = vmatpush1.bf16.msra.mxu1 %v7028_v58  ;;  %v5330_v20 = vpop.eup %5329  ;;  %v7054_v44 = vld [vmem:[#allocation15 + $0x48] ss:$16 sps:$4 sm:$0xff]   ;;  %7545 = vst [vmem:[#allocation47_spill] sm:$0xff] %v7057_v18 }
 0x735   :  { %5339 = vrcp.f32 %v3430_v40  ;;  %3607 = vmatprep.subr.bf16.mxu0 %v7031_v61  ;;  %3650 = vmatprep.subr.bf16.mxu1 %v7034_v49  ;;  %v5332_v12 = vpop.eup %5331  ;;  %7544 = vst [vmem:[#allocation46_spill] sm:$0xff] %v7054_v44  ;;  %v7060_v40 = vld [vmem:[#allocation15 + $0x6c] ss:$16 sps:$4 sm:$0xff]  }
 0x736   :  { %3637 = vmatprep.mubr.bf16.mxu0 %v7428_v3  ;;  %3680 = vmatprep.mubr.bf16.mxu1 %v7428_v3  ;;  %5341 = vrcp.f32 %v3442_v60 }
 0x738   :  { %3608 = vmatpush1.bf16.msra.mxu0 %v7039_v50  ;;  %3651 = vmatpush1.bf16.msra.mxu1 %v7042_v16  ;;  %v7066_v50 = vld [vmem:[#allocation15 + $0x60] ss:$16 sps:$4 sm:$0xff]  }
 0x739   :  { %3609 = vmatprep.subr.bf16.mxu0 %v7045_v6  ;;  %3652 = vmatprep.subr.bf16.mxu1 %v7048_v39  ;;  %v3455_v6 = vadd.f32 1.0, %v5330_v20 }
 0x73b   :  { %5343 = vrcp.f32 %v3455_v6  ;;  %v7101_v6 = vld [vmem:[#allocation15 + $0xc4] ss:$16 sps:$4 sm:$0xff]  }
 0x73c   :  { %v5334_v36 = vpop.eup %5333  ;;  %3610 = vmatpush1.bf16.msra.mxu0 %v7051_v52  ;;  %3653 = vmatpush1.bf16.msra.mxu1 %v7054_v44  ;;  %v7072_v44 = vld [vmem:[#allocation15 + $0x84] ss:$16 sps:$4 sm:$0xff]   ;;  %7551 = vst [vmem:[#allocation51_spill] sm:$0xff] %v7101_v6 }
 0x73d   :  { %v5336_v29 = vpop.eup %5335  ;;  %v3463_v38 = vmul.f32 %v5334_v36, %v5328_v0  ;;  %3611 = vmatprep.subr.bf16.mxu0 %v7057_v18  ;;  %3654 = vmatprep.subr.bf16.mxu1 %v7060_v40  ;;  %v7069_v0 = vld [vmem:[#allocation15 + $0x68] ss:$16 sps:$4 sm:$0xff]  }
 0x73e   :  { %v5338_v5 = vpop.eup %5337  ;;  %v3461_v60 = vmul.f32 %v5336_v29, %v6872_v23  ;;  %v7075_v23 = vld [vmem:[#allocation15 + $0x8c] ss:$16 sps:$4 sm:$0xff]   ;;  %v7085_v29 = vld [vmem:[#allocation15 + $0x88] ss:$16 sps:$4 sm:$0xff]  }
 0x73f   :  { %v5340_v39 = vpop.eup %5339  ;;  %v3456_v18 = vadd.f32 1.0, %v5338_v5  ;;  %7546 = vst [vmem:[#allocation48_spill] sm:$0xff] %v7085_v29  ;;  %v7091_v5 = vld [vmem:[#allocation15 + $0xac] ss:$16 sps:$4 sm:$0xff]  }
 0x740   :  { %v7064_v52 = vadd.f32 %v3463_v38, %v3461_v60  ;;  %v3464_v16 = vmul.f32 %v5340_v39, %v5332_v12  ;;  %3612 = vmatpush1.bf16.msra.mxu0 %v7066_v50  ;;  %3655 = vmatpush1.bf16.msra.mxu1 %v7069_v0  ;;  %v5342_v36 = vpop.eup %5341  ;;  %v7082_v12 = vld [vmem:[#allocation15 + $0x80] ss:$16 sps:$4 sm:$0xff]   ;;  %v7088_v38 = vld [vmem:[#allocation15 + $0xa4] ss:$16 sps:$4 sm:$0xff]   ;;  %7548 = vst [vmem:[#allocation55_spill] sm:$0xff] %v7091_v5 }
 0x741   :  { %3613 = vmatprep.subr.bf16.mxu0 %v7072_v44  ;;  %3656 = vmatprep.subr.bf16.mxu1 %v7075_v23  ;;  %v3462_v39 = vmul.f32 %v5342_v36, %v6880_v45  ;;  %7547 = vst [vmem:[#allocation49_spill] sm:$0xff] %v7088_v38  ;;  %v7095_v45 = vld [vmem:[#allocation15 + $0xa0] ss:$16 sps:$4 sm:$0xff]   ;;  %v7110_v36 = vld [vmem:[#allocation15 + $0xc8] ss:$16 sps:$4 sm:$0xff]  }
 0x742   :  { %5345 = vtanh.f32 %v7064_v52  ;;  %7549 = vst [vmem:[#allocation58_spill] sm:$0xff] %v7095_v45  ;;  %v7107_v60 = vld [vmem:[#allocation15 + $0xc0] ss:$16 sps:$4 sm:$0xff]   ;;  %7554 = vst [vmem:[#allocation29_spill] sm:$0xff] %v7110_v36 }
 0x743   :  { %v7080_v20 = vadd.f32 %v3464_v16, %v3462_v39  ;;  %5347 = vrcp.f32 %v3456_v18  ;;  %v7098_v16 = vld [vmem:[#allocation15 + $0xa8] ss:$16 sps:$4 sm:$0xff]   ;;  %v7104_v18 = vld [vmem:[#allocation15 + $0xcc] ss:$16 sps:$4 sm:$0xff]   ;;  %7553 = vst [vmem:[#allocation27_spill] sm:$0xff] %v7107_v60 }
 0x744   :  { %3614 = vmatpush1.bf16.msra.mxu0 %v7082_v12  ;;  %3657 = vmatpush1.bf16.msra.mxu1 %v7085_v29  ;;  %7550 = vst [vmem:[#allocation59_spill] sm:$0xff] %v7098_v16  ;;  %7552 = vst [vmem:[#allocation52_spill] sm:$0xff] %v7104_v18 }
 0x745   :  { %3615 = vmatprep.subr.bf16.mxu0 %v7088_v38  ;;  %3658 = vmatprep.subr.bf16.mxu1 %v7091_v5  ;;  %5349 = vtanh.f32 %v7080_v20  ;;  %v5344_v39 = vpop.eup %5343  ;;  %v7119_v38 = vld [vmem:[#allocation15 + $0xe0] ss:$16 sps:$4 sm:$0xff]  }
 0x748   :  { %3616 = vmatpush1.bf16.msra.mxu0 %v7095_v45  ;;  %3659 = vmatpush1.bf16.msra.mxu1 %v7098_v16  ;;  %v7113_v45 = vld [vmem:[#allocation15 + $0xe4] ss:$16 sps:$4 sm:$0xff]   ;;  %v7116_v16 = vld [vmem:[#allocation15 + $0xec] ss:$16 sps:$4 sm:$0xff]  }
 0x749   :  { %3617 = vmatprep.subr.bf16.mxu0 %v7101_v6  ;;  %3660 = vmatprep.subr.bf16.mxu1 %v7104_v18  ;;  %7555 = vst [vmem:[#allocation28_spill] sm:$0xff] %v7113_v45 }
 0x74c   :  { %3618 = vmatpush1.bf16.msra.mxu0 %v7107_v60  ;;  %3661 = vmatpush1.bf16.msra.mxu1 %v7110_v36  ;;  %v5346_v6 = vpop.eup %5345  ;;  %v7122_v60 = vld [vmem:[#allocation15 + $0xe8] ss:$16 sps:$4 sm:$0xff]  }
 0x74d   :  { %3619 = vmatprep.subr.bf16.mxu0 %v7113_v45  ;;  %3662 = vmatprep.subr.bf16.mxu1 %v7116_v16  ;;  %v5348_v5 = vpop.eup %5347  ;;  %v3469_v36 = vmul.f32 %v5346_v6, %v5344_v39 }
 0x74f   :  { %v5350_v18 = vpop.eup %5349 }
 0x750   :  { %3620 = vmatpush1.bf16.msra.mxu0 %v7119_v38  ;;  %3663 = vmatpush1.bf16.msra.mxu1 %v7122_v60  ;;  %v3470_v29 = vmul.f32 %v5350_v18, %v5348_v5 }
 0x751   :  { %3826 = vmatprep.subr.bf16.mxu0 %v6897_v10  ;;  %3869 = vmatprep.subr.bf16.mxu1 %v6900_v37  ;;  %v7556_v10 = vld [vmem:[#allocation39_spill] sm:$0xff] }
 0x752   :  { %v3482_v45 = vpack.c.bf16 %v3470_v29, %v3469_v36 }
 0x754   :  { %4539 = vst [vmem:[#allocation19 + $0x10] sm:$0xff] %v3482_v45   ;;  %3638 = vmatmul.mubr.bf16.vlgmr.msra.gmra.mrb[36].mxu0 %v3482_v45  ;;  %3681 = vmatmul.mubr.bf16.vlgmr.msra.gmra.mrb[36].mxu1 %v3482_v45 }
 0x755   :  { %3827 = vmatpush1.bf16.msra.mxu0 %v6903_v7  ;;  %3870 = vmatpush1.bf16.msra.mxu1 %v6906_v9  ;;  %v7557_v9 = vld [vmem:[#allocation53_spill] sm:$0xff] }
 0x756   :  { %3828 = vmatprep.subr.bf16.mxu0 %v6909_v15  ;;  %3871 = vmatprep.subr.bf16.mxu1 %v6912_v55 }
 0x757   :  { %3858 = vmatprep.mubr.bf16.mxu0 %v7428_v3  ;;  %3901 = vmatprep.mubr.bf16.mxu1 %v7428_v3 }
 0x759   :  { %3829 = vmatpush1.bf16.msra.mxu0 %v6917_v41  ;;  %3872 = vmatpush1.bf16.msra.mxu1 %v6920_v25 }
 0x75a   :  { %3830 = vmatprep.subr.bf16.mxu0 %v6923_v26  ;;  %3873 = vmatprep.subr.bf16.mxu1 %v6926_v35 }
 0x75d   :  { %3831 = vmatpush1.bf16.msra.mxu0 %v6929_v8  ;;  %3874 = vmatpush1.bf16.msra.mxu1 %v6932_v62 }
 0x75e   :  { %3832 = vmatprep.subr.bf16.mxu0 %v6935_v1  ;;  %3875 = vmatprep.subr.bf16.mxu1 %v6938_v2 }
 0x761   :  { %3833 = vmatpush1.bf16.msra.mxu0 %v6941_v51  ;;  %3876 = vmatpush1.bf16.msra.mxu1 %v6944_v43 }
 0x762   :  { %3834 = vmatprep.subr.bf16.mxu0 %v6947_v59  ;;  %3877 = vmatprep.subr.bf16.mxu1 %v6950_v21 }
 0x765   :  { %3835 = vmatpush1.bf16.msra.mxu0 %v6953_v57  ;;  %3878 = vmatpush1.bf16.msra.mxu1 %v6956_v28  ;;  %v7558_v28 = vld [vmem:[#allocation56_spill] sm:$0xff] }
 0x766   :  { %3836 = vmatprep.subr.bf16.mxu0 %v6959_v32  ;;  %3879 = vmatprep.subr.bf16.mxu1 %v6962_v31 }
 0x769   :  { %3837 = vmatpush1.bf16.msra.mxu0 %v6965_v54  ;;  %3880 = vmatpush1.bf16.msra.mxu1 %v6968_v48 }
 0x76a   :  { %3838 = vmatprep.subr.bf16.mxu0 %v6971_v33  ;;  %3881 = vmatprep.subr.bf16.mxu1 %v6974_v22 }
 0x76d   :  { %3839 = vmatpush1.bf16.msra.mxu0 %v6977_v13  ;;  %3882 = vmatpush1.bf16.msra.mxu1 %v6980_v27 }
 0x76e   :  { %3840 = vmatprep.subr.bf16.mxu0 %v6983_v11  ;;  %3883 = vmatprep.subr.bf16.mxu1 %v6986_v19 }
 0x771   :  { %3841 = vmatpush1.bf16.msra.mxu0 %v6989_v14  ;;  %3884 = vmatpush1.bf16.msra.mxu1 %v6992_v17 }
 0x772   :  { %3928 = vmatprep.subr.bf16.mxu0 %v6995_v4  ;;  %3971 = vmatprep.subr.bf16.mxu1 %v7556_v10 }
 0x806   :  { %v3536_v37 = vpop.f32.mrb[24].mxu0  ;;  %v3579_v7 = vpop.f32.mrb[24].mxu1 }
 0x807   :  { %v4584_v15 = vadd.f32 %v3536_v37, %v7557_v9  ;;  %v3538_v55 = vpop.f32.mrb[25].mxu0  ;;  %v3581_v41 = vpop.f32.mrb[25].mxu1  ;;  %v4616_v32 = vadd.f32 %v3579_v7, %v7558_v28 }
 0x808   :  { %v4585_v25 = vadd.f32 %v3538_v55, %v7463_v30  ;;  %v3540_v26 = vpop.f32.mrb[26].mxu0  ;;  %v3583_v35 = vpop.f32.mrb[26].mxu1  ;;  %v4617_v57 = vadd.f32 %v3581_v41, %v7464_v56 }
 0x809   :  { %v4416_v8 = vmul.f32 -1.442695, %v4584_v15  ;;  %v4586_v62 = vadd.f32 %v3540_v26, %v7557_v9  ;;  %v3542_v1 = vpop.f32.mrb[27].mxu0  ;;  %v3585_v2 = vpop.f32.mrb[27].mxu1  ;;  %v4618_v48 = vadd.f32 %v3583_v35, %v7558_v28 }
 0x80a   :  { %v4418_v51 = vmul.f32 -1.442695, %v4585_v25  ;;  %v4587_v43 = vadd.f32 %v3542_v1, %v7463_v30  ;;  %v4420_v31 = vmul.f32 -1.442695, %v4617_v57  ;;  %v4619_v54 = vadd.f32 %v3585_v2, %v7464_v56 }
 0x80b   :  { %5351 = vpow2.f32 %v4416_v8  ;;  %v4417_v59 = vmul.f32 -1.442695, %v4586_v62 }
 0x80c   :  { %5353 = vpow2.f32 %v4418_v51  ;;  %v4419_v21 = vmul.f32 -1.442695, %v4587_v43  ;;  %v4421_v27 = vmul.f32 -1.442695, %v4619_v54 }
 0x80d   :  { %5355 = vpow2.f32 %v4417_v59 }
 0x80e   :  { %5357 = vpow2.f32 %v4419_v21 }
 0x80f   :  { %5359 = vtanh.f32 %v4616_v32 }
 0x810   :  { %5361 = vpow2.f32 %v4420_v31 }
 0x811   :  { %5363 = vtanh.f32 %v4618_v48 }
 0x815   :  { %v5352_v33 = vpop.eup %5351 }
 0x816   :  { %v5354_v22 = vpop.eup %5353  ;;  %v3705_v13 = vadd.f32 1.0, %v5352_v33 }
 0x817   :  { %v3717_v11 = vadd.f32 1.0, %v5354_v22  ;;  %v5356_v19 = vpop.eup %5355 }
 0x818   :  { %5365 = vrcp.f32 %v3705_v13  ;;  %v3706_v14 = vadd.f32 1.0, %v5356_v19  ;;  %v5358_v17 = vpop.eup %5357 }
 0x819   :  { %5367 = vrcp.f32 %v3717_v11  ;;  %v3718_v4 = vadd.f32 1.0, %v5358_v17  ;;  %v5360_v29 = vpop.eup %5359 }
 0x81a   :  { %5369 = vpow2.f32 %v4421_v27  ;;  %v5362_v5 = vpop.eup %5361 }
 0x81b   :  { %5371 = vrcp.f32 %v3706_v14  ;;  %v5364_v45 = vpop.eup %5363  ;;  %v3731_v7 = vadd.f32 1.0, %v5362_v5 }
 0x81c   :  { %5373 = vrcp.f32 %v3718_v4 }
 0x81d   :  { %5375 = vrcp.f32 %v3731_v7 }
 0x822   :  { %v5366_v6 = vpop.eup %5365 }
 0x823   :  { %v5368_v18 = vpop.eup %5367  ;;  %v3739_v36 = vmul.f32 %v5366_v6, %v5360_v29 }
 0x824   :  { %v5370_v39 = vpop.eup %5369  ;;  %v3737_v10 = vmul.f32 %v5368_v18, %v7010_v46 }
 0x825   :  { %v5372_v37 = vpop.eup %5371  ;;  %v3732_v25 = vadd.f32 1.0, %v5370_v39 }
 0x826   :  { %v7170_v15 = vadd.f32 %v3739_v36, %v3737_v10  ;;  %v3740_v55 = vmul.f32 %v5372_v37, %v5364_v45  ;;  %v5374_v41 = vpop.eup %5373 }
 0x827   :  { %v3738_v26 = vmul.f32 %v5374_v41, %v7015_v24  ;;  %v3639_v35 = vpop.f32.mrb[36].mxu0  ;;  %v3682_v8 = vpop.f32.mrb[36].mxu1 }
 0x828   :  { %v4628_v62 = vadd.f32 %v3639_v35, %v6305_v53  ;;  %v3641_v1 = vpop.f32.mrb[37].mxu0  ;;  %v3684_v2 = vpop.f32.mrb[37].mxu1  ;;  %5377 = vtanh.f32 %v7170_v15  ;;  %v4660_v27 = vadd.f32 %v3682_v8, %v6325_v63  ;;  %v7560_v35 = vld [vmem:[#allocation40_spill] sm:$0xff] }
 0x829   :  { %v7175_v51 = vadd.f32 %v3740_v55, %v3738_v26  ;;  %v4629_v46 = vadd.f32 %v3641_v1, %v7466_v34  ;;  %v3643_v43 = vpop.f32.mrb[38].mxu0  ;;  %v3686_v59 = vpop.f32.mrb[38].mxu1  ;;  %5379 = vrcp.f32 %v3732_v25  ;;  %v4661_v22 = vadd.f32 %v3684_v2, %v6320_v42  ;;  %v7559_v26 = vld [vmem:[#allocation41_spill] sm:$0xff] }
 0x82a   :  { %v4422_v21 = vmul.f32 -1.442695, %v4628_v62  ;;  %v4630_v57 = vadd.f32 %v3643_v43, %v6305_v53  ;;  %v3645_v24 = vpop.f32.mrb[39].mxu0  ;;  %v3688_v32 = vpop.f32.mrb[39].mxu1  ;;  %v4662_v4 = vadd.f32 %v3686_v59, %v6325_v63  ;;  %v7561_v62 = vld [vmem:[#allocation43_spill] sm:$0xff] }
 0x82b   :  { %5381 = vtanh.f32 %v7175_v51  ;;  %v4424_v31 = vmul.f32 -1.442695, %v4629_v46  ;;  %v4631_v54 = vadd.f32 %v3645_v24, %v7466_v34  ;;  %v5376_v13 = vpop.eup %5375  ;;  %v4426_v19 = vmul.f32 -1.442695, %v4661_v22  ;;  %v7572_v22 = vld [vmem:[#allocation52_spill] sm:$0xff] }
 0x82c   :  { %5383 = vpow2.f32 %v4422_v21  ;;  %v4423_v48 = vmul.f32 -1.442695, %v4630_v57  ;;  %v4663_v14 = vadd.f32 %v3688_v32, %v6320_v42 }
 0x82d   :  { %5385 = vpow2.f32 %v4424_v31  ;;  %v4425_v33 = vmul.f32 -1.442695, %v4631_v54 }
 0x82e   :  { %5387 = vpow2.f32 %v4423_v48  ;;  %v4427_v39 = vmul.f32 -1.442695, %v4663_v14 }
 0x82f   :  { %5389 = vpow2.f32 %v4425_v33  ;;  %v7566_v33 = vld [vmem:[#allocation48_spill] sm:$0xff] }
 0x830   :  { %5391 = vtanh.f32 %v4660_v27 }
 0x831   :  { %5393 = vpow2.f32 %v4426_v19 }
 0x832   :  { %v5378_v11 = vpop.eup %5377  ;;  %5395 = vtanh.f32 %v4662_v4 }
 0x833   :  { %v5380_v17 = vpop.eup %5379  ;;  %v3745_v45 = vmul.f32 %v5378_v11, %v5376_v13  ;;  %v7573_v13 = vld [vmem:[#allocation27_spill] sm:$0xff]  ;;  %v7575_v11 = vld [vmem:[#allocation28_spill] sm:$0xff] }
 0x835   :  { %v5382_v29 = vpop.eup %5381 }
 0x836   :  { %v5384_v5 = vpop.eup %5383  ;;  %v3746_v6 = vmul.f32 %v5382_v29, %v5380_v17 }
 0x837   :  { %v5386_v18 = vpop.eup %5385  ;;  %v3753_v36 = vadd.f32 1.0, %v5384_v5 }
 0x838   :  { %v3765_v10 = vadd.f32 1.0, %v5386_v18  ;;  %v3795_v37 = vpack.c.bf16 %v3746_v6, %v3745_v45  ;;  %v5388_v7 = vpop.eup %5387 }
 0x839   :  { %5397 = vrcp.f32 %v3753_v36  ;;  %v3754_v55 = vadd.f32 1.0, %v5388_v7  ;;  %v5390_v41 = vpop.eup %5389 }
 0x83a   :  { %5399 = vrcp.f32 %v3765_v10  ;;  %4544 = vst [vmem:[#allocation18 + $0x30] sm:$0xff] %v3795_v37   ;;  %3859 = vmatmul.mubr.bf16.vlgmr.msra.gmra.mrb[28].mxu0 %v3795_v37  ;;  %3902 = vmatmul.mubr.bf16.vlgmr.msra.gmra.mrb[28].mxu1 %v3795_v37  ;;  %v3766_v25 = vadd.f32 1.0, %v5390_v41  ;;  %v5392_v8 = vpop.eup %5391 }
 0x83b   :  { %5401 = vpow2.f32 %v4427_v39  ;;  %3929 = vmatpush1.bf16.msra.mxu0 %v7025_v47  ;;  %3972 = vmatpush1.bf16.msra.mxu1 %v7028_v58  ;;  %v7562_v47 = vld [vmem:[#allocation42_spill] sm:$0xff]  ;;  %v5394_v58 = vpop.eup %5393 }
 0x83c   :  { %5403 = vrcp.f32 %v3754_v55  ;;  %3930 = vmatprep.subr.bf16.mxu0 %v7031_v61  ;;  %3973 = vmatprep.subr.bf16.mxu1 %v7034_v49  ;;  %v5396_v1 = vpop.eup %5395  ;;  %v7563_v61 = vld [vmem:[#allocation44_spill] sm:$0xff]  ;;  %v7564_v49 = vld [vmem:[#allocation46_spill] sm:$0xff]  ;;  %v3779_v24 = vadd.f32 1.0, %v5394_v58 }
 0x83d   :  { %3960 = vmatprep.mubr.bf16.mxu0 %v7428_v3  ;;  %4003 = vmatprep.mubr.bf16.mxu1 %v7428_v3  ;;  %5405 = vrcp.f32 %v3766_v25  ;;  %v7565_v3 = vld [vmem:[#allocation47_spill] sm:$0xff] }
 0x83e   :  { %5407 = vrcp.f32 %v3779_v24 }
 0x83f   :  { %3931 = vmatpush1.bf16.msra.mxu0 %v7559_v26  ;;  %3974 = vmatpush1.bf16.msra.mxu1 %v7560_v35 }
 0x840   :  { %3932 = vmatprep.subr.bf16.mxu0 %v7561_v62  ;;  %3975 = vmatprep.subr.bf16.mxu1 %v7562_v47 }
 0x843   :  { %v5398_v2 = vpop.eup %5397  ;;  %3933 = vmatpush1.bf16.msra.mxu0 %v7563_v61  ;;  %3976 = vmatpush1.bf16.msra.mxu1 %v7564_v49 }
 0x844   :  { %v5400_v46 = vpop.eup %5399  ;;  %v3787_v43 = vmul.f32 %v5398_v2, %v5392_v8  ;;  %3934 = vmatprep.subr.bf16.mxu0 %v7565_v3  ;;  %3977 = vmatprep.subr.bf16.mxu1 %v7060_v40 }
 0x845   :  { %v5402_v59 = vpop.eup %5401  ;;  %v3785_v21 = vmul.f32 %v5400_v46, %v7064_v52 }
 0x846   :  { %v5404_v57 = vpop.eup %5403  ;;  %v3780_v48 = vadd.f32 1.0, %v5402_v59 }
 0x847   :  { %v7200_v32 = vadd.f32 %v3787_v43, %v3785_v21  ;;  %v3788_v31 = vmul.f32 %v5404_v57, %v5396_v1  ;;  %3935 = vmatpush1.bf16.msra.mxu0 %v7066_v50  ;;  %3978 = vmatpush1.bf16.msra.mxu1 %v7069_v0  ;;  %v5406_v54 = vpop.eup %5405  ;;  %v7567_v50 = vld [vmem:[#allocation49_spill] sm:$0xff]  ;;  %v7568_v0 = vld [vmem:[#allocation55_spill] sm:$0xff] }
 0x848   :  { %3936 = vmatprep.subr.bf16.mxu0 %v7072_v44  ;;  %3979 = vmatprep.subr.bf16.mxu1 %v7075_v23  ;;  %v3786_v40 = vmul.f32 %v5406_v54, %v7080_v20  ;;  %v7569_v44 = vld [vmem:[#allocation58_spill] sm:$0xff]  ;;  %v7570_v23 = vld [vmem:[#allocation59_spill] sm:$0xff]  ;;  %v5408_v27 = vpop.eup %5407 }
 0x849   :  { %5409 = vtanh.f32 %v7200_v32  ;;  %v7571_v20 = vld [vmem:[#allocation51_spill] sm:$0xff] }
 0x84a   :  { %v7208_v52 = vadd.f32 %v3788_v31, %v3786_v40  ;;  %5411 = vrcp.f32 %v3780_v48 }
 0x84b   :  { %3937 = vmatpush1.bf16.msra.mxu0 %v7082_v12  ;;  %3980 = vmatpush1.bf16.msra.mxu1 %v7566_v33  ;;  %v7574_v12 = vld [vmem:[#allocation29_spill] sm:$0xff] }
 0x84c   :  { %3938 = vmatprep.subr.bf16.mxu0 %v7567_v50  ;;  %3981 = vmatprep.subr.bf16.mxu1 %v7568_v0  ;;  %5413 = vtanh.f32 %v7208_v52 }
 0x84f   :  { %3939 = vmatpush1.bf16.msra.mxu0 %v7569_v44  ;;  %3982 = vmatpush1.bf16.msra.mxu1 %v7570_v23 }
 0x850   :  { %3940 = vmatprep.subr.bf16.mxu0 %v7571_v20  ;;  %3983 = vmatprep.subr.bf16.mxu1 %v7572_v22 }
 0x853   :  { %3941 = vmatpush1.bf16.msra.mxu0 %v7573_v13  ;;  %3984 = vmatpush1.bf16.msra.mxu1 %v7574_v12  ;;  %v5410_v19 = vpop.eup %5409 }
 0x854   :  { %3942 = vmatprep.subr.bf16.mxu0 %v7575_v11  ;;  %3985 = vmatprep.subr.bf16.mxu1 %v7116_v16  ;;  %v5412_v14 = vpop.eup %5411  ;;  %v3793_v4 = vmul.f32 %v5410_v19, %v5408_v27 }
 0x856   :  { %v5414_v17 = vpop.eup %5413 }
 0x857   :  { %3943 = vmatpush1.bf16.msra.mxu0 %v7119_v38  ;;  %3986 = vmatpush1.bf16.msra.mxu1 %v7122_v60  ;;  %v3794_v29 = vmul.f32 %v5414_v17, %v5412_v14 }
 0x859   :  { %v3806_v5 = vpack.c.bf16 %v3794_v29, %v3793_v4 }
 0x85b   :  { %4549 = vst [vmem:[#allocation19 + $0x8] sm:$0xff] %v3806_v5   ;;  %3961 = vmatmul.mubr.bf16.vlgmr.msra.gmra.mrb[32].mxu0 %v3806_v5  ;;  %4004 = vmatmul.mubr.bf16.vlgmr.msra.gmra.mrb[32].mxu1 %v3806_v5 }
 0x90d   :  { %v3860_v45 = vpop.f32.mrb[28].mxu0  ;;  %v3903_v6 = vpop.f32.mrb[28].mxu1 }
 0x90e   :  { %v4588_v18 = vadd.f32 %v3860_v45, %v7557_v9  ;;  %v3862_v36 = vpop.f32.mrb[29].mxu0  ;;  %v3905_v39 = vpop.f32.mrb[29].mxu1  ;;  %v4620_v62 = vadd.f32 %v3903_v6, %v7558_v28 }
 0x90f   :  { %v4589_v16 = vadd.f32 %v3862_v36, %v7463_v30  ;;  %v3864_v10 = vpop.f32.mrb[30].mxu0  ;;  %v3907_v37 = vpop.f32.mrb[30].mxu1  ;;  %v4621_v8 = vadd.f32 %v3905_v39, %v7464_v56 }
 0x910   :  { %v4432_v7 = vmul.f32 -1.442695, %v4588_v18  ;;  %v4590_v38 = vadd.f32 %v3864_v10, %v7557_v9  ;;  %v3866_v60 = vpop.f32.mrb[31].mxu0  ;;  %v3909_v55 = vpop.f32.mrb[31].mxu1  ;;  %v4622_v9 = vadd.f32 %v3907_v37, %v7558_v28 }
 0x911   :  { %v4434_v41 = vmul.f32 -1.442695, %v4589_v16  ;;  %v4591_v25 = vadd.f32 %v3866_v60, %v7463_v30  ;;  %v4436_v47 = vmul.f32 -1.442695, %v4621_v8  ;;  %v4623_v58 = vadd.f32 %v3909_v55, %v7464_v56 }
 0x912   :  { %5415 = vpow2.f32 %v4432_v7  ;;  %v4433_v26 = vmul.f32 -1.442695, %v4590_v38 }
 0x913   :  { %5417 = vpow2.f32 %v4434_v41  ;;  %v4435_v35 = vmul.f32 -1.442695, %v4591_v25  ;;  %v4437_v30 = vmul.f32 -1.442695, %v4623_v58 }
 0x914   :  { %5419 = vpow2.f32 %v4433_v26 }
 0x915   :  { %5421 = vpow2.f32 %v4435_v35 }
 0x916   :  { %5423 = vtanh.f32 %v4620_v62 }
 0x917   :  { %5425 = vpow2.f32 %v4436_v47 }
 0x918   :  { %5427 = vtanh.f32 %v4622_v9 }
 0x91c   :  { %v5416_v1 = vpop.eup %5415 }
 0x91d   :  { %v5418_v2 = vpop.eup %5417  ;;  %v4028_v61 = vadd.f32 1.0, %v5416_v1 }
 0x91e   :  { %v4040_v49 = vadd.f32 1.0, %v5418_v2  ;;  %v5420_v46 = vpop.eup %5419 }
 0x91f   :  { %5429 = vrcp.f32 %v4028_v61  ;;  %v4029_v43 = vadd.f32 1.0, %v5420_v46  ;;  %v5422_v3 = vpop.eup %5421 }
 0x920   :  { %5431 = vrcp.f32 %v4040_v49  ;;  %v4041_v59 = vadd.f32 1.0, %v5422_v3  ;;  %v5424_v56 = vpop.eup %5423 }
 0x921   :  { %5433 = vpow2.f32 %v4437_v30  ;;  %v5426_v21 = vpop.eup %5425 }
 0x922   :  { %5435 = vrcp.f32 %v4029_v43  ;;  %v5428_v28 = vpop.eup %5427  ;;  %v4054_v54 = vadd.f32 1.0, %v5426_v21 }
 0x923   :  { %5437 = vrcp.f32 %v4041_v59 }
 0x924   :  { %5439 = vrcp.f32 %v4054_v54 }
 0x929   :  { %v5430_v57 = vpop.eup %5429 }
 0x92a   :  { %v5432_v24 = vpop.eup %5431  ;;  %v4062_v31 = vmul.f32 %v5430_v57, %v5424_v56 }
 0x92b   :  { %v5434_v48 = vpop.eup %5433  ;;  %v4060_v40 = vmul.f32 %v5432_v24, %v7170_v15 }
 0x92c   :  { %v5436_v33 = vpop.eup %5435  ;;  %v4055_v23 = vadd.f32 1.0, %v5434_v48 }
 0x92d   :  { %v4064_v50 = vadd.f32 %v4062_v31, %v4060_v40  ;;  %v4063_v0 = vmul.f32 %v5436_v33, %v5428_v28  ;;  %v5438_v44 = vpop.eup %5437 }
 0x92e   :  { %v4061_v20 = vmul.f32 %v5438_v44, %v7175_v51  ;;  %v3962_v22 = vpop.f32.mrb[32].mxu0  ;;  %v4005_v13 = vpop.f32.mrb[32].mxu1 }
 0x92f   :  { %5441 = vtanh.f32 %v4064_v50  ;;  %v4624_v12 = vadd.f32 %v3962_v22, %v6305_v53  ;;  %v3964_v27 = vpop.f32.mrb[33].mxu0  ;;  %v4007_v11 = vpop.f32.mrb[33].mxu1  ;;  %v4656_v7 = vadd.f32 %v4005_v13, %v6325_v63 }
 0x930   :  { %v4065_v19 = vadd.f32 %v4063_v0, %v4061_v20  ;;  %v4625_v14 = vadd.f32 %v3964_v27, %v7466_v34  ;;  %v3966_v17 = vpop.f32.mrb[34].mxu0  ;;  %v4009_v15 = vpop.f32.mrb[34].mxu1  ;;  %5443 = vrcp.f32 %v4055_v23  ;;  %v4657_v39 = vadd.f32 %v4007_v11, %v6320_v42 }
 0x931   :  { %v4438_v4 = vmul.f32 -1.442695, %v4624_v12  ;;  %v4626_v29 = vadd.f32 %v3966_v17, %v6305_v53  ;;  %v3968_v5 = vpop.f32.mrb[35].mxu0  ;;  %v4011_v45 = vpop.f32.mrb[35].mxu1  ;;  %v4658_v55 = vadd.f32 %v4009_v15, %v6325_v63 }
 0x932   :  { %5445 = vtanh.f32 %v4065_v19  ;;  %v4440_v6 = vmul.f32 -1.442695, %v4625_v14  ;;  %v4627_v51 = vadd.f32 %v3968_v5, %v7466_v34  ;;  %v5440_v16 = vpop.eup %5439  ;;  %v4442_v53 = vmul.f32 -1.442695, %v4657_v39 }
 0x933   :  { %5447 = vpow2.f32 %v4438_v4  ;;  %v4439_v18 = vmul.f32 -1.442695, %v4626_v29  ;;  %v4659_v38 = vadd.f32 %v4011_v45, %v6320_v42 }
 0x934   :  { %5449 = vpow2.f32 %v4440_v6  ;;  %v4441_v36 = vmul.f32 -1.442695, %v4627_v51 }
 0x935   :  { %5451 = vpow2.f32 %v4439_v18  ;;  %v4443_v8 = vmul.f32 -1.442695, %v4659_v38 }
 0x936   :  { %5453 = vpow2.f32 %v4441_v36 }
 0x937   :  { %5455 = vtanh.f32 %v4656_v7 }
 0x938   :  { %5457 = vpow2.f32 %v4442_v53 }
 0x939   :  { %v5442_v10 = vpop.eup %5441  ;;  %5459 = vtanh.f32 %v4658_v55 }
 0x93a   :  { %v4068_v37 = vmul.f32 %v5442_v10, %v5440_v16  ;;  %v5444_v60 = vpop.eup %5443 }
 0x93c   :  { %v5446_v34 = vpop.eup %5445 }
 0x93d   :  { %v5448_v41 = vpop.eup %5447  ;;  %v4069_v25 = vmul.f32 %v5446_v34, %v5444_v60 }
 0x93e   :  { %v5450_v26 = vpop.eup %5449  ;;  %v4076_v35 = vadd.f32 1.0, %v5448_v41 }
 0x93f   :  { %v4553_v62 = vpack.c.bf16 %v4069_v25, %v4068_v37  ;;  %v4088_v47 = vadd.f32 1.0, %v5450_v26  ;;  %v5452_v58 = vpop.eup %5451 }
 0x940   :  { %5461 = vrcp.f32 %v4076_v35  ;;  %v4077_v42 = vadd.f32 1.0, %v5452_v58  ;;  %v5454_v63 = vpop.eup %5453 }
 0x941   :  { %4554 = vst [vmem:[#allocation18 + $0x38] sm:$0xff] %v4553_v62   ;;  %5463 = vrcp.f32 %v4088_v47 }
 0x942   :  { %5465 = vpow2.f32 %v4443_v8 }
 0x943   :  { %5772 = shalt.err (!%p5769_p4)
}
 0x944   :  { %s5773_s30 = scalar_lea.hbm %s7282_s7, 1024 }
 0x945   :  { %p5774_p5 = scmp.ne.s32.totalorder %s7282_s7, %s5773_s30  ;;  %p5777_p6 = scmp.lt.u32.totalorder %s5773_s30, %s7282_s7 }
 0x947   :  { %p5779_p7 = pnand %p5777_p6, %p5774_p5 }
 0x949   :  { %5782 = shalt.err (!%p5779_p7)
}
 0x94a   :  { %4158 = dma.vmem_to_hbm [thread:$0]  %s4153_s9, 1024, %s7282_s7, [#allocation8], %s5818_s15, %s5818_s15, %s5819_s16   ;;  %5467 = vrcp.f32 %v4077_v42  ;;  %v4089_v9 = vadd.f32 1.0, %v5454_v63  ;;  %v5456_v1 = vpop.eup %5455 }
 0x94b   :  { %v5458_v2 = vpop.eup %5457  ;;  %s5831_s7 = smov [#allocation19]  }
 0x94c   :  { %5469 = vrcp.f32 %v4089_v9  ;;  %v5460_v61 = vpop.eup %5459  ;;  %v4102_v43 = vadd.f32 1.0, %v5458_v2  ;;  %s4169_s22 = sshll.u32 %s5831_s7, 4  ;;  %s4170_s22 = int_to_ptr.vmem [resolvable:$true] %s4169_s22 }
 0x94d   :  { %v5462_v30 = vpop.eup %5461  ;;  %s5783_s14 = scalar_lea.vmem %s4170_s22, 1024  ;;  %p5788_p9 = scmp.lt.s32.totalorder %s4170_s22, %s4170_s22 }
 0x94e   :  { %v5464_v49 = vpop.eup %5463  ;;  %v4110_v46 = vmul.f32 %v5462_v30, %v5456_v1  ;;  %5471 = vrcp.f32 %v4102_v43  ;;  %p5784_p8 = scmp.ne.s32.totalorder %s4170_s22, %s5783_s14  ;;  %p5789_p10 = scmp.lt.s32.totalorder %s5783_s14, %s5783_s14 }
 0x94f   :  { %v5466_v3 = vpop.eup %5465  ;;  %v4108_v59 = vmul.f32 %v5464_v49, %v7200_v32 }
 0x950   :  { %v4103_v24 = vadd.f32 1.0, %v5466_v3  ;;  %p5790_p11 = por %p5789_p10, %p5788_p9 }
 0x951   :  { %v4112_v21 = vadd.f32 %v4110_v46, %v4108_v59 }
 0x952   :  { %p5791_p12 = pnand %p5790_p11, %p5784_p8 }
 0x953   :  { %5473 = vtanh.f32 %v4112_v21 }
 0x954   :  { %v5468_v56 = vpop.eup %5467  ;;  %5475 = vrcp.f32 %v4103_v24 }
 0x955   :  { %v4111_v28 = vmul.f32 %v5468_v56, %v5460_v61 }
 0x956   :  { %v5470_v57 = vpop.eup %5469 }
 0x957   :  { %v4109_v31 = vmul.f32 %v5470_v57, %v7208_v52 }
 0x958   :  { %v5472_v48 = vpop.eup %5471 }
 0x959   :  { %v4113_v54 = vadd.f32 %v4111_v28, %v4109_v31 }
 0x95b   :  { %5477 = vtanh.f32 %v4113_v54 }
 0x95d   :  { %v5474_v40 = vpop.eup %5473 }
 0x95e   :  { %v4116_v33 = vmul.f32 %v5474_v40, %v5472_v48  ;;  %v5476_v50 = vpop.eup %5475 }
 0x965   :  { %v5478_v0 = vpop.eup %5477 }
 0x966   :  { %v4117_v32 = vmul.f32 %v5478_v0, %v5476_v50 }
 0x968   :  { %v4558_v44 = vpack.c.bf16 %v4117_v32, %v4116_v33 }
 0x96a   :  { %4559 = vst [vmem:[#allocation19] sm:$0xff] %v4558_v44  }
 0x96b   :  { %5794 = shalt.err (!%p5791_p12)
}
 0x96c   :  { %s5795_s17 = scalar_lea.hbm %s7283_s8, 1024 }
 0x96d   :  { %p5796_p13 = scmp.ne.s32.totalorder %s7283_s8, %s5795_s17  ;;  %p5799_p0 = scmp.lt.u32.totalorder %s5795_s17, %s7283_s8 }
 0x96f   :  { %p5801_p1 = pnand %p5799_p0, %p5796_p13 }
 0x971   :  { %5804 = shalt.err (!%p5801_p1)
}
 0x972   :  { %4175 = dma.vmem_to_hbm [thread:$0]  %s4170_s22, 1024, %s7283_s8, [#allocation20], %s5818_s15, %s5818_s15, %s5819_s16  }
 0x973   :  { %5813 = dma.done.wait [#allocation8], 1024  }
 0x974   :  { %5814 = vsyncadd [#allocation8], 4294966272 }
 0x975   :  { %5815 = dma.done.wait [#allocation20], 1024  }
 0x976   :  { %5816 = vsyncadd [#allocation20], 4294966272 }
 0x977   :  { %4182 = vsyncpa [#allocation7], 1 }
 0x978   :  { %4183 = vsyncpa [#allocation10], 1 }
 0x979   :  { %4184 = vsyncpa [#allocation13], 1 }
 0x97a   :  { %4185 = vsyncpa [#allocation16], 1 }
 0x97b   :  { %4186 = vsyncpa [#allocation8], 1 }
 0x97c   :  { %4187 = vsyncpa [#allocation20], 1 }

</bundles_post_ra>
